<compile_context>
chip_gen: v6e
topology: v6e:2x2x1
jax: 0.10.0
libtpu: 0.0.40
codegen_flags: <defaults>
</compile_context>

<pallas_src>
import functools
import math

import jax
import jax.numpy as jnp
from jax.experimental import pallas as pl
from jax.experimental.pallas import tpu as pltpu


# ----------------------------------------------------------------------------
# Tiling helpers / shared compiler params
# ----------------------------------------------------------------------------

def _tile_rows(m, pref=256):
    """Row (sublane) tile: full dim if small, else a multiple-of-8 divisor <= pref."""
    if m <= pref:
        return m
    t = pref - pref % 8
    while t >= 8:
        if m % t == 0:
            return t
        t -= 8
    return m


def _tile_cols(n, pref=512):
    """Lane tile: full dim unless n is a large multiple of 128 (then tile by 128s)."""
    if n <= pref or n % 128 != 0:
        return n
    t = pref - pref % 128
    while t >= 128:
        if n % t == 0:
            return t
        t -= 128
    return n


def _act(y, act):
    if act == "gelu":
        return jax.nn.gelu(y, approximate=True)     # FNet gelu_new (tanh approx)
    if act == "relu":
        return jnp.maximum(y, 0.0)
    return y


_PAR1 = pltpu.CompilerParams(dimension_semantics=("parallel",))
_PAR2 = pltpu.CompilerParams(dimension_semantics=("parallel", "parallel"))


# ----------------------------------------------------------------------------
# Pallas kernels
# ----------------------------------------------------------------------------

def _linear_kernel(x_ref, w_ref, b_ref, o_ref, *, act):
    y = jnp.dot(x_ref[...].astype(jnp.bfloat16), w_ref[...],
                preferred_element_type=jnp.float32) + b_ref[...]
    o_ref[...] = _act(y, act)


def linear(x2d, w_bf16, b, act="none"):
    """x2d: (M, K) f32, w: (K, N) bf16, b: (N,) f32 -> (M, N) f32, tiled over (M, N)."""
    M, K = x2d.shape
    N = w_bf16.shape[1]
    tm, tn = _tile_rows(M), _tile_cols(N)
    return pl.pallas_call(
        functools.partial(_linear_kernel, act=act),
        out_shape=jax.ShapeDtypeStruct((M, N), jnp.float32),
        grid=(M // tm, N // tn),
        in_specs=[pl.BlockSpec((tm, K), lambda i, j: (i, 0)),
                  pl.BlockSpec((K, tn), lambda i, j: (0, j)),
                  pl.BlockSpec((1, tn), lambda i, j: (0, j))],
        out_specs=pl.BlockSpec((tm, tn), lambda i, j: (i, j)),
        compiler_params=_PAR2,
    )(x2d, w_bf16, b.reshape(1, N))


def _ln_linear_kernel(x_ref, g_ref, be_ref, w_ref, b_ref, o_ref, *, eps):
    x = x_ref[...]
    mu = jnp.mean(x, axis=-1, keepdims=True)
    var = jnp.mean(jnp.square(x - mu), axis=-1, keepdims=True)
    xn = (x - mu) * jax.lax.rsqrt(var + eps) * g_ref[...] + be_ref[...]
    o_ref[...] = jnp.dot(xn.astype(jnp.bfloat16), w_ref[...],
                         preferred_element_type=jnp.float32) + b_ref[...]


def ln_linear(x2d, gamma, beta, w_bf16, b, eps):
    """Fused LayerNorm(x) @ W + b (FNet embeddings LN + projection)."""
    M, K = x2d.shape
    N = w_bf16.shape[1]
    tm, tn = _tile_rows(M), _tile_cols(N)
    return pl.pallas_call(
        functools.partial(_ln_linear_kernel, eps=eps),
        out_shape=jax.ShapeDtypeStruct((M, N), jnp.float32),
        grid=(M // tm, N // tn),
        in_specs=[pl.BlockSpec((tm, K), lambda i, j: (i, 0)),
                  pl.BlockSpec((1, K), lambda i, j: (0, 0)),
                  pl.BlockSpec((1, K), lambda i, j: (0, 0)),
                  pl.BlockSpec((K, tn), lambda i, j: (0, j)),
                  pl.BlockSpec((1, tn), lambda i, j: (0, j))],
        out_specs=pl.BlockSpec((tm, tn), lambda i, j: (i, j)),
        compiler_params=_PAR2,
    )(x2d, gamma.reshape(1, K), beta.reshape(1, K), w_bf16, b.reshape(1, N))


def _linear_res_ln_kernel(x_ref, w_ref, b_ref, r_ref, g_ref, be_ref, o_ref, *, eps):
    y = jnp.dot(x_ref[...].astype(jnp.bfloat16), w_ref[...],
                preferred_element_type=jnp.float32) + b_ref[...] + r_ref[...]
    mu = jnp.mean(y, axis=-1, keepdims=True)
    var = jnp.mean(jnp.square(y - mu), axis=-1, keepdims=True)
    o_ref[...] = (y - mu) * jax.lax.rsqrt(var + eps) * g_ref[...] + be_ref[...]


def linear_res_ln(x2d, w_bf16, b, res2d, gamma, beta, eps):
    """Fused LayerNorm(res + x @ W + b), tiled over M (LN needs full N)."""
    M, K = x2d.shape
    N = w_bf16.shape[1]
    tm = _tile_rows(M)
    return pl.pallas_call(
        functools.partial(_linear_res_ln_kernel, eps=eps),
        out_shape=jax.ShapeDtypeStruct((M, N), jnp.float32),
        grid=(M // tm,),
        in_specs=[pl.BlockSpec((tm, K), lambda i: (i, 0)),
                  pl.BlockSpec((K, N), lambda i: (0, 0)),
                  pl.BlockSpec((1, N), lambda i: (0, 0)),
                  pl.BlockSpec((tm, N), lambda i: (i, 0)),
                  pl.BlockSpec((1, N), lambda i: (0, 0)),
                  pl.BlockSpec((1, N), lambda i: (0, 0))],
        out_specs=pl.BlockSpec((tm, N), lambda i: (i, 0)),
        compiler_params=_PAR1,
    )(x2d, w_bf16, b.reshape(1, N), res2d, gamma.reshape(1, N), beta.reshape(1, N))


def _ffn_res_ln_kernel(h_ref, w1_ref, b1_ref, w2_ref, b2_ref, g_ref, be_ref, o_ref,
                       *, act, eps):
    h = h_ref[...]
    t = jnp.dot(h.astype(jnp.bfloat16), w1_ref[...],
                preferred_element_type=jnp.float32) + b1_ref[...]
    t = _act(t, act)
    y = jnp.dot(t.astype(jnp.bfloat16), w2_ref[...],
                preferred_element_type=jnp.float32) + b2_ref[...] + h
    mu = jnp.mean(y, axis=-1, keepdims=True)
    var = jnp.mean(jnp.square(y - mu), axis=-1, keepdims=True)
    o_ref[...] = (y - mu) * jax.lax.rsqrt(var + eps) * g_ref[...] + be_ref[...]


def ffn_res_ln(h2d, w1, b1, w2, b2, gamma, beta, act, eps):
    """Fused LayerNorm(h + act(h @ W1 + b1) @ W2 + b2), tiled over M."""
    M, D = h2d.shape
    F = w1.shape[1]
    tm = _tile_rows(M)
    return pl.pallas_call(
        functools.partial(_ffn_res_ln_kernel, act=act, eps=eps),
        out_shape=jax.ShapeDtypeStruct((M, D), jnp.float32),
        grid=(M // tm,),
        in_specs=[pl.BlockSpec((tm, D), lambda i: (i, 0)),
                  pl.BlockSpec((D, F), lambda i: (0, 0)),
                  pl.BlockSpec((1, F), lambda i: (0, 0)),
                  pl.BlockSpec((F, D), lambda i: (0, 0)),
                  pl.BlockSpec((1, D), lambda i: (0, 0)),
                  pl.BlockSpec((1, D), lambda i: (0, 0)),
                  pl.BlockSpec((1, D), lambda i: (0, 0))],
        out_specs=pl.BlockSpec((tm, D), lambda i: (i, 0)),
        compiler_params=_PAR1,
    )(h2d, w1, b1.reshape(1, F), w2, b2.reshape(1, D),
      gamma.reshape(1, D), beta.reshape(1, D))


def _fourier_res_ln_kernel(x_ref, cd_ref, sd_ref, cs_ref, ss_ref, g_ref, be_ref,
                           o_ref, *, eps):
    # real(FFT_seq(FFT_hidden(x))) = Cs @ (x @ Cd) - Ss @ (x @ Sd), then +x, then LN.
    x = x_ref[0]
    xb = x.astype(jnp.bfloat16)
    a = jnp.dot(xb, cd_ref[...], preferred_element_type=jnp.float32)
    b = jnp.dot(xb, sd_ref[...], preferred_element_type=jnp.float32)
    mixed = (jnp.dot(cs_ref[...], a.astype(jnp.bfloat16),
                     preferred_element_type=jnp.float32)
             - jnp.dot(ss_ref[...], b.astype(jnp.bfloat16),
                       preferred_element_type=jnp.float32))
    y = mixed + x
    mu = jnp.mean(y, axis=-1, keepdims=True)
    var = jnp.mean(jnp.square(y - mu), axis=-1, keepdims=True)
    o_ref[0] = (y - mu) * jax.lax.rsqrt(var + eps) * g_ref[...] + be_ref[...]


def fourier_res_ln(x, dft, gamma, beta, eps):
    """Fused FNet Fourier mixing + residual + LayerNorm. x: (B, S, D)."""
    B, S, D = x.shape
    cd, sd, cs, ss = dft
    return pl.pallas_call(
        functools.partial(_fourier_res_ln_kernel, eps=eps),
        out_shape=jax.ShapeDtypeStruct((B, S, D), jnp.float32),
        grid=(B,),
        in_specs=[pl.BlockSpec((1, S, D), lambda b: (b, 0, 0)),
                  pl.BlockSpec((D, D), lambda b: (0, 0)),
                  pl.BlockSpec((D, D), lambda b: (0, 0)),
                  pl.BlockSpec((S, S), lambda b: (0, 0)),
                  pl.BlockSpec((S, S), lambda b: (0, 0)),
                  pl.BlockSpec((1, D), lambda b: (0, 0)),
                  pl.BlockSpec((1, D), lambda b: (0, 0))],
        out_specs=pl.BlockSpec((1, S, D), lambda b: (b, 0, 0)),
        compiler_params=_PAR1,
    )(x, cd, sd, cs, ss, gamma.reshape(1, D), beta.reshape(1, D))


def make_dft_matrices(S, D):
    """DFT cos/sin matrices (bf16 for the MXU); built once per forward and shared."""
    nd = jnp.arange(D, dtype=jnp.float32)
    ns = jnp.arange(S, dtype=jnp.float32)
    ang_d = 2.0 * math.pi * jnp.outer(nd, nd) / D
    ang_s = 2.0 * math.pi * jnp.outer(ns, ns) / S
    return (jnp.cos(ang_d).astype(jnp.bfloat16), jnp.sin(ang_d).astype(jnp.bfloat16),
            jnp.cos(ang_s).astype(jnp.bfloat16), jnp.sin(ang_s).astype(jnp.bfloat16))


def _attn_kernel(q_ref, k_ref, v_ref, o_ref, *, scale, causal):
    # All heads of one batch element in a single invocation (batched MXU einsum).
    # Scale folded into q (Sq*Dh mults, not Sq*Sk); causal mask built in-kernel
    # from a 2-D iota — no mask array DMA'd from HBM.
    q = (q_ref[0] * scale).astype(jnp.bfloat16)      # (H, Sq, Dh)
    k = k_ref[0].astype(jnp.bfloat16)                # (H, Sk, Dh)
    v = v_ref[0].astype(jnp.bfloat16)                # (H, Sk, Dh)
    s = jnp.einsum("hqd,hkd->hqk", q, k, preferred_element_type=jnp.float32)
    if causal:
        Sq, Sk = s.shape[1], s.shape[2]
        row = jax.lax.broadcasted_iota(jnp.int32, (Sq, Sk), 0)
        col = jax.lax.broadcasted_iota(jnp.int32, (Sq, Sk), 1)
        s = jnp.where((col > row)[None, :, :], -1e9, s)
    s = s - jnp.max(s, axis=-1, keepdims=True)
    p = jnp.exp(s)
    p = p * pl.reciprocal(jnp.sum(p, axis=-1, keepdims=True), approx=True)
    o_ref[0] = jnp.einsum("hqk,hkd->hqd", p.astype(jnp.bfloat16), v,
                          preferred_element_type=jnp.float32)


def mha_core(q, k, v, scale, causal):
    """q: (B, H, Sq, Dh), k/v: (B, H, Sk, Dh) -> (B, H, Sq, Dh)."""
    B, H, Sq, Dh = q.shape
    Sk = k.shape[2]
    return pl.pallas_call(
        functools.partial(_attn_kernel, scale=scale, causal=causal),
        out_shape=jax.ShapeDtypeStruct((B, H, Sq, Dh), jnp.float32),
        grid=(B,),
        in_specs=[pl.BlockSpec((1, H, Sq, Dh), lambda b: (b, 0, 0, 0)),
                  pl.BlockSpec((1, H, Sk, Dh), lambda b: (b, 0, 0, 0)),
                  pl.BlockSpec((1, H, Sk, Dh), lambda b: (b, 0, 0, 0))],
        out_specs=pl.BlockSpec((1, H, Sq, Dh), lambda b: (b, 0, 0, 0)),
        compiler_params=_PAR1,
    )(q, k, v)


# ----------------------------------------------------------------------------
# Model pieces (JAX glue around the Pallas kernels)
# ----------------------------------------------------------------------------

def _im2col(x, k):
    """x: (B, S, Din) -> (B*S, k*Din), 'same' padding, stride 1 (im2col for Conv1d)."""
    B, S, Din = x.shape
    pad_l = (k - 1) // 2
    pad_r = k - 1 - pad_l
    xp = jnp.pad(x, ((0, 0), (pad_l, pad_r), (0, 0)))
    cols = jnp.concatenate([xp[:, j:j + S, :] for j in range(k)], axis=-1)
    return cols.reshape(B * S, k * Din)


def fnet_embeddings(p, tokens):
    B, S = tokens.shape
    D = p["word_emb"].shape[1]
    we = jnp.take(p["word_emb"], tokens, axis=0)             # gather: plain JAX glue
    pe = p["pos_emb"][:S][None, :, :]
    te = p["type_emb"][0][None, None, :]                     # token_type_ids == 0
    x = (we + pe + te).reshape(B * S, D)
    x = ln_linear(x, p["ln_g"], p["ln_b"], p["proj_w"], p["proj_b"], eps=1e-12)
    return x.reshape(B, S, D)


def fnet_encoder_layer(p, x, dft):
    B, S, D = x.shape
    h = fourier_res_ln(x, dft, p["ln1_g"], p["ln1_b"], 1e-12).reshape(B * S, D)
    y = ffn_res_ln(h, p["w_in"], p["b_in"], p["w_out"], p["b_out"],
                   p["ln2_g"], p["ln2_b"], act="gelu", eps=1e-12)
    return y.reshape(B, S, D)


def fnet_cnn_encoder_layer(p, x, dft, cnn_k):
    # TODO(synk): FnetCNNEncoderLayer source not provided; assumed FNet-style Fourier
    # mixing + residual LayerNorm followed by Conv1d(d->extend)+GELU+Conv1d(extend->d)
    # ("same" padding, stride 1) with a residual LayerNorm.
    B, S, D = x.shape
    h = fourier_res_ln(x, dft, p["ln1_g"], p["ln1_b"], 1e-12)              # (B, S, D)
    c = linear(_im2col(h, cnn_k), p["conv1_w"], p["conv1_b"], act="gelu")  # (B*S, F)
    F = c.shape[1]
    cols2 = _im2col(c.reshape(B, S, F), cnn_k)                             # (B*S, k*F)
    y2d = linear_res_ln(cols2, p["conv2_w"], p["conv2_b"],
                        h.reshape(B * S, D), p["ln2_g"], p["ln2_b"], 1e-12)
    return y2d.reshape(B, S, D)


def self_attention_block(p, y2d, B, S, n_heads, ln_g, ln_b, eps):
    D = y2d.shape[1]
    dh = D // n_heads
    qkv = linear(y2d, p["wqkv"], p["bqkv"])                                # (B*S, 3D)
    qkv = qkv.reshape(B, S, 3, n_heads, dh).transpose(2, 0, 3, 1, 4)
    q, k, v = qkv[0], qkv[1], qkv[2]                                       # (B, H, S, dh)
    o = mha_core(q, k, v, 1.0 / math.sqrt(dh), causal=True)
    o2d = o.transpose(0, 2, 1, 3).reshape(B * S, D)
    return linear_res_ln(o2d, p["wo"], p["bo"], y2d, ln_g, ln_b, eps)


def cross_attention_block(p, y2d, mem2d, B, Sq, Sk, n_heads, ln_g, ln_b, eps):
    D = y2d.shape[1]
    dh = D // n_heads
    q = linear(y2d, p["wq"], p["bq"]).reshape(B, Sq, n_heads, dh).transpose(0, 2, 1, 3)
    kv = linear(mem2d, p["wkv"], p["bkv"]).reshape(B, Sk, 2, n_heads, dh)
    kv = kv.transpose(2, 0, 3, 1, 4)
    k, v = kv[0], kv[1]                                                    # (B, H, Sk, dh)
    o = mha_core(q, k, v, 1.0 / math.sqrt(dh), causal=False)
    o2d = o.transpose(0, 2, 1, 3).reshape(B * Sq, D)
    return linear_res_ln(o2d, p["wo"], p["bo"], y2d, ln_g, ln_b, eps)


def transformer_decoder_layer(p, y, mem, n_heads):
    # PyTorch TransformerDecoderLayer, batch_first=True, norm_first=False, relu FFN.
    B, S, D = y.shape
    Sk = mem.shape[1]
    y2d = y.reshape(B * S, D)
    mem2d = mem.reshape(B * Sk, D)
    y2d = self_attention_block(p["self"], y2d, B, S, n_heads,
                               p["ln1_g"], p["ln1_b"], 1e-5)
    y2d = cross_attention_block(p["cross"], y2d, mem2d, B, S, Sk, n_heads,
                                p["ln2_g"], p["ln2_b"], 1e-5)
    y2d = ffn_res_ln(y2d, p["w1"], p["b1"], p["w2"], p["b2"],
                     p["ln3_g"], p["ln3_b"], act="relu", eps=1e-5)
    return y2d.reshape(B, S, D)


def forward(params, doc_tokens, sum_tokens, *, n_heads, cnn_k):
    D = params["emb"]["word_emb"].shape[1]
    S_doc = doc_tokens.shape[-1]
    dft_doc = make_dft_matrices(S_doc, D)     # hoisted: built once, shared by all layers

    # x = embedding(doc); x = pretrained_encoder(x); x = compress_encoder(x)
    x = fnet_embeddings(params["emb"], doc_tokens)
    for lp in params["pre_enc"]:
        x = fnet_encoder_layer(lp, x, dft_doc)
    for lp in params["comp_enc"]:
        x = fnet_cnn_encoder_layer(lp, x, dft_doc, cnn_k)

    # y = embedding(sum); y = decoder(y, x, causal_mask); return final(y)
    y = fnet_embeddings(params["emb"], sum_tokens)
    for lp in params["dec"]:
        y = transformer_decoder_layer(lp, y, x, n_heads)

    B, Ss, _ = y.shape
    logits = linear(y.reshape(B * Ss, D), params["final_w"], params["final_b"])
    return logits.reshape(B, Ss, -1)


# ----------------------------------------------------------------------------
# Deterministic parameter initialization (synthetic, no checkpoint loading).
# Matmul weights are stored bf16 (MXU operands); embeddings, biases, LN in f32.
# ----------------------------------------------------------------------------

def init_params(key, *, vocab, d_model, ffn, max_pos, type_vocab,
                n_pre, n_comp, n_dec, cnn_k):
    keys = iter(jax.random.split(key, 1024))

    def nrm(shape, s=0.02, dtype=jnp.bfloat16):
        return (s * jax.random.normal(next(keys), shape, jnp.float32)).astype(dtype)

    def zeros(shape):
        return jnp.zeros(shape, jnp.float32)

    def ln(d):
        return jnp.ones((d,), jnp.float32), jnp.zeros((d,), jnp.float32)

    emb = {
        "word_emb": nrm((vocab, d_model), dtype=jnp.float32),
        "pos_emb": nrm((max_pos, d_model), dtype=jnp.float32),
        "type_emb": nrm((type_vocab, d_model), dtype=jnp.float32),
        "proj_w": nrm((d_model, d_model)),
        "proj_b": zeros((d_model,)),
    }
    emb["ln_g"], emb["ln_b"] = ln(d_model)

    def fnet_layer_params():
        p = {"w_in": nrm((d_model, ffn)), "b_in": zeros((ffn,)),
             "w_out": nrm((ffn, d_model)), "b_out": zeros((d_model,))}
        p["ln1_g"], p["ln1_b"] = ln(d_model)
        p["ln2_g"], p["ln2_b"] = ln(d_model)
        return p

    def cnn_layer_params():
        p = {"conv1_w": nrm((cnn_k * d_model, ffn)), "conv1_b": zeros((ffn,)),
             "conv2_w": nrm((cnn_k * ffn, d_model)), "conv2_b": zeros((d_model,))}
        p["ln1_g"], p["ln1_b"] = ln(d_model)
        p["ln2_g"], p["ln2_b"] = ln(d_model)
        return p

    def self_attn_params():
        return {"wqkv": nrm((d_model, 3 * d_model)), "bqkv": zeros((3 * d_model,)),
                "wo": nrm((d_model, d_model)), "bo": zeros((d_model,))}

    def cross_attn_params():
        return {"wq": nrm((d_model, d_model)), "bq": zeros((d_model,)),
                "wkv": nrm((d_model, 2 * d_model)), "bkv": zeros((2 * d_model,)),
                "wo": nrm((d_model, d_model)), "bo": zeros((d_model,))}

    def dec_layer_params():
        p = {"self": self_attn_params(), "cross": cross_attn_params(),
             "w1": nrm((d_model, ffn)), "b1": zeros((ffn,)),
             "w2": nrm((ffn, d_model)), "b2": zeros((d_model,))}
        p["ln1_g"], p["ln1_b"] = ln(d_model)
        p["ln2_g"], p["ln2_b"] = ln(d_model)
        p["ln3_g"], p["ln3_b"] = ln(d_model)
        return p

    return {
        "emb": emb,
        "pre_enc": [fnet_layer_params() for _ in range(n_pre)],
        "comp_enc": [cnn_layer_params() for _ in range(n_comp)],
        "dec": [dec_layer_params() for _ in range(n_dec)],
        "final_w": nrm((d_model, vocab)),
        "final_b": zeros((vocab,)),
    }


# ----------------------------------------------------------------------------

if __name__ == "__main__":
    VOCAB = 100
    D_MODEL = 32
    FFN = 64
    MAX_POS = 64
    TYPE_VOCAB = 4
    N_PRE = 2          # small stand-in for the 12 frozen pretrained FNet layers
    N_COMP = 1         # num_encoder_layers (compress encoder)
    N_DEC = 1          # num_decoder_layers
    N_HEADS = 4
    CNN_K = 3
    B, S_DOC, S_SUM = 2, 16, 8

    key = jax.random.PRNGKey(0)
    k_par, k_doc, k_sum = jax.random.split(key, 3)

    params = init_params(k_par, vocab=VOCAB, d_model=D_MODEL, ffn=FFN,
                         max_pos=MAX_POS, type_vocab=TYPE_VOCAB,
                         n_pre=N_PRE, n_comp=N_COMP, n_dec=N_DEC, cnn_k=CNN_K)

    doc_tokens = jax.random.randint(k_doc, (B, S_DOC), 0, VOCAB, dtype=jnp.int32)
    sum_tokens = jax.random.randint(k_sum, (B, S_SUM), 0, VOCAB, dtype=jnp.int32)

    fwd = jax.jit(functools.partial(forward, n_heads=N_HEADS, cnn_k=CNN_K))
    logits = fwd(params, doc_tokens, sum_tokens)
    logits = jax.block_until_ready(logits)

    assert logits.shape == (B, S_SUM, VOCAB), logits.shape
    assert bool(jnp.all(jnp.isfinite(logits)))
    print("KERNEL_OK")
</pallas_src>

<mosaic_0001>
module attributes {stable_mosaic.version = 11 : i64} {
  func.func @_linear_kernel(%arg0: i32, %arg1: i32, %arg2: memref<16x32xf32, #tpu.memory_space<vmem>>, %arg3: memref<32x96xbf16, #tpu.memory_space<vmem>>, %arg4: memref<1x96xf32, #tpu.memory_space<vmem>>, %arg5: memref<16x96xf32, #tpu.memory_space<vmem>>) attributes {dimension_semantics = [#tpu.dimension_semantics<parallel>, #tpu.dimension_semantics<parallel>], iteration_bounds = array<i64: 1, 1>, scalar_prefetch = 0 : i64, scratch_operands = 0 : i64, tpu.core_type = #tpu.core_type<tc>, window_params = [{transform_indices = @transform_0, window_bounds = array<i64: 16, 32>}, {transform_indices = @transform_1, window_bounds = array<i64: 32, 96>}, {transform_indices = @transform_2, window_bounds = array<i64: 1, 96>}, {transform_indices = @transform_3, window_bounds = array<i64: 16, 96>}]} {
    %c0 = arith.constant 0 : index
    %c0_0 = arith.constant 0 : index
    %0 = vector.load %arg2[%c0, %c0_0] : memref<16x32xf32, #tpu.memory_space<vmem>>, vector<16x32xf32>
    %1 = arith.truncf %0 : vector<16x32xf32> to vector<16x32xbf16>
    %c0_1 = arith.constant 0 : index
    %c0_2 = arith.constant 0 : index
    %2 = vector.load %arg3[%c0_1, %c0_2] : memref<32x96xbf16, #tpu.memory_space<vmem>>, vector<32x96xbf16>
    %cst = arith.constant dense<0.000000e+00> : vector<16x96xf32>
    %3 = tpu.matmul %1, %2, %cst {dimension_numbers = #tpu.dot_dimension_numbers<[1], [0], [0], [1], [0, 0, 1, 1], [], []>} : vector<16x32xbf16>, vector<32x96xbf16>, vector<16x96xf32> -> vector<16x96xf32>
    %c0_3 = arith.constant 0 : index
    %c0_4 = arith.constant 0 : index
    %4 = vector.load %arg4[%c0_3, %c0_4] : memref<1x96xf32, #tpu.memory_space<vmem>>, vector<1x96xf32>
    %5 = vector.broadcast %4 : vector<1x96xf32> to vector<16x96xf32>
    %6 = arith.addf %3, %5 : vector<16x96xf32>
    %c0_5 = arith.constant 0 : index
    %c0_6 = arith.constant 0 : index
    %7 = vector.load %arg5[%c0_5, %c0_6] : memref<16x96xf32, #tpu.memory_space<vmem>>, vector<16x96xf32>
    tpu.vector_store %arg5[%c0_5, %c0_6], %6 {strides = array<i32>} : memref<16x96xf32, #tpu.memory_space<vmem>>, vector<16x96xf32>,
    return
  }
  func.func @transform_0(%arg0: i32, %arg1: i32) -> (i32, i32) {
    %c0_i32 = arith.constant 0 : i32
    %c0_i32_0 = arith.constant 0 : i32
    return %arg0, %c0_i32 : i32, i32
  }
  func.func @transform_1(%arg0: i32, %arg1: i32) -> (i32, i32) {
    %c0_i32 = arith.constant 0 : i32
    %c0_i32_0 = arith.constant 0 : i32
    return %c0_i32, %arg1 : i32, i32
  }
  func.func @transform_2(%arg0: i32, %arg1: i32) -> (i32, i32) {
    %c0_i32 = arith.constant 0 : i32
    %c0_i32_0 = arith.constant 0 : i32
    return %c0_i32, %arg1 : i32, i32
  }
  func.func @transform_3(%arg0: i32, %arg1: i32) -> (i32, i32) {
    %c0_i32 = arith.constant 0 : i32
    return %arg0, %arg1 : i32, i32
  }
}

module attributes {stable_mosaic.version = 11 : i64} {
  func.func @_ln_linear_kernel(%arg0: i32, %arg1: i32, %arg2: memref<16x32xf32, #tpu.memory_space<vmem>>, %arg3: memref<1x32xf32, #tpu.memory_space<vmem>>, %arg4: memref<1x32xf32, #tpu.memory_space<vmem>>, %arg5: memref<32x32xbf16, #tpu.memory_space<vmem>>, %arg6: memref<1x32xf32, #tpu.memory_space<vmem>>, %arg7: memref<16x32xf32, #tpu.memory_space<vmem>>) attributes {dimension_semantics = [#tpu.dimension_semantics<parallel>, #tpu.dimension_semantics<parallel>], iteration_bounds = array<i64: 1, 1>, scalar_prefetch = 0 : i64, scratch_operands = 0 : i64, tpu.core_type = #tpu.core_type<tc>, window_params = [{transform_indices = @transform_0, window_bounds = array<i64: 16, 32>}, {pipeline_mode = #tpu.pipeline_mode<synchronous>, transform_indices = @transform_1, window_bounds = array<i64: 1, 32>}, {pipeline_mode = #tpu.pipeline_mode<synchronous>, transform_indices = @transform_2, window_bounds = array<i64: 1, 32>}, {transform_indices = @transform_3, window_bounds = array<i64: 32, 32>}, {transform_indices = @transform_4, window_bounds = array<i64: 1, 32>}, {transform_indices = @transform_5, window_bounds = array<i64: 16, 32>}]} {
    %c0 = arith.constant 0 : index
    %c0_0 = arith.constant 0 : index
    %0 = vector.load %arg2[%c0, %c0_0] : memref<16x32xf32, #tpu.memory_space<vmem>>, vector<16x32xf32>
    %cst = arith.constant dense<0.000000e+00> : vector<16xf32>
    %1 = vector.multi_reduction <add>, %0, %cst [1] : vector<16x32xf32> to vector<16xf32>
    %2 = vector.shape_cast %1 : vector<16xf32> to vector<16x1xf32>
    %cst_1 = arith.constant 3.200000e+01 : f32
    %3 = vector.broadcast %cst_1 : f32 to vector<16x1xf32>
    %4 = arith.divf %2, %3 : vector<16x1xf32>
    %5 = vector.broadcast %4 : vector<16x1xf32> to vector<16x32xf32>
    %6 = arith.subf %0, %5 : vector<16x32xf32>
    %7 = arith.mulf %6, %6 : vector<16x32xf32>
    %cst_2 = arith.constant dense<0.000000e+00> : vector<16xf32>
    %8 = vector.multi_reduction <add>, %7, %cst_2 [1] : vector<16x32xf32> to vector<16xf32>
    %9 = vector.shape_cast %8 : vector<16xf32> to vector<16x1xf32>
    %cst_3 = arith.constant 3.200000e+01 : f32
    %10 = vector.broadcast %cst_3 : f32 to vector<16x1xf32>
    %11 = arith.divf %9, %10 : vector<16x1xf32>
    %12 = vector.broadcast %4 : vector<16x1xf32> to vector<16x32xf32>
    %13 = arith.subf %0, %12 : vector<16x32xf32>
    %cst_4 = arith.constant 9.99999996E-13 : f32
    %14 = vector.broadcast %cst_4 : f32 to vector<16x1xf32>
    %15 = arith.addf %11, %14 : vector<16x1xf32>
    %16 = math.rsqrt %15 : vector<16x1xf32>
    %17 = vector.broadcast %16 : vector<16x1xf32> to vector<16x32xf32>
    %18 = arith.mulf %13, %17 : vector<16x32xf32>
    %c0_5 = arith.constant 0 : index
    %c0_6 = arith.constant 0 : index
    %19 = vector.load %arg3[%c0_5, %c0_6] : memref<1x32xf32, #tpu.memory_space<vmem>>, vector<1x32xf32>
    %20 = vector.broadcast %19 : vector<1x32xf32> to vector<16x32xf32>
    %21 = arith.mulf %18, %20 : vector<16x32xf32>
    %c0_7 = arith.constant 0 : index
    %c0_8 = arith.constant 0 : index
    %22 = vector.load %arg4[%c0_7, %c0_8] : memref<1x32xf32, #tpu.memory_space<vmem>>, vector<1x32xf32>
    %23 = vector.broadcast %22 : vector<1x32xf32> to vector<16x32xf32>
    %24 = arith.addf %21, %23 : vector<16x32xf32>
    %25 = arith.truncf %24 : vector<16x32xf32> to vector<16x32xbf16>
    %c0_9 = arith.constant 0 : index
    %c0_10 = arith.constant 0 : index
    %26 = vector.load %arg5[%c0_9, %c0_10] : memref<32x32xbf16, #tpu.memory_space<vmem>>, vector<32x32xbf16>
    %cst_11 = arith.constant dense<0.000000e+00> : vector<16x32xf32>
    %27 = tpu.matmul %25, %26, %cst_11 {dimension_numbers = #tpu.dot_dimension_numbers<[1], [0], [0], [1], [0, 0, 1, 1], [], []>} : vector<16x32xbf16>, vector<32x32xbf16>, vector<16x32xf32> -> vector<16x32xf32>
    %c0_12 = arith.constant 0 : index
    %c0_13 = arith.constant 0 : index
    %28 = vector.load %arg6[%c0_12, %c0_13] : memref<1x32xf32, #tpu.memory_space<vmem>>, vector<1x32xf32>
    %29 = vector.broadcast %28 : vector<1x32xf32> to vector<16x32xf32>
    %30 = arith.addf %27, %29 : vector<16x32xf32>
    %c0_14 = arith.constant 0 : index
    %c0_15 = arith.constant 0 : index
    %31 = vector.load %arg7[%c0_14, %c0_15] : memref<16x32xf32, #tpu.memory_space<vmem>>, vector<16x32xf32>
    tpu.vector_store %arg7[%c0_14, %c0_15], %30 {strides = array<i32>} : memref<16x32xf32, #tpu.memory_space<vmem>>, vector<16x32xf32>,
    return
  }
  func.func @transform_0(%arg0: i32, %arg1: i32) -> (i32, i32) {
    %c0_i32 = arith.constant 0 : i32
    %c0_i32_0 = arith.constant 0 : i32
    return %arg0, %c0_i32 : i32, i32
  }
  func.func @transform_1(%arg0: i32, %arg1: i32) -> (i32, i32) {
    %c0_i32 = arith.constant 0 : i32
    %c0_i32_0 = arith.constant 0 : i32
    %c0_i32_1 = arith.constant 0 : i32
    return %c0_i32, %c0_i32_0 : i32, i32
  }
  func.func @transform_2(%arg0: i32, %arg1: i32) -> (i32, i32) {
    %c0_i32 = arith.constant 0 : i32
    %c0_i32_0 = arith.constant 0 : i32
    %c0_i32_1 = arith.constant 0 : i32
    return %c0_i32, %c0_i32_0 : i32, i32
  }
  func.func @transform_3(%arg0: i32, %arg1: i32) -> (i32, i32) {
    %c0_i32 = arith.constant 0 : i32
    %c0_i32_0 = arith.constant 0 : i32
    return %c0_i32, %arg1 : i32, i32
  }
  func.func @transform_4(%arg0: i32, %arg1: i32) -> (i32, i32) {
    %c0_i32 = arith.constant 0 : i32
    %c0_i32_0 = arith.constant 0 : i32
    return %c0_i32, %arg1 : i32, i32
  }
  func.func @transform_5(%arg0: i32, %arg1: i32) -> (i32, i32) {
    %c0_i32 = arith.constant 0 : i32
    return %arg0, %arg1 : i32, i32
  }
}

module attributes {stable_mosaic.version = 11 : i64} {
  func.func @_attn_kernel(%arg0: i32, %arg1: memref<1x4x8x8xf32, #tpu.memory_space<vmem>>, %arg2: memref<1x4x8x8xf32, #tpu.memory_space<vmem>>, %arg3: memref<1x4x8x8xf32, #tpu.memory_space<vmem>>, %arg4: memref<1x4x8x8xf32, #tpu.memory_space<vmem>>) attributes {dimension_semantics = [#tpu.dimension_semantics<parallel>], iteration_bounds = array<i64: 2>, scalar_prefetch = 0 : i64, scratch_operands = 0 : i64, tpu.core_type = #tpu.core_type<tc>, window_params = [{transform_indices = @transform_0, window_bounds = array<i64: 1, 4, 8, 8>}, {transform_indices = @transform_1, window_bounds = array<i64: 1, 4, 8, 8>}, {transform_indices = @transform_2, window_bounds = array<i64: 1, 4, 8, 8>}, {transform_indices = @transform_3, window_bounds = array<i64: 1, 4, 8, 8>}]} {
    %c0 = arith.constant 0 : index
    %c0_0 = arith.constant 0 : index
    %c0_1 = arith.constant 0 : index
    %c0_2 = arith.constant 0 : index
    %0 = vector.load %arg1[%c0, %c0_0, %c0_1, %c0_2] : memref<1x4x8x8xf32, #tpu.memory_space<vmem>>, vector<1x4x8x8xf32>
    %1 = vector.shape_cast %0 : vector<1x4x8x8xf32> to vector<4x8x8xf32>
    %cst = arith.constant 0.353553385 : f32
    %2 = vector.broadcast %cst : f32 to vector<4x8x8xf32>
    %3 = arith.mulf %1, %2 : vector<4x8x8xf32>
    %4 = arith.truncf %3 : vector<4x8x8xf32> to vector<4x8x8xbf16>
    %c0_3 = arith.constant 0 : index
    %c0_4 = arith.constant 0 : index
    %c0_5 = arith.constant 0 : index
    %c0_6 = arith.constant 0 : index
    %5 = vector.load %arg2[%c0_3, %c0_4, %c0_5, %c0_6] : memref<1x4x8x8xf32, #tpu.memory_space<vmem>>, vector<1x4x8x8xf32>
    %6 = vector.shape_cast %5 : vector<1x4x8x8xf32> to vector<4x8x8xf32>
    %7 = arith.truncf %6 : vector<4x8x8xf32> to vector<4x8x8xbf16>
    %c0_7 = arith.constant 0 : index
    %c0_8 = arith.constant 0 : index
    %c0_9 = arith.constant 0 : index
    %c0_10 = arith.constant 0 : index
    %8 = vector.load %arg3[%c0_7, %c0_8, %c0_9, %c0_10] : memref<1x4x8x8xf32, #tpu.memory_space<vmem>>, vector<1x4x8x8xf32>
    %9 = vector.shape_cast %8 : vector<1x4x8x8xf32> to vector<4x8x8xf32>
    %10 = arith.truncf %9 : vector<4x8x8xf32> to vector<4x8x8xbf16>
    "tpu.trace_start"() <{level = 10 : i32, message = "hqd,hkd->hqk"}> : () -> ()
    %cst_11 = arith.constant dense<0.000000e+00> : vector<4x8x8xf32>
    %11 = tpu.matmul %4, %7, %cst_11 {dimension_numbers = #tpu.dot_dimension_numbers<[2], [2], [1], [1], [0, 0, 0, 1, 1, 1], [0], [0]>} : vector<4x8x8xbf16>, vector<4x8x8xbf16>, vector<4x8x8xf32> -> vector<4x8x8xf32>
    "tpu.trace_stop"() : () -> ()
    %12 = tpu.iota {dimensions = array<i32: 0>} : vector<8x8xi32>
    %13 = tpu.iota {dimensions = array<i32: 1>} : vector<8x8xi32>
    %14 = arith.cmpi sgt, %13, %12 : vector<8x8xi32>
    %15 = vector.shape_cast %14 : vector<8x8xi1> to vector<1x8x8xi1>
    %cst_12 = arith.constant -1.000000e+09 : f32
    %16 = vector.shape_cast %15 : vector<1x8x8xi1> to vector<1x8x8xi1>
    %17 = vector.broadcast %16 : vector<1x8x8xi1> to vector<4x8x8xi1>
    %18 = vector.broadcast %cst_12 : f32 to vector<4x8x8xf32>
    %19 = arith.select %17, %18, %11 : vector<4x8x8xi1>, vector<4x8x8xf32>
    %cst_13 = arith.constant dense<0xFF800000> : vector<4x8xf32>
    %20 = vector.multi_reduction <maximumf>, %19, %cst_13 [2] : vector<4x8x8xf32> to vector<4x8xf32>
    %21 = vector.shape_cast %20 : vector<4x8xf32> to vector<4x8x1xf32>
    %22 = vector.broadcast %21 : vector<4x8x1xf32> to vector<4x8x8xf32>
    %23 = arith.subf %19, %22 : vector<4x8x8xf32>
    %24 = math.exp %23 : vector<4x8x8xf32>
    %cst_14 = arith.constant dense<0.000000e+00> : vector<4x8xf32>
    %25 = vector.multi_reduction <add>, %24, %cst_14 [2] : vector<4x8x8xf32> to vector<4x8xf32>
    %26 = vector.shape_cast %25 : vector<4x8xf32> to vector<4x8x1xf32>
    %27 = tpu.reciprocal %26 {approx = true} : vector<4x8x1xf32> -> vector<4x8x1xf32>
    %28 = vector.broadcast %27 : vector<4x8x1xf32> to vector<4x8x8xf32>
    %29 = arith.mulf %24, %28 : vector<4x8x8xf32>
    %30 = arith.truncf %29 : vector<4x8x8xf32> to vector<4x8x8xbf16>
    "tpu.trace_start"() <{level = 10 : i32, message = "hqk,hkd->hqd"}> : () -> ()
    %cst_15 = arith.constant dense<0.000000e+00> : vector<4x8x8xf32>
    %31 = tpu.matmul %30, %10, %cst_15 {dimension_numbers = #tpu.dot_dimension_numbers<[2], [1], [1], [2], [0, 0, 0, 1, 1, 2], [0], [0]>} : vector<4x8x8xbf16>, vector<4x8x8xbf16>, vector<4x8x8xf32> -> vector<4x8x8xf32>
    "tpu.trace_stop"() : () -> ()
    %c0_16 = arith.constant 0 : index
    %c0_17 = arith.constant 0 : index
    %c0_18 = arith.constant 0 : index
    %c0_19 = arith.constant 0 : index
    %32 = vector.load %arg4[%c0_16, %c0_17, %c0_18, %c0_19] : memref<1x4x8x8xf32, #tpu.memory_space<vmem>>, vector<1x4x8x8xf32>
    %33 = vector.shape_cast %32 : vector<1x4x8x8xf32> to vector<4x8x8xf32>
    %34 = vector.shape_cast %31 : vector<4x8x8xf32> to vector<1x4x8x8xf32>
    tpu.vector_store %arg4[%c0_16, %c0_17, %c0_18, %c0_19], %34 {strides = array<i32>} : memref<1x4x8x8xf32, #tpu.memory_space<vmem>>, vector<1x4x8x8xf32>,
    return
  }
  func.func @transform_0(%arg0: i32) -> (i32, i32, i32, i32) {
    %c0_i32 = arith.constant 0 : i32
    %c0_i32_0 = arith.constant 0 : i32
    %c0_i32_1 = arith.constant 0 : i32
    %c0_i32_2 = arith.constant 0 : i32
    return %arg0, %c0_i32, %c0_i32_0, %c0_i32_1 : i32, i32, i32, i32
  }
  func.func @transform_1(%arg0: i32) -> (i32, i32, i32, i32) {
    %c0_i32 = arith.constant 0 : i32
    %c0_i32_0 = arith.constant 0 : i32
    %c0_i32_1 = arith.constant 0 : i32
    %c0_i32_2 = arith.constant 0 : i32
    return %arg0, %c0_i32, %c0_i32_0, %c0_i32_1 : i32, i32, i32, i32
  }
  func.func @transform_2(%arg0: i32) -> (i32, i32, i32, i32) {
    %c0_i32 = arith.constant 0 : i32
    %c0_i32_0 = arith.constant 0 : i32
    %c0_i32_1 = arith.constant 0 : i32
    %c0_i32_2 = arith.constant 0 : i32
    return %arg0, %c0_i32, %c0_i32_0, %c0_i32_1 : i32, i32, i32, i32
  }
  func.func @transform_3(%arg0: i32) -> (i32, i32, i32, i32) {
    %c0_i32 = arith.constant 0 : i32
    %c0_i32_0 = arith.constant 0 : i32
    %c0_i32_1 = arith.constant 0 : i32
    %c0_i32_2 = arith.constant 0 : i32
    return %arg0, %c0_i32, %c0_i32_0, %c0_i32_1 : i32, i32, i32, i32
  }
}

module attributes {stable_mosaic.version = 11 : i64} {
  func.func @_linear_res_ln_kernel(%arg0: i32, %arg1: memref<16x32xf32, #tpu.memory_space<vmem>>, %arg2: memref<32x32xbf16, #tpu.memory_space<vmem>>, %arg3: memref<1x32xf32, #tpu.memory_space<vmem>>, %arg4: memref<16x32xf32, #tpu.memory_space<vmem>>, %arg5: memref<1x32xf32, #tpu.memory_space<vmem>>, %arg6: memref<1x32xf32, #tpu.memory_space<vmem>>, %arg7: memref<16x32xf32, #tpu.memory_space<vmem>>) attributes {dimension_semantics = [#tpu.dimension_semantics<parallel>], iteration_bounds = array<i64: 1>, scalar_prefetch = 0 : i64, scratch_operands = 0 : i64, tpu.core_type = #tpu.core_type<tc>, window_params = [{transform_indices = @transform_0, window_bounds = array<i64: 16, 32>}, {pipeline_mode = #tpu.pipeline_mode<synchronous>, transform_indices = @transform_1, window_bounds = array<i64: 32, 32>}, {pipeline_mode = #tpu.pipeline_mode<synchronous>, transform_indices = @transform_2, window_bounds = array<i64: 1, 32>}, {transform_indices = @transform_3, window_bounds = array<i64: 16, 32>}, {pipeline_mode = #tpu.pipeline_mode<synchronous>, transform_indices = @transform_4, window_bounds = array<i64: 1, 32>}, {pipeline_mode = #tpu.pipeline_mode<synchronous>, transform_indices = @transform_5, window_bounds = array<i64: 1, 32>}, {transform_indices = @transform_6, window_bounds = array<i64: 16, 32>}]} {
    %c0 = arith.constant 0 : index
    %c0_0 = arith.constant 0 : index
    %0 = vector.load %arg1[%c0, %c0_0] : memref<16x32xf32, #tpu.memory_space<vmem>>, vector<16x32xf32>
    %1 = arith.truncf %0 : vector<16x32xf32> to vector<16x32xbf16>
    %c0_1 = arith.constant 0 : index
    %c0_2 = arith.constant 0 : index
    %2 = vector.load %arg2[%c0_1, %c0_2] : memref<32x32xbf16, #tpu.memory_space<vmem>>, vector<32x32xbf16>
    %cst = arith.constant dense<0.000000e+00> : vector<16x32xf32>
    %3 = tpu.matmul %1, %2, %cst {dimension_numbers = #tpu.dot_dimension_numbers<[1], [0], [0], [1], [0, 0, 1, 1], [], []>} : vector<16x32xbf16>, vector<32x32xbf16>, vector<16x32xf32> -> vector<16x32xf32>
    %c0_3 = arith.constant 0 : index
    %c0_4 = arith.constant 0 : index
    %4 = vector.load %arg3[%c0_3, %c0_4] : memref<1x32xf32, #tpu.memory_space<vmem>>, vector<1x32xf32>
    %5 = vector.broadcast %4 : vector<1x32xf32> to vector<16x32xf32>
    %6 = arith.addf %3, %5 : vector<16x32xf32>
    %c0_5 = arith.constant 0 : index
    %c0_6 = arith.constant 0 : index
    %7 = vector.load %arg4[%c0_5, %c0_6] : memref<16x32xf32, #tpu.memory_space<vmem>>, vector<16x32xf32>
    %8 = arith.addf %6, %7 : vector<16x32xf32>
    %cst_7 = arith.constant dense<0.000000e+00> : vector<16xf32>
    %9 = vector.multi_reduction <add>, %8, %cst_7 [1] : vector<16x32xf32> to vector<16xf32>
    %10 = vector.shape_cast %9 : vector<16xf32> to vector<16x1xf32>
    %cst_8 = arith.constant 3.200000e+01 : f32
    %11 = vector.broadcast %cst_8 : f32 to vector<16x1xf32>
    %12 = arith.divf %10, %11 : vector<16x1xf32>
    %13 = vector.broadcast %12 : vector<16x1xf32> to vector<16x32xf32>
    %14 = arith.subf %8, %13 : vector<16x32xf32>
    %15 = arith.mulf %14, %14 : vector<16x32xf32>
    %cst_9 = arith.constant dense<0.000000e+00> : vector<16xf32>
    %16 = vector.multi_reduction <add>, %15, %cst_9 [1] : vector<16x32xf32> to vector<16xf32>
    %17 = vector.shape_cast %16 : vector<16xf32> to vector<16x1xf32>
    %cst_10 = arith.constant 3.200000e+01 : f32
    %18 = vector.broadcast %cst_10 : f32 to vector<16x1xf32>
    %19 = arith.divf %17, %18 : vector<16x1xf32>
    %20 = vector.broadcast %12 : vector<16x1xf32> to vector<16x32xf32>
    %21 = arith.subf %8, %20 : vector<16x32xf32>
    %cst_11 = arith.constant 9.99999974E-6 : f32
    %22 = vector.broadcast %cst_11 : f32 to vector<16x1xf32>
    %23 = arith.addf %19, %22 : vector<16x1xf32>
    %24 = math.rsqrt %23 : vector<16x1xf32>
    %25 = vector.broadcast %24 : vector<16x1xf32> to vector<16x32xf32>
    %26 = arith.mulf %21, %25 : vector<16x32xf32>
    %c0_12 = arith.constant 0 : index
    %c0_13 = arith.constant 0 : index
    %27 = vector.load %arg5[%c0_12, %c0_13] : memref<1x32xf32, #tpu.memory_space<vmem>>, vector<1x32xf32>
    %28 = vector.broadcast %27 : vector<1x32xf32> to vector<16x32xf32>
    %29 = arith.mulf %26, %28 : vector<16x32xf32>
    %c0_14 = arith.constant 0 : index
    %c0_15 = arith.constant 0 : index
    %30 = vector.load %arg6[%c0_14, %c0_15] : memref<1x32xf32, #tpu.memory_space<vmem>>, vector<1x32xf32>
    %31 = vector.broadcast %30 : vector<1x32xf32> to vector<16x32xf32>
    %32 = arith.addf %29, %31 : vector<16x32xf32>
    %c0_16 = arith.constant 0 : index
    %c0_17 = arith.constant 0 : index
    %33 = vector.load %arg7[%c0_16, %c0_17] : memref<16x32xf32, #tpu.memory_space<vmem>>, vector<16x32xf32>
    tpu.vector_store %arg7[%c0_16, %c0_17], %32 {strides = array<i32>} : memref<16x32xf32, #tpu.memory_space<vmem>>, vector<16x32xf32>,
    return
  }
  func.func @transform_0(%arg0: i32) -> (i32, i32) {
    %c0_i32 = arith.constant 0 : i32
    %c0_i32_0 = arith.constant 0 : i32
    return %arg0, %c0_i32 : i32, i32
  }
  func.func @transform_1(%arg0: i32) -> (i32, i32) {
    %c0_i32 = arith.constant 0 : i32
    %c0_i32_0 = arith.constant 0 : i32
    %c0_i32_1 = arith.constant 0 : i32
    return %c0_i32, %c0_i32_0 : i32, i32
  }
  func.func @transform_2(%arg0: i32) -> (i32, i32) {
    %c0_i32 = arith.constant 0 : i32
    %c0_i32_0 = arith.constant 0 : i32
    %c0_i32_1 = arith.constant 0 : i32
    return %c0_i32, %c0_i32_0 : i32, i32
  }
  func.func @transform_3(%arg0: i32) -> (i32, i32) {
    %c0_i32 = arith.constant 0 : i32
    %c0_i32_0 = arith.constant 0 : i32
    return %arg0, %c0_i32 : i32, i32
  }
  func.func @transform_4(%arg0: i32) -> (i32, i32) {
    %c0_i32 = arith.constant 0 : i32
    %c0_i32_0 = arith.constant 0 : i32
    %c0_i32_1 = arith.constant 0 : i32
    return %c0_i32, %c0_i32_0 : i32, i32
  }
  func.func @transform_5(%arg0: i32) -> (i32, i32) {
    %c0_i32 = arith.constant 0 : i32
    %c0_i32_0 = arith.constant 0 : i32
    %c0_i32_1 = arith.constant 0 : i32
    return %c0_i32, %c0_i32_0 : i32, i32
  }
  func.func @transform_6(%arg0: i32) -> (i32, i32) {
    %c0_i32 = arith.constant 0 : i32
    %c0_i32_0 = arith.constant 0 : i32
    return %arg0, %c0_i32 : i32, i32
  }
}

module attributes {stable_mosaic.version = 11 : i64} {
  func.func @_linear_kernel(%arg0: i32, %arg1: i32, %arg2: memref<16x32xf32, #tpu.memory_space<vmem>>, %arg3: memref<32x32xbf16, #tpu.memory_space<vmem>>, %arg4: memref<1x32xf32, #tpu.memory_space<vmem>>, %arg5: memref<16x32xf32, #tpu.memory_space<vmem>>) attributes {dimension_semantics = [#tpu.dimension_semantics<parallel>, #tpu.dimension_semantics<parallel>], iteration_bounds = array<i64: 1, 1>, scalar_prefetch = 0 : i64, scratch_operands = 0 : i64, tpu.core_type = #tpu.core_type<tc>, window_params = [{transform_indices = @transform_0, window_bounds = array<i64: 16, 32>}, {transform_indices = @transform_1, window_bounds = array<i64: 32, 32>}, {transform_indices = @transform_2, window_bounds = array<i64: 1, 32>}, {transform_indices = @transform_3, window_bounds = array<i64: 16, 32>}]} {
    %c0 = arith.constant 0 : index
    %c0_0 = arith.constant 0 : index
    %0 = vector.load %arg2[%c0, %c0_0] : memref<16x32xf32, #tpu.memory_space<vmem>>, vector<16x32xf32>
    %1 = arith.truncf %0 : vector<16x32xf32> to vector<16x32xbf16>
    %c0_1 = arith.constant 0 : index
    %c0_2 = arith.constant 0 : index
    %2 = vector.load %arg3[%c0_1, %c0_2] : memref<32x32xbf16, #tpu.memory_space<vmem>>, vector<32x32xbf16>
    %cst = arith.constant dense<0.000000e+00> : vector<16x32xf32>
    %3 = tpu.matmul %1, %2, %cst {dimension_numbers = #tpu.dot_dimension_numbers<[1], [0], [0], [1], [0, 0, 1, 1], [], []>} : vector<16x32xbf16>, vector<32x32xbf16>, vector<16x32xf32> -> vector<16x32xf32>
    %c0_3 = arith.constant 0 : index
    %c0_4 = arith.constant 0 : index
    %4 = vector.load %arg4[%c0_3, %c0_4] : memref<1x32xf32, #tpu.memory_space<vmem>>, vector<1x32xf32>
    %5 = vector.broadcast %4 : vector<1x32xf32> to vector<16x32xf32>
    %6 = arith.addf %3, %5 : vector<16x32xf32>
    %c0_5 = arith.constant 0 : index
    %c0_6 = arith.constant 0 : index
    %7 = vector.load %arg5[%c0_5, %c0_6] : memref<16x32xf32, #tpu.memory_space<vmem>>, vector<16x32xf32>
    tpu.vector_store %arg5[%c0_5, %c0_6], %6 {strides = array<i32>} : memref<16x32xf32, #tpu.memory_space<vmem>>, vector<16x32xf32>,
    return
  }
  func.func @transform_0(%arg0: i32, %arg1: i32) -> (i32, i32) {
    %c0_i32 = arith.constant 0 : i32
    %c0_i32_0 = arith.constant 0 : i32
    return %arg0, %c0_i32 : i32, i32
  }
  func.func @transform_1(%arg0: i32, %arg1: i32) -> (i32, i32) {
    %c0_i32 = arith.constant 0 : i32
    %c0_i32_0 = arith.constant 0 : i32
    return %c0_i32, %arg1 : i32, i32
  }
  func.func @transform_2(%arg0: i32, %arg1: i32) -> (i32, i32) {
    %c0_i32 = arith.constant 0 : i32
    %c0_i32_0 = arith.constant 0 : i32
    return %c0_i32, %arg1 : i32, i32
  }
  func.func @transform_3(%arg0: i32, %arg1: i32) -> (i32, i32) {
    %c0_i32 = arith.constant 0 : i32
    return %arg0, %arg1 : i32, i32
  }
}

module attributes {stable_mosaic.version = 11 : i64} {
  func.func @_ln_linear_kernel(%arg0: i32, %arg1: i32, %arg2: memref<32x32xf32, #tpu.memory_space<vmem>>, %arg3: memref<1x32xf32, #tpu.memory_space<vmem>>, %arg4: memref<1x32xf32, #tpu.memory_space<vmem>>, %arg5: memref<32x32xbf16, #tpu.memory_space<vmem>>, %arg6: memref<1x32xf32, #tpu.memory_space<vmem>>, %arg7: memref<32x32xf32, #tpu.memory_space<vmem>>) attributes {dimension_semantics = [#tpu.dimension_semantics<parallel>, #tpu.dimension_semantics<parallel>], iteration_bounds = array<i64: 1, 1>, scalar_prefetch = 0 : i64, scratch_operands = 0 : i64, tpu.core_type = #tpu.core_type<tc>, window_params = [{transform_indices = @transform_0, window_bounds = array<i64: 32, 32>}, {pipeline_mode = #tpu.pipeline_mode<synchronous>, transform_indices = @transform_1, window_bounds = array<i64: 1, 32>}, {pipeline_mode = #tpu.pipeline_mode<synchronous>, transform_indices = @transform_2, window_bounds = array<i64: 1, 32>}, {transform_indices = @transform_3, window_bounds = array<i64: 32, 32>}, {transform_indices = @transform_4, window_bounds = array<i64: 1, 32>}, {transform_indices = @transform_5, window_bounds = array<i64: 32, 32>}]} {
    %c0 = arith.constant 0 : index
    %c0_0 = arith.constant 0 : index
    %0 = vector.load %arg2[%c0, %c0_0] : memref<32x32xf32, #tpu.memory_space<vmem>>, vector<32x32xf32>
    %cst = arith.constant dense<0.000000e+00> : vector<32xf32>
    %1 = vector.multi_reduction <add>, %0, %cst [1] : vector<32x32xf32> to vector<32xf32>
    %2 = vector.shape_cast %1 : vector<32xf32> to vector<32x1xf32>
    %cst_1 = arith.constant 3.200000e+01 : f32
    %3 = vector.broadcast %cst_1 : f32 to vector<32x1xf32>
    %4 = arith.divf %2, %3 : vector<32x1xf32>
    %5 = vector.broadcast %4 : vector<32x1xf32> to vector<32x32xf32>
    %6 = arith.subf %0, %5 : vector<32x32xf32>
    %7 = arith.mulf %6, %6 : vector<32x32xf32>
    %cst_2 = arith.constant dense<0.000000e+00> : vector<32xf32>
    %8 = vector.multi_reduction <add>, %7, %cst_2 [1] : vector<32x32xf32> to vector<32xf32>
    %9 = vector.shape_cast %8 : vector<32xf32> to vector<32x1xf32>
    %cst_3 = arith.constant 3.200000e+01 : f32
    %10 = vector.broadcast %cst_3 : f32 to vector<32x1xf32>
    %11 = arith.divf %9, %10 : vector<32x1xf32>
    %12 = vector.broadcast %4 : vector<32x1xf32> to vector<32x32xf32>
    %13 = arith.subf %0, %12 : vector<32x32xf32>
    %cst_4 = arith.constant 9.99999996E-13 : f32
    %14 = vector.broadcast %cst_4 : f32 to vector<32x1xf32>
    %15 = arith.addf %11, %14 : vector<32x1xf32>
    %16 = math.rsqrt %15 : vector<32x1xf32>
    %17 = vector.broadcast %16 : vector<32x1xf32> to vector<32x32xf32>
    %18 = arith.mulf %13, %17 : vector<32x32xf32>
    %c0_5 = arith.constant 0 : index
    %c0_6 = arith.constant 0 : index
    %19 = vector.load %arg3[%c0_5, %c0_6] : memref<1x32xf32, #tpu.memory_space<vmem>>, vector<1x32xf32>
    %20 = vector.broadcast %19 : vector<1x32xf32> to vector<32x32xf32>
    %21 = arith.mulf %18, %20 : vector<32x32xf32>
    %c0_7 = arith.constant 0 : index
    %c0_8 = arith.constant 0 : index
    %22 = vector.load %arg4[%c0_7, %c0_8] : memref<1x32xf32, #tpu.memory_space<vmem>>, vector<1x32xf32>
    %23 = vector.broadcast %22 : vector<1x32xf32> to vector<32x32xf32>
    %24 = arith.addf %21, %23 : vector<32x32xf32>
    %25 = arith.truncf %24 : vector<32x32xf32> to vector<32x32xbf16>
    %c0_9 = arith.constant 0 : index
    %c0_10 = arith.constant 0 : index
    %26 = vector.load %arg5[%c0_9, %c0_10] : memref<32x32xbf16, #tpu.memory_space<vmem>>, vector<32x32xbf16>
    %cst_11 = arith.constant dense<0.000000e+00> : vector<32x32xf32>
    %27 = tpu.matmul %25, %26, %cst_11 {dimension_numbers = #tpu.dot_dimension_numbers<[1], [0], [0], [1], [0, 0, 1, 1], [], []>} : vector<32x32xbf16>, vector<32x32xbf16>, vector<32x32xf32> -> vector<32x32xf32>
    %c0_12 = arith.constant 0 : index
    %c0_13 = arith.constant 0 : index
    %28 = vector.load %arg6[%c0_12, %c0_13] : memref<1x32xf32, #tpu.memory_space<vmem>>, vector<1x32xf32>
    %29 = vector.broadcast %28 : vector<1x32xf32> to vector<32x32xf32>
    %30 = arith.addf %27, %29 : vector<32x32xf32>
    %c0_14 = arith.constant 0 : index
    %c0_15 = arith.constant 0 : index
    %31 = vector.load %arg7[%c0_14, %c0_15] : memref<32x32xf32, #tpu.memory_space<vmem>>, vector<32x32xf32>
    tpu.vector_store %arg7[%c0_14, %c0_15], %30 {strides = array<i32>} : memref<32x32xf32, #tpu.memory_space<vmem>>, vector<32x32xf32>,
    return
  }
  func.func @transform_0(%arg0: i32, %arg1: i32) -> (i32, i32) {
    %c0_i32 = arith.constant 0 : i32
    %c0_i32_0 = arith.constant 0 : i32
    return %arg0, %c0_i32 : i32, i32
  }
  func.func @transform_1(%arg0: i32, %arg1: i32) -> (i32, i32) {
    %c0_i32 = arith.constant 0 : i32
    %c0_i32_0 = arith.constant 0 : i32
    %c0_i32_1 = arith.constant 0 : i32
    return %c0_i32, %c0_i32_0 : i32, i32
  }
  func.func @transform_2(%arg0: i32, %arg1: i32) -> (i32, i32) {
    %c0_i32 = arith.constant 0 : i32
    %c0_i32_0 = arith.constant 0 : i32
    %c0_i32_1 = arith.constant 0 : i32
    return %c0_i32, %c0_i32_0 : i32, i32
  }
  func.func @transform_3(%arg0: i32, %arg1: i32) -> (i32, i32) {
    %c0_i32 = arith.constant 0 : i32
    %c0_i32_0 = arith.constant 0 : i32
    return %c0_i32, %arg1 : i32, i32
  }
  func.func @transform_4(%arg0: i32, %arg1: i32) -> (i32, i32) {
    %c0_i32 = arith.constant 0 : i32
    %c0_i32_0 = arith.constant 0 : i32
    return %c0_i32, %arg1 : i32, i32
  }
  func.func @transform_5(%arg0: i32, %arg1: i32) -> (i32, i32) {
    %c0_i32 = arith.constant 0 : i32
    return %arg0, %arg1 : i32, i32
  }
}

module attributes {stable_mosaic.version = 11 : i64} {
  func.func @_fourier_res_ln_kernel(%arg0: i32, %arg1: memref<1x16x32xf32, #tpu.memory_space<vmem>>, %arg2: memref<32x32xbf16, #tpu.memory_space<vmem>>, %arg3: memref<32x32xbf16, #tpu.memory_space<vmem>>, %arg4: memref<16x16xbf16, #tpu.memory_space<vmem>>, %arg5: memref<16x16xbf16, #tpu.memory_space<vmem>>, %arg6: memref<1x32xf32, #tpu.memory_space<vmem>>, %arg7: memref<1x32xf32, #tpu.memory_space<vmem>>, %arg8: memref<1x16x32xf32, #tpu.memory_space<vmem>>) attributes {dimension_semantics = [#tpu.dimension_semantics<parallel>], iteration_bounds = array<i64: 2>, scalar_prefetch = 0 : i64, scratch_operands = 0 : i64, tpu.core_type = #tpu.core_type<tc>, window_params = [{transform_indices = @transform_0, window_bounds = array<i64: 1, 16, 32>}, {pipeline_mode = #tpu.pipeline_mode<synchronous>, transform_indices = @transform_1, window_bounds = array<i64: 32, 32>}, {pipeline_mode = #tpu.pipeline_mode<synchronous>, transform_indices = @transform_2, window_bounds = array<i64: 32, 32>}, {pipeline_mode = #tpu.pipeline_mode<synchronous>, transform_indices = @transform_3, window_bounds = array<i64: 16, 16>}, {pipeline_mode = #tpu.pipeline_mode<synchronous>, transform_indices = @transform_4, window_bounds = array<i64: 16, 16>}, {pipeline_mode = #tpu.pipeline_mode<synchronous>, transform_indices = @transform_5, window_bounds = array<i64: 1, 32>}, {pipeline_mode = #tpu.pipeline_mode<synchronous>, transform_indices = @transform_6, window_bounds = array<i64: 1, 32>}, {transform_indices = @transform_7, window_bounds = array<i64: 1, 16, 32>}]} {
    %c0 = arith.constant 0 : index
    %c0_0 = arith.constant 0 : index
    %c0_1 = arith.constant 0 : index
    %0 = vector.load %arg1[%c0, %c0_0, %c0_1] : memref<1x16x32xf32, #tpu.memory_space<vmem>>, vector<1x16x32xf32>
    %1 = vector.shape_cast %0 : vector<1x16x32xf32> to vector<16x32xf32>
    %2 = arith.truncf %1 : vector<16x32xf32> to vector<16x32xbf16>
    %c0_2 = arith.constant 0 : index
    %c0_3 = arith.constant 0 : index
    %3 = vector.load %arg2[%c0_2, %c0_3] : memref<32x32xbf16, #tpu.memory_space<vmem>>, vector<32x32xbf16>
    %cst = arith.constant dense<0.000000e+00> : vector<16x32xf32>
    %4 = tpu.matmul %2, %3, %cst {dimension_numbers = #tpu.dot_dimension_numbers<[1], [0], [0], [1], [0, 0, 1, 1], [], []>} : vector<16x32xbf16>, vector<32x32xbf16>, vector<16x32xf32> -> vector<16x32xf32>
    %c0_4 = arith.constant 0 : index
    %c0_5 = arith.constant 0 : index
    %5 = vector.load %arg3[%c0_4, %c0_5] : memref<32x32xbf16, #tpu.memory_space<vmem>>, vector<32x32xbf16>
    %cst_6 = arith.constant dense<0.000000e+00> : vector<16x32xf32>
    %6 = tpu.matmul %2, %5, %cst_6 {dimension_numbers = #tpu.dot_dimension_numbers<[1], [0], [0], [1], [0, 0, 1, 1], [], []>} : vector<16x32xbf16>, vector<32x32xbf16>, vector<16x32xf32> -> vector<16x32xf32>
    %c0_7 = arith.constant 0 : index
    %c0_8 = arith.constant 0 : index
    %7 = vector.load %arg4[%c0_7, %c0_8] : memref<16x16xbf16, #tpu.memory_space<vmem>>, vector<16x16xbf16>
    %8 = arith.truncf %4 : vector<16x32xf32> to vector<16x32xbf16>
    %cst_9 = arith.constant dense<0.000000e+00> : vector<16x32xf32>
    %9 = tpu.matmul %7, %8, %cst_9 {dimension_numbers = #tpu.dot_dimension_numbers<[1], [0], [0], [1], [0, 0, 1, 1], [], []>} : vector<16x16xbf16>, vector<16x32xbf16>, vector<16x32xf32> -> vector<16x32xf32>
    %c0_10 = arith.constant 0 : index
    %c0_11 = arith.constant 0 : index
    %10 = vector.load %arg5[%c0_10, %c0_11] : memref<16x16xbf16, #tpu.memory_space<vmem>>, vector<16x16xbf16>
    %11 = arith.truncf %6 : vector<16x32xf32> to vector<16x32xbf16>
    %cst_12 = arith.constant dense<0.000000e+00> : vector<16x32xf32>
    %12 = tpu.matmul %10, %11, %cst_12 {dimension_numbers = #tpu.dot_dimension_numbers<[1], [0], [0], [1], [0, 0, 1, 1], [], []>} : vector<16x16xbf16>, vector<16x32xbf16>, vector<16x32xf32> -> vector<16x32xf32>
    %13 = arith.subf %9, %12 : vector<16x32xf32>
    %14 = arith.addf %13, %1 : vector<16x32xf32>
    %cst_13 = arith.constant dense<0.000000e+00> : vector<16xf32>
    %15 = vector.multi_reduction <add>, %14, %cst_13 [1] : vector<16x32xf32> to vector<16xf32>
    %16 = vector.shape_cast %15 : vector<16xf32> to vector<16x1xf32>
    %cst_14 = arith.constant 3.200000e+01 : f32
    %17 = vector.broadcast %cst_14 : f32 to vector<16x1xf32>
    %18 = arith.divf %16, %17 : vector<16x1xf32>
    %19 = vector.broadcast %18 : vector<16x1xf32> to vector<16x32xf32>
    %20 = arith.subf %14, %19 : vector<16x32xf32>
    %21 = arith.mulf %20, %20 : vector<16x32xf32>
    %cst_15 = arith.constant dense<0.000000e+00> : vector<16xf32>
    %22 = vector.multi_reduction <add>, %21, %cst_15 [1] : vector<16x32xf32> to vector<16xf32>
    %23 = vector.shape_cast %22 : vector<16xf32> to vector<16x1xf32>
    %cst_16 = arith.constant 3.200000e+01 : f32
    %24 = vector.broadcast %cst_16 : f32 to vector<16x1xf32>
    %25 = arith.divf %23, %24 : vector<16x1xf32>
    %26 = vector.broadcast %18 : vector<16x1xf32> to vector<16x32xf32>
    %27 = arith.subf %14, %26 : vector<16x32xf32>
    %cst_17 = arith.constant 9.99999996E-13 : f32
    %28 = vector.broadcast %cst_17 : f32 to vector<16x1xf32>
    %29 = arith.addf %25, %28 : vector<16x1xf32>
    %30 = math.rsqrt %29 : vector<16x1xf32>
    %31 = vector.broadcast %30 : vector<16x1xf32> to vector<16x32xf32>
    %32 = arith.mulf %27, %31 : vector<16x32xf32>
    %c0_18 = arith.constant 0 : index
    %c0_19 = arith.constant 0 : index
    %33 = vector.load %arg6[%c0_18, %c0_19] : memref<1x32xf32, #tpu.memory_space<vmem>>, vector<1x32xf32>
    %34 = vector.broadcast %33 : vector<1x32xf32> to vector<16x32xf32>
    %35 = arith.mulf %32, %34 : vector<16x32xf32>
    %c0_20 = arith.constant 0 : index
    %c0_21 = arith.constant 0 : index
    %36 = vector.load %arg7[%c0_20, %c0_21] : memref<1x32xf32, #tpu.memory_space<vmem>>, vector<1x32xf32>
    %37 = vector.broadcast %36 : vector<1x32xf32> to vector<16x32xf32>
    %38 = arith.addf %35, %37 : vector<16x32xf32>
    %c0_22 = arith.constant 0 : index
    %c0_23 = arith.constant 0 : index
    %c0_24 = arith.constant 0 : index
    %39 = vector.load %arg8[%c0_22, %c0_23, %c0_24] : memref<1x16x32xf32, #tpu.memory_space<vmem>>, vector<1x16x32xf32>
    %40 = vector.shape_cast %39 : vector<1x16x32xf32> to vector<16x32xf32>
    %41 = vector.shape_cast %38 : vector<16x32xf32> to vector<1x16x32xf32>
    tpu.vector_store %arg8[%c0_22, %c0_23, %c0_24], %41 {strides = array<i32>} : memref<1x16x32xf32, #tpu.memory_space<vmem>>, vector<1x16x32xf32>,
    return
  }
  func.func @transform_0(%arg0: i32) -> (i32, i32, i32) {
    %c0_i32 = arith.constant 0 : i32
    %c0_i32_0 = arith.constant 0 : i32
    %c0_i32_1 = arith.constant 0 : i32
    return %arg0, %c0_i32, %c0_i32_0 : i32, i32, i32
  }
  func.func @transform_1(%arg0: i32) -> (i32, i32) {
    %c0_i32 = arith.constant 0 : i32
    %c0_i32_0 = arith.constant 0 : i32
    %c0_i32_1 = arith.constant 0 : i32
    return %c0_i32, %c0_i32_0 : i32, i32
  }
  func.func @transform_2(%arg0: i32) -> (i32, i32) {
    %c0_i32 = arith.constant 0 : i32
    %c0_i32_0 = arith.constant 0 : i32
    %c0_i32_1 = arith.constant 0 : i32
    return %c0_i32, %c0_i32_0 : i32, i32
  }
  func.func @transform_3(%arg0: i32) -> (i32, i32) {
    %c0_i32 = arith.constant 0 : i32
    %c0_i32_0 = arith.constant 0 : i32
    %c0_i32_1 = arith.constant 0 : i32
    return %c0_i32, %c0_i32_0 : i32, i32
  }
  func.func @transform_4(%arg0: i32) -> (i32, i32) {
    %c0_i32 = arith.constant 0 : i32
    %c0_i32_0 = arith.constant 0 : i32
    %c0_i32_1 = arith.constant 0 : i32
    return %c0_i32, %c0_i32_0 : i32, i32
  }
  func.func @transform_5(%arg0: i32) -> (i32, i32) {
    %c0_i32 = arith.constant 0 : i32
    %c0_i32_0 = arith.constant 0 : i32
    %c0_i32_1 = arith.constant 0 : i32
    return %c0_i32, %c0_i32_0 : i32, i32
  }
  func.func @transform_6(%arg0: i32) -> (i32, i32) {
    %c0_i32 = arith.constant 0 : i32
    %c0_i32_0 = arith.constant 0 : i32
    %c0_i32_1 = arith.constant 0 : i32
    return %c0_i32, %c0_i32_0 : i32, i32
  }
  func.func @transform_7(%arg0: i32) -> (i32, i32, i32) {
    %c0_i32 = arith.constant 0 : i32
    %c0_i32_0 = arith.constant 0 : i32
    %c0_i32_1 = arith.constant 0 : i32
    return %arg0, %c0_i32, %c0_i32_0 : i32, i32, i32
  }
}

module attributes {stable_mosaic.version = 11 : i64} {
  func.func @_ffn_res_ln_kernel(%arg0: i32, %arg1: memref<32x32xf32, #tpu.memory_space<vmem>>, %arg2: memref<32x64xbf16, #tpu.memory_space<vmem>>, %arg3: memref<1x64xf32, #tpu.memory_space<vmem>>, %arg4: memref<64x32xbf16, #tpu.memory_space<vmem>>, %arg5: memref<1x32xf32, #tpu.memory_space<vmem>>, %arg6: memref<1x32xf32, #tpu.memory_space<vmem>>, %arg7: memref<1x32xf32, #tpu.memory_space<vmem>>, %arg8: memref<32x32xf32, #tpu.memory_space<vmem>>) attributes {dimension_semantics = [#tpu.dimension_semantics<parallel>], iteration_bounds = array<i64: 1>, scalar_prefetch = 0 : i64, scratch_operands = 0 : i64, tpu.core_type = #tpu.core_type<tc>, window_params = [{transform_indices = @transform_0, window_bounds = array<i64: 32, 32>}, {pipeline_mode = #tpu.pipeline_mode<synchronous>, transform_indices = @transform_1, window_bounds = array<i64: 32, 64>}, {pipeline_mode = #tpu.pipeline_mode<synchronous>, transform_indices = @transform_2, window_bounds = array<i64: 1, 64>}, {pipeline_mode = #tpu.pipeline_mode<synchronous>, transform_indices = @transform_3, window_bounds = array<i64: 64, 32>}, {pipeline_mode = #tpu.pipeline_mode<synchronous>, transform_indices = @transform_4, window_bounds = array<i64: 1, 32>}, {pipeline_mode = #tpu.pipeline_mode<synchronous>, transform_indices = @transform_5, window_bounds = array<i64: 1, 32>}, {pipeline_mode = #tpu.pipeline_mode<synchronous>, transform_indices = @transform_6, window_bounds = array<i64: 1, 32>}, {transform_indices = @transform_7, window_bounds = array<i64: 32, 32>}]} {
    %c0 = arith.constant 0 : index
    %c0_0 = arith.constant 0 : index
    %0 = vector.load %arg1[%c0, %c0_0] : memref<32x32xf32, #tpu.memory_space<vmem>>, vector<32x32xf32>
    %1 = arith.truncf %0 : vector<32x32xf32> to vector<32x32xbf16>
    %c0_1 = arith.constant 0 : index
    %c0_2 = arith.constant 0 : index
    %2 = vector.load %arg2[%c0_1, %c0_2] : memref<32x64xbf16, #tpu.memory_space<vmem>>, vector<32x64xbf16>
    %cst = arith.constant dense<0.000000e+00> : vector<32x64xf32>
    %3 = tpu.matmul %1, %2, %cst {dimension_numbers = #tpu.dot_dimension_numbers<[1], [0], [0], [1], [0, 0, 1, 1], [], []>} : vector<32x32xbf16>, vector<32x64xbf16>, vector<32x64xf32> -> vector<32x64xf32>
    %c0_3 = arith.constant 0 : index
    %c0_4 = arith.constant 0 : index
    %4 = vector.load %arg3[%c0_3, %c0_4] : memref<1x64xf32, #tpu.memory_space<vmem>>, vector<1x64xf32>
    %5 = vector.broadcast %4 : vector<1x64xf32> to vector<32x64xf32>
    %6 = arith.addf %3, %5 : vector<32x64xf32>
    %7 = arith.mulf %6, %6 : vector<32x64xf32>
    %8 = arith.mulf %6, %7 : vector<32x64xf32>
    %cst_5 = arith.constant 4.471500e-02 : f32
    %9 = vector.broadcast %cst_5 : f32 to vector<32x64xf32>
    %10 = arith.mulf %9, %8 : vector<32x64xf32>
    %11 = arith.addf %6, %10 : vector<32x64xf32>
    %cst_6 = arith.constant 0.797884583 : f32
    %12 = vector.broadcast %cst_6 : f32 to vector<32x64xf32>
    %13 = arith.mulf %12, %11 : vector<32x64xf32>
    %14 = math.tanh %13 : vector<32x64xf32>
    %cst_7 = arith.constant 1.000000e+00 : f32
    %15 = vector.broadcast %cst_7 : f32 to vector<32x64xf32>
    %16 = arith.addf %15, %14 : vector<32x64xf32>
    %cst_8 = arith.constant 5.000000e-01 : f32
    %17 = vector.broadcast %cst_8 : f32 to vector<32x64xf32>
    %18 = arith.mulf %17, %16 : vector<32x64xf32>
    %19 = arith.mulf %6, %18 : vector<32x64xf32>
    %20 = arith.truncf %19 : vector<32x64xf32> to vector<32x64xbf16>
    %c0_9 = arith.constant 0 : index
    %c0_10 = arith.constant 0 : index
    %21 = vector.load %arg4[%c0_9, %c0_10] : memref<64x32xbf16, #tpu.memory_space<vmem>>, vector<64x32xbf16>
    %cst_11 = arith.constant dense<0.000000e+00> : vector<32x32xf32>
    %22 = tpu.matmul %20, %21, %cst_11 {dimension_numbers = #tpu.dot_dimension_numbers<[1], [0], [0], [1], [0, 0, 1, 1], [], []>} : vector<32x64xbf16>, vector<64x32xbf16>, vector<32x32xf32> -> vector<32x32xf32>
    %c0_12 = arith.constant 0 : index
    %c0_13 = arith.constant 0 : index
    %23 = vector.load %arg5[%c0_12, %c0_13] : memref<1x32xf32, #tpu.memory_space<vmem>>, vector<1x32xf32>
    %24 = vector.broadcast %23 : vector<1x32xf32> to vector<32x32xf32>
    %25 = arith.addf %22, %24 : vector<32x32xf32>
    %26 = arith.addf %25, %0 : vector<32x32xf32>
    %cst_14 = arith.constant dense<0.000000e+00> : vector<32xf32>
    %27 = vector.multi_reduction <add>, %26, %cst_14 [1] : vector<32x32xf32> to vector<32xf32>
    %28 = vector.shape_cast %27 : vector<32xf32> to vector<32x1xf32>
    %cst_15 = arith.constant 3.200000e+01 : f32
    %29 = vector.broadcast %cst_15 : f32 to vector<32x1xf32>
    %30 = arith.divf %28, %29 : vector<32x1xf32>
    %31 = vector.broadcast %30 : vector<32x1xf32> to vector<32x32xf32>
    %32 = arith.subf %26, %31 : vector<32x32xf32>
    %33 = arith.mulf %32, %32 : vector<32x32xf32>
    %cst_16 = arith.constant dense<0.000000e+00> : vector<32xf32>
    %34 = vector.multi_reduction <add>, %33, %cst_16 [1] : vector<32x32xf32> to vector<32xf32>
    %35 = vector.shape_cast %34 : vector<32xf32> to vector<32x1xf32>
    %cst_17 = arith.constant 3.200000e+01 : f32
    %36 = vector.broadcast %cst_17 : f32 to vector<32x1xf32>
    %37 = arith.divf %35, %36 : vector<32x1xf32>
    %38 = vector.broadcast %30 : vector<32x1xf32> to vector<32x32xf32>
    %39 = arith.subf %26, %38 : vector<32x32xf32>
    %cst_18 = arith.constant 9.99999996E-13 : f32
    %40 = vector.broadcast %cst_18 : f32 to vector<32x1xf32>
    %41 = arith.addf %37, %40 : vector<32x1xf32>
    %42 = math.rsqrt %41 : vector<32x1xf32>
    %43 = vector.broadcast %42 : vector<32x1xf32> to vector<32x32xf32>
    %44 = arith.mulf %39, %43 : vector<32x32xf32>
    %c0_19 = arith.constant 0 : index
    %c0_20 = arith.constant 0 : index
    %45 = vector.load %arg6[%c0_19, %c0_20] : memref<1x32xf32, #tpu.memory_space<vmem>>, vector<1x32xf32>
    %46 = vector.broadcast %45 : vector<1x32xf32> to vector<32x32xf32>
    %47 = arith.mulf %44, %46 : vector<32x32xf32>
    %c0_21 = arith.constant 0 : index
    %c0_22 = arith.constant 0 : index
    %48 = vector.load %arg7[%c0_21, %c0_22] : memref<1x32xf32, #tpu.memory_space<vmem>>, vector<1x32xf32>
    %49 = vector.broadcast %48 : vector<1x32xf32> to vector<32x32xf32>
    %50 = arith.addf %47, %49 : vector<32x32xf32>
    %c0_23 = arith.constant 0 : index
    %c0_24 = arith.constant 0 : index
    %51 = vector.load %arg8[%c0_23, %c0_24] : memref<32x32xf32, #tpu.memory_space<vmem>>, vector<32x32xf32>
    tpu.vector_store %arg8[%c0_23, %c0_24], %50 {strides = array<i32>} : memref<32x32xf32, #tpu.memory_space<vmem>>, vector<32x32xf32>,
    return
  }
  func.func @transform_0(%arg0: i32) -> (i32, i32) {
    %c0_i32 = arith.constant 0 : i32
    %c0_i32_0 = arith.constant 0 : i32
    return %arg0, %c0_i32 : i32, i32
  }
  func.func @transform_1(%arg0: i32) -> (i32, i32) {
    %c0_i32 = arith.constant 0 : i32
    %c0_i32_0 = arith.constant 0 : i32
    %c0_i32_1 = arith.constant 0 : i32
    return %c0_i32, %c0_i32_0 : i32, i32
  }
  func.func @transform_2(%arg0: i32) -> (i32, i32) {
    %c0_i32 = arith.constant 0 : i32
    %c0_i32_0 = arith.constant 0 : i32
    %c0_i32_1 = arith.constant 0 : i32
    return %c0_i32, %c0_i32_0 : i32, i32
  }
  func.func @transform_3(%arg0: i32) -> (i32, i32) {
    %c0_i32 = arith.constant 0 : i32
    %c0_i32_0 = arith.constant 0 : i32
    %c0_i32_1 = arith.constant 0 : i32
    return %c0_i32, %c0_i32_0 : i32, i32
  }
  func.func @transform_4(%arg0: i32) -> (i32, i32) {
    %c0_i32 = arith.constant 0 : i32
    %c0_i32_0 = arith.constant 0 : i32
    %c0_i32_1 = arith.constant 0 : i32
    return %c0_i32, %c0_i32_0 : i32, i32
  }
  func.func @transform_5(%arg0: i32) -> (i32, i32) {
    %c0_i32 = arith.constant 0 : i32
    %c0_i32_0 = arith.constant 0 : i32
    %c0_i32_1 = arith.constant 0 : i32
    return %c0_i32, %c0_i32_0 : i32, i32
  }
  func.func @transform_6(%arg0: i32) -> (i32, i32) {
    %c0_i32 = arith.constant 0 : i32
    %c0_i32_0 = arith.constant 0 : i32
    %c0_i32_1 = arith.constant 0 : i32
    return %c0_i32, %c0_i32_0 : i32, i32
  }
  func.func @transform_7(%arg0: i32) -> (i32, i32) {
    %c0_i32 = arith.constant 0 : i32
    %c0_i32_0 = arith.constant 0 : i32
    return %arg0, %c0_i32 : i32, i32
  }
}

module attributes {stable_mosaic.version = 11 : i64} {
  func.func @_linear_kernel(%arg0: i32, %arg1: i32, %arg2: memref<32x96xf32, #tpu.memory_space<vmem>>, %arg3: memref<96x64xbf16, #tpu.memory_space<vmem>>, %arg4: memref<1x64xf32, #tpu.memory_space<vmem>>, %arg5: memref<32x64xf32, #tpu.memory_space<vmem>>) attributes {dimension_semantics = [#tpu.dimension_semantics<parallel>, #tpu.dimension_semantics<parallel>], iteration_bounds = array<i64: 1, 1>, scalar_prefetch = 0 : i64, scratch_operands = 0 : i64, tpu.core_type = #tpu.core_type<tc>, window_params = [{transform_indices = @transform_0, window_bounds = array<i64: 32, 96>}, {transform_indices = @transform_1, window_bounds = array<i64: 96, 64>}, {transform_indices = @transform_2, window_bounds = array<i64: 1, 64>}, {transform_indices = @transform_3, window_bounds = array<i64: 32, 64>}]} {
    %c0 = arith.constant 0 : index
    %c0_0 = arith.constant 0 : index
    %0 = vector.load %arg2[%c0, %c0_0] : memref<32x96xf32, #tpu.memory_space<vmem>>, vector<32x96xf32>
    %1 = arith.truncf %0 : vector<32x96xf32> to vector<32x96xbf16>
    %c0_1 = arith.constant 0 : index
    %c0_2 = arith.constant 0 : index
    %2 = vector.load %arg3[%c0_1, %c0_2] : memref<96x64xbf16, #tpu.memory_space<vmem>>, vector<96x64xbf16>
    %cst = arith.constant dense<0.000000e+00> : vector<32x64xf32>
    %3 = tpu.matmul %1, %2, %cst {dimension_numbers = #tpu.dot_dimension_numbers<[1], [0], [0], [1], [0, 0, 1, 1], [], []>} : vector<32x96xbf16>, vector<96x64xbf16>, vector<32x64xf32> -> vector<32x64xf32>
    %c0_3 = arith.constant 0 : index
    %c0_4 = arith.constant 0 : index
    %4 = vector.load %arg4[%c0_3, %c0_4] : memref<1x64xf32, #tpu.memory_space<vmem>>, vector<1x64xf32>
    %5 = vector.broadcast %4 : vector<1x64xf32> to vector<32x64xf32>
    %6 = arith.addf %3, %5 : vector<32x64xf32>
    %7 = arith.mulf %6, %6 : vector<32x64xf32>
    %8 = arith.mulf %6, %7 : vector<32x64xf32>
    %cst_5 = arith.constant 4.471500e-02 : f32
    %9 = vector.broadcast %cst_5 : f32 to vector<32x64xf32>
    %10 = arith.mulf %9, %8 : vector<32x64xf32>
    %11 = arith.addf %6, %10 : vector<32x64xf32>
    %cst_6 = arith.constant 0.797884583 : f32
    %12 = vector.broadcast %cst_6 : f32 to vector<32x64xf32>
    %13 = arith.mulf %12, %11 : vector<32x64xf32>
    %14 = math.tanh %13 : vector<32x64xf32>
    %cst_7 = arith.constant 1.000000e+00 : f32
    %15 = vector.broadcast %cst_7 : f32 to vector<32x64xf32>
    %16 = arith.addf %15, %14 : vector<32x64xf32>
    %cst_8 = arith.constant 5.000000e-01 : f32
    %17 = vector.broadcast %cst_8 : f32 to vector<32x64xf32>
    %18 = arith.mulf %17, %16 : vector<32x64xf32>
    %19 = arith.mulf %6, %18 : vector<32x64xf32>
    %c0_9 = arith.constant 0 : index
    %c0_10 = arith.constant 0 : index
    %20 = vector.load %arg5[%c0_9, %c0_10] : memref<32x64xf32, #tpu.memory_space<vmem>>, vector<32x64xf32>
    tpu.vector_store %arg5[%c0_9, %c0_10], %19 {strides = array<i32>} : memref<32x64xf32, #tpu.memory_space<vmem>>, vector<32x64xf32>,
    return
  }
  func.func @transform_0(%arg0: i32, %arg1: i32) -> (i32, i32) {
    %c0_i32 = arith.constant 0 : i32
    %c0_i32_0 = arith.constant 0 : i32
    return %arg0, %c0_i32 : i32, i32
  }
  func.func @transform_1(%arg0: i32, %arg1: i32) -> (i32, i32) {
    %c0_i32 = arith.constant 0 : i32
    %c0_i32_0 = arith.constant 0 : i32
    return %c0_i32, %arg1 : i32, i32
  }
  func.func @transform_2(%arg0: i32, %arg1: i32) -> (i32, i32) {
    %c0_i32 = arith.constant 0 : i32
    %c0_i32_0 = arith.constant 0 : i32
    return %c0_i32, %arg1 : i32, i32
  }
  func.func @transform_3(%arg0: i32, %arg1: i32) -> (i32, i32) {
    %c0_i32 = arith.constant 0 : i32
    return %arg0, %arg1 : i32, i32
  }
}

module attributes {stable_mosaic.version = 11 : i64} {
  func.func @_linear_res_ln_kernel(%arg0: i32, %arg1: memref<32x192xf32, #tpu.memory_space<vmem>>, %arg2: memref<192x32xbf16, #tpu.memory_space<vmem>>, %arg3: memref<1x32xf32, #tpu.memory_space<vmem>>, %arg4: memref<32x32xf32, #tpu.memory_space<vmem>>, %arg5: memref<1x32xf32, #tpu.memory_space<vmem>>, %arg6: memref<1x32xf32, #tpu.memory_space<vmem>>, %arg7: memref<32x32xf32, #tpu.memory_space<vmem>>) attributes {dimension_semantics = [#tpu.dimension_semantics<parallel>], iteration_bounds = array<i64: 1>, scalar_prefetch = 0 : i64, scratch_operands = 0 : i64, tpu.core_type = #tpu.core_type<tc>, window_params = [{transform_indices = @transform_0, window_bounds = array<i64: 32, 192>}, {pipeline_mode = #tpu.pipeline_mode<synchronous>, transform_indices = @transform_1, window_bounds = array<i64: 192, 32>}, {pipeline_mode = #tpu.pipeline_mode<synchronous>, transform_indices = @transform_2, window_bounds = array<i64: 1, 32>}, {transform_indices = @transform_3, window_bounds = array<i64: 32, 32>}, {pipeline_mode = #tpu.pipeline_mode<synchronous>, transform_indices = @transform_4, window_bounds = array<i64: 1, 32>}, {pipeline_mode = #tpu.pipeline_mode<synchronous>, transform_indices = @transform_5, window_bounds = array<i64: 1, 32>}, {transform_indices = @transform_6, window_bounds = array<i64: 32, 32>}]} {
    %c0 = arith.constant 0 : index
    %c0_0 = arith.constant 0 : index
    %0 = vector.load %arg1[%c0, %c0_0] : memref<32x192xf32, #tpu.memory_space<vmem>>, vector<32x192xf32>
    %1 = arith.truncf %0 : vector<32x192xf32> to vector<32x192xbf16>
    %c0_1 = arith.constant 0 : index
    %c0_2 = arith.constant 0 : index
    %2 = vector.load %arg2[%c0_1, %c0_2] : memref<192x32xbf16, #tpu.memory_space<vmem>>, vector<192x32xbf16>
    %cst = arith.constant dense<0.000000e+00> : vector<32x32xf32>
    %3 = tpu.matmul %1, %2, %cst {dimension_numbers = #tpu.dot_dimension_numbers<[1], [0], [0], [1], [0, 0, 1, 1], [], []>} : vector<32x192xbf16>, vector<192x32xbf16>, vector<32x32xf32> -> vector<32x32xf32>
    %c0_3 = arith.constant 0 : index
    %c0_4 = arith.constant 0 : index
    %4 = vector.load %arg3[%c0_3, %c0_4] : memref<1x32xf32, #tpu.memory_space<vmem>>, vector<1x32xf32>
    %5 = vector.broadcast %4 : vector<1x32xf32> to vector<32x32xf32>
    %6 = arith.addf %3, %5 : vector<32x32xf32>
    %c0_5 = arith.constant 0 : index
    %c0_6 = arith.constant 0 : index
    %7 = vector.load %arg4[%c0_5, %c0_6] : memref<32x32xf32, #tpu.memory_space<vmem>>, vector<32x32xf32>
    %8 = arith.addf %6, %7 : vector<32x32xf32>
    %cst_7 = arith.constant dense<0.000000e+00> : vector<32xf32>
    %9 = vector.multi_reduction <add>, %8, %cst_7 [1] : vector<32x32xf32> to vector<32xf32>
    %10 = vector.shape_cast %9 : vector<32xf32> to vector<32x1xf32>
    %cst_8 = arith.constant 3.200000e+01 : f32
    %11 = vector.broadcast %cst_8 : f32 to vector<32x1xf32>
    %12 = arith.divf %10, %11 : vector<32x1xf32>
    %13 = vector.broadcast %12 : vector<32x1xf32> to vector<32x32xf32>
    %14 = arith.subf %8, %13 : vector<32x32xf32>
    %15 = arith.mulf %14, %14 : vector<32x32xf32>
    %cst_9 = arith.constant dense<0.000000e+00> : vector<32xf32>
    %16 = vector.multi_reduction <add>, %15, %cst_9 [1] : vector<32x32xf32> to vector<32xf32>
    %17 = vector.shape_cast %16 : vector<32xf32> to vector<32x1xf32>
    %cst_10 = arith.constant 3.200000e+01 : f32
    %18 = vector.broadcast %cst_10 : f32 to vector<32x1xf32>
    %19 = arith.divf %17, %18 : vector<32x1xf32>
    %20 = vector.broadcast %12 : vector<32x1xf32> to vector<32x32xf32>
    %21 = arith.subf %8, %20 : vector<32x32xf32>
    %cst_11 = arith.constant 9.99999996E-13 : f32
    %22 = vector.broadcast %cst_11 : f32 to vector<32x1xf32>
    %23 = arith.addf %19, %22 : vector<32x1xf32>
    %24 = math.rsqrt %23 : vector<32x1xf32>
    %25 = vector.broadcast %24 : vector<32x1xf32> to vector<32x32xf32>
    %26 = arith.mulf %21, %25 : vector<32x32xf32>
    %c0_12 = arith.constant 0 : index
    %c0_13 = arith.constant 0 : index
    %27 = vector.load %arg5[%c0_12, %c0_13] : memref<1x32xf32, #tpu.memory_space<vmem>>, vector<1x32xf32>
    %28 = vector.broadcast %27 : vector<1x32xf32> to vector<32x32xf32>
    %29 = arith.mulf %26, %28 : vector<32x32xf32>
    %c0_14 = arith.constant 0 : index
    %c0_15 = arith.constant 0 : index
    %30 = vector.load %arg6[%c0_14, %c0_15] : memref<1x32xf32, #tpu.memory_space<vmem>>, vector<1x32xf32>
    %31 = vector.broadcast %30 : vector<1x32xf32> to vector<32x32xf32>
    %32 = arith.addf %29, %31 : vector<32x32xf32>
    %c0_16 = arith.constant 0 : index
    %c0_17 = arith.constant 0 : index
    %33 = vector.load %arg7[%c0_16, %c0_17] : memref<32x32xf32, #tpu.memory_space<vmem>>, vector<32x32xf32>
    tpu.vector_store %arg7[%c0_16, %c0_17], %32 {strides = array<i32>} : memref<32x32xf32, #tpu.memory_space<vmem>>, vector<32x32xf32>,
    return
  }
  func.func @transform_0(%arg0: i32) -> (i32, i32) {
    %c0_i32 = arith.constant 0 : i32
    %c0_i32_0 = arith.constant 0 : i32
    return %arg0, %c0_i32 : i32, i32
  }
  func.func @transform_1(%arg0: i32) -> (i32, i32) {
    %c0_i32 = arith.constant 0 : i32
    %c0_i32_0 = arith.constant 0 : i32
    %c0_i32_1 = arith.constant 0 : i32
    return %c0_i32, %c0_i32_0 : i32, i32
  }
  func.func @transform_2(%arg0: i32) -> (i32, i32) {
    %c0_i32 = arith.constant 0 : i32
    %c0_i32_0 = arith.constant 0 : i32
    %c0_i32_1 = arith.constant 0 : i32
    return %c0_i32, %c0_i32_0 : i32, i32
  }
  func.func @transform_3(%arg0: i32) -> (i32, i32) {
    %c0_i32 = arith.constant 0 : i32
    %c0_i32_0 = arith.constant 0 : i32
    return %arg0, %c0_i32 : i32, i32
  }
  func.func @transform_4(%arg0: i32) -> (i32, i32) {
    %c0_i32 = arith.constant 0 : i32
    %c0_i32_0 = arith.constant 0 : i32
    %c0_i32_1 = arith.constant 0 : i32
    return %c0_i32, %c0_i32_0 : i32, i32
  }
  func.func @transform_5(%arg0: i32) -> (i32, i32) {
    %c0_i32 = arith.constant 0 : i32
    %c0_i32_0 = arith.constant 0 : i32
    %c0_i32_1 = arith.constant 0 : i32
    return %c0_i32, %c0_i32_0 : i32, i32
  }
  func.func @transform_6(%arg0: i32) -> (i32, i32) {
    %c0_i32 = arith.constant 0 : i32
    %c0_i32_0 = arith.constant 0 : i32
    return %arg0, %c0_i32 : i32, i32
  }
}

module attributes {stable_mosaic.version = 11 : i64} {
  func.func @_linear_kernel(%arg0: i32, %arg1: i32, %arg2: memref<32x32xf32, #tpu.memory_space<vmem>>, %arg3: memref<32x64xbf16, #tpu.memory_space<vmem>>, %arg4: memref<1x64xf32, #tpu.memory_space<vmem>>, %arg5: memref<32x64xf32, #tpu.memory_space<vmem>>) attributes {dimension_semantics = [#tpu.dimension_semantics<parallel>, #tpu.dimension_semantics<parallel>], iteration_bounds = array<i64: 1, 1>, scalar_prefetch = 0 : i64, scratch_operands = 0 : i64, tpu.core_type = #tpu.core_type<tc>, window_params = [{transform_indices = @transform_0, window_bounds = array<i64: 32, 32>}, {transform_indices = @transform_1, window_bounds = array<i64: 32, 64>}, {transform_indices = @transform_2, window_bounds = array<i64: 1, 64>}, {transform_indices = @transform_3, window_bounds = array<i64: 32, 64>}]} {
    %c0 = arith.constant 0 : index
    %c0_0 = arith.constant 0 : index
    %0 = vector.load %arg2[%c0, %c0_0] : memref<32x32xf32, #tpu.memory_space<vmem>>, vector<32x32xf32>
    %1 = arith.truncf %0 : vector<32x32xf32> to vector<32x32xbf16>
    %c0_1 = arith.constant 0 : index
    %c0_2 = arith.constant 0 : index
    %2 = vector.load %arg3[%c0_1, %c0_2] : memref<32x64xbf16, #tpu.memory_space<vmem>>, vector<32x64xbf16>
    %cst = arith.constant dense<0.000000e+00> : vector<32x64xf32>
    %3 = tpu.matmul %1, %2, %cst {dimension_numbers = #tpu.dot_dimension_numbers<[1], [0], [0], [1], [0, 0, 1, 1], [], []>} : vector<32x32xbf16>, vector<32x64xbf16>, vector<32x64xf32> -> vector<32x64xf32>
    %c0_3 = arith.constant 0 : index
    %c0_4 = arith.constant 0 : index
    %4 = vector.load %arg4[%c0_3, %c0_4] : memref<1x64xf32, #tpu.memory_space<vmem>>, vector<1x64xf32>
    %5 = vector.broadcast %4 : vector<1x64xf32> to vector<32x64xf32>
    %6 = arith.addf %3, %5 : vector<32x64xf32>
    %c0_5 = arith.constant 0 : index
    %c0_6 = arith.constant 0 : index
    %7 = vector.load %arg5[%c0_5, %c0_6] : memref<32x64xf32, #tpu.memory_space<vmem>>, vector<32x64xf32>
    tpu.vector_store %arg5[%c0_5, %c0_6], %6 {strides = array<i32>} : memref<32x64xf32, #tpu.memory_space<vmem>>, vector<32x64xf32>,
    return
  }
  func.func @transform_0(%arg0: i32, %arg1: i32) -> (i32, i32) {
    %c0_i32 = arith.constant 0 : i32
    %c0_i32_0 = arith.constant 0 : i32
    return %arg0, %c0_i32 : i32, i32
  }
  func.func @transform_1(%arg0: i32, %arg1: i32) -> (i32, i32) {
    %c0_i32 = arith.constant 0 : i32
    %c0_i32_0 = arith.constant 0 : i32
    return %c0_i32, %arg1 : i32, i32
  }
  func.func @transform_2(%arg0: i32, %arg1: i32) -> (i32, i32) {
    %c0_i32 = arith.constant 0 : i32
    %c0_i32_0 = arith.constant 0 : i32
    return %c0_i32, %arg1 : i32, i32
  }
  func.func @transform_3(%arg0: i32, %arg1: i32) -> (i32, i32) {
    %c0_i32 = arith.constant 0 : i32
    return %arg0, %arg1 : i32, i32
  }
}

module attributes {stable_mosaic.version = 11 : i64} {
  func.func @_attn_kernel(%arg0: i32, %arg1: memref<1x4x8x8xf32, #tpu.memory_space<vmem>>, %arg2: memref<1x4x16x8xf32, #tpu.memory_space<vmem>>, %arg3: memref<1x4x16x8xf32, #tpu.memory_space<vmem>>, %arg4: memref<1x4x8x8xf32, #tpu.memory_space<vmem>>) attributes {dimension_semantics = [#tpu.dimension_semantics<parallel>], iteration_bounds = array<i64: 2>, scalar_prefetch = 0 : i64, scratch_operands = 0 : i64, tpu.core_type = #tpu.core_type<tc>, window_params = [{transform_indices = @transform_0, window_bounds = array<i64: 1, 4, 8, 8>}, {transform_indices = @transform_1, window_bounds = array<i64: 1, 4, 16, 8>}, {transform_indices = @transform_2, window_bounds = array<i64: 1, 4, 16, 8>}, {transform_indices = @transform_3, window_bounds = array<i64: 1, 4, 8, 8>}]} {
    %c0 = arith.constant 0 : index
    %c0_0 = arith.constant 0 : index
    %c0_1 = arith.constant 0 : index
    %c0_2 = arith.constant 0 : index
    %0 = vector.load %arg1[%c0, %c0_0, %c0_1, %c0_2] : memref<1x4x8x8xf32, #tpu.memory_space<vmem>>, vector<1x4x8x8xf32>
    %1 = vector.shape_cast %0 : vector<1x4x8x8xf32> to vector<4x8x8xf32>
    %cst = arith.constant 0.353553385 : f32
    %2 = vector.broadcast %cst : f32 to vector<4x8x8xf32>
    %3 = arith.mulf %1, %2 : vector<4x8x8xf32>
    %4 = arith.truncf %3 : vector<4x8x8xf32> to vector<4x8x8xbf16>
    %c0_3 = arith.constant 0 : index
    %c0_4 = arith.constant 0 : index
    %c0_5 = arith.constant 0 : index
    %c0_6 = arith.constant 0 : index
    %5 = vector.load %arg2[%c0_3, %c0_4, %c0_5, %c0_6] : memref<1x4x16x8xf32, #tpu.memory_space<vmem>>, vector<1x4x16x8xf32>
    %6 = vector.shape_cast %5 : vector<1x4x16x8xf32> to vector<4x16x8xf32>
    %7 = arith.truncf %6 : vector<4x16x8xf32> to vector<4x16x8xbf16>
    %c0_7 = arith.constant 0 : index
    %c0_8 = arith.constant 0 : index
    %c0_9 = arith.constant 0 : index
    %c0_10 = arith.constant 0 : index
    %8 = vector.load %arg3[%c0_7, %c0_8, %c0_9, %c0_10] : memref<1x4x16x8xf32, #tpu.memory_space<vmem>>, vector<1x4x16x8xf32>
    %9 = vector.shape_cast %8 : vector<1x4x16x8xf32> to vector<4x16x8xf32>
    %10 = arith.truncf %9 : vector<4x16x8xf32> to vector<4x16x8xbf16>
    "tpu.trace_start"() <{level = 10 : i32, message = "hqd,hkd->hqk"}> : () -> ()
    %cst_11 = arith.constant dense<0.000000e+00> : vector<4x8x16xf32>
    %11 = tpu.matmul %4, %7, %cst_11 {dimension_numbers = #tpu.dot_dimension_numbers<[2], [2], [1], [1], [0, 0, 0, 1, 1, 1], [0], [0]>} : vector<4x8x8xbf16>, vector<4x16x8xbf16>, vector<4x8x16xf32> -> vector<4x8x16xf32>
    "tpu.trace_stop"() : () -> ()
    %cst_12 = arith.constant dense<0xFF800000> : vector<4x8xf32>
    %12 = vector.multi_reduction <maximumf>, %11, %cst_12 [2] : vector<4x8x16xf32> to vector<4x8xf32>
    %13 = vector.shape_cast %12 : vector<4x8xf32> to vector<4x8x1xf32>
    %14 = vector.broadcast %13 : vector<4x8x1xf32> to vector<4x8x16xf32>
    %15 = arith.subf %11, %14 : vector<4x8x16xf32>
    %16 = math.exp %15 : vector<4x8x16xf32>
    %cst_13 = arith.constant dense<0.000000e+00> : vector<4x8xf32>
    %17 = vector.multi_reduction <add>, %16, %cst_13 [2] : vector<4x8x16xf32> to vector<4x8xf32>
    %18 = vector.shape_cast %17 : vector<4x8xf32> to vector<4x8x1xf32>
    %19 = tpu.reciprocal %18 {approx = true} : vector<4x8x1xf32> -> vector<4x8x1xf32>
    %20 = vector.broadcast %19 : vector<4x8x1xf32> to vector<4x8x16xf32>
    %21 = arith.mulf %16, %20 : vector<4x8x16xf32>
    %22 = arith.truncf %21 : vector<4x8x16xf32> to vector<4x8x16xbf16>
    "tpu.trace_start"() <{level = 10 : i32, message = "hqk,hkd->hqd"}> : () -> ()
    %cst_14 = arith.constant dense<0.000000e+00> : vector<4x8x8xf32>
    %23 = tpu.matmul %22, %10, %cst_14 {dimension_numbers = #tpu.dot_dimension_numbers<[2], [1], [1], [2], [0, 0, 0, 1, 1, 2], [0], [0]>} : vector<4x8x16xbf16>, vector<4x16x8xbf16>, vector<4x8x8xf32> -> vector<4x8x8xf32>
    "tpu.trace_stop"() : () -> ()
    %c0_15 = arith.constant 0 : index
    %c0_16 = arith.constant 0 : index
    %c0_17 = arith.constant 0 : index
    %c0_18 = arith.constant 0 : index
    %24 = vector.load %arg4[%c0_15, %c0_16, %c0_17, %c0_18] : memref<1x4x8x8xf32, #tpu.memory_space<vmem>>, vector<1x4x8x8xf32>
    %25 = vector.shape_cast %24 : vector<1x4x8x8xf32> to vector<4x8x8xf32>
    %26 = vector.shape_cast %23 : vector<4x8x8xf32> to vector<1x4x8x8xf32>
    tpu.vector_store %arg4[%c0_15, %c0_16, %c0_17, %c0_18], %26 {strides = array<i32>} : memref<1x4x8x8xf32, #tpu.memory_space<vmem>>, vector<1x4x8x8xf32>,
    return
  }
  func.func @transform_0(%arg0: i32) -> (i32, i32, i32, i32) {
    %c0_i32 = arith.constant 0 : i32
    %c0_i32_0 = arith.constant 0 : i32
    %c0_i32_1 = arith.constant 0 : i32
    %c0_i32_2 = arith.constant 0 : i32
    return %arg0, %c0_i32, %c0_i32_0, %c0_i32_1 : i32, i32, i32, i32
  }
  func.func @transform_1(%arg0: i32) -> (i32, i32, i32, i32) {
    %c0_i32 = arith.constant 0 : i32
    %c0_i32_0 = arith.constant 0 : i32
    %c0_i32_1 = arith.constant 0 : i32
    %c0_i32_2 = arith.constant 0 : i32
    return %arg0, %c0_i32, %c0_i32_0, %c0_i32_1 : i32, i32, i32, i32
  }
  func.func @transform_2(%arg0: i32) -> (i32, i32, i32, i32) {
    %c0_i32 = arith.constant 0 : i32
    %c0_i32_0 = arith.constant 0 : i32
    %c0_i32_1 = arith.constant 0 : i32
    %c0_i32_2 = arith.constant 0 : i32
    return %arg0, %c0_i32, %c0_i32_0, %c0_i32_1 : i32, i32, i32, i32
  }
  func.func @transform_3(%arg0: i32) -> (i32, i32, i32, i32) {
    %c0_i32 = arith.constant 0 : i32
    %c0_i32_0 = arith.constant 0 : i32
    %c0_i32_1 = arith.constant 0 : i32
    %c0_i32_2 = arith.constant 0 : i32
    return %arg0, %c0_i32, %c0_i32_0, %c0_i32_1 : i32, i32, i32, i32
  }
}

module attributes {stable_mosaic.version = 11 : i64} {
  func.func @_linear_kernel(%arg0: i32, %arg1: i32, %arg2: memref<16x32xf32, #tpu.memory_space<vmem>>, %arg3: memref<32x100xbf16, #tpu.memory_space<vmem>>, %arg4: memref<1x100xf32, #tpu.memory_space<vmem>>, %arg5: memref<16x100xf32, #tpu.memory_space<vmem>>) attributes {dimension_semantics = [#tpu.dimension_semantics<parallel>, #tpu.dimension_semantics<parallel>], iteration_bounds = array<i64: 1, 1>, scalar_prefetch = 0 : i64, scratch_operands = 0 : i64, tpu.core_type = #tpu.core_type<tc>, window_params = [{transform_indices = @transform_0, window_bounds = array<i64: 16, 32>}, {transform_indices = @transform_1, window_bounds = array<i64: 32, 100>}, {transform_indices = @transform_2, window_bounds = array<i64: 1, 100>}, {transform_indices = @transform_3, window_bounds = array<i64: 16, 100>}]} {
    %c0 = arith.constant 0 : index
    %c0_0 = arith.constant 0 : index
    %0 = vector.load %arg2[%c0, %c0_0] : memref<16x32xf32, #tpu.memory_space<vmem>>, vector<16x32xf32>
    %1 = arith.truncf %0 : vector<16x32xf32> to vector<16x32xbf16>
    %c0_1 = arith.constant 0 : index
    %c0_2 = arith.constant 0 : index
    %2 = vector.load %arg3[%c0_1, %c0_2] : memref<32x100xbf16, #tpu.memory_space<vmem>>, vector<32x100xbf16>
    %cst = arith.constant dense<0.000000e+00> : vector<16x100xf32>
    %3 = tpu.matmul %1, %2, %cst {dimension_numbers = #tpu.dot_dimension_numbers<[1], [0], [0], [1], [0, 0, 1, 1], [], []>} : vector<16x32xbf16>, vector<32x100xbf16>, vector<16x100xf32> -> vector<16x100xf32>
    %c0_3 = arith.constant 0 : index
    %c0_4 = arith.constant 0 : index
    %4 = vector.load %arg4[%c0_3, %c0_4] : memref<1x100xf32, #tpu.memory_space<vmem>>, vector<1x100xf32>
    %5 = vector.broadcast %4 : vector<1x100xf32> to vector<16x100xf32>
    %6 = arith.addf %3, %5 : vector<16x100xf32>
    %c0_5 = arith.constant 0 : index
    %c0_6 = arith.constant 0 : index
    %7 = vector.load %arg5[%c0_5, %c0_6] : memref<16x100xf32, #tpu.memory_space<vmem>>, vector<16x100xf32>
    tpu.vector_store %arg5[%c0_5, %c0_6], %6 {strides = array<i32>} : memref<16x100xf32, #tpu.memory_space<vmem>>, vector<16x100xf32>,
    return
  }
  func.func @transform_0(%arg0: i32, %arg1: i32) -> (i32, i32) {
    %c0_i32 = arith.constant 0 : i32
    %c0_i32_0 = arith.constant 0 : i32
    return %arg0, %c0_i32 : i32, i32
  }
  func.func @transform_1(%arg0: i32, %arg1: i32) -> (i32, i32) {
    %c0_i32 = arith.constant 0 : i32
    %c0_i32_0 = arith.constant 0 : i32
    return %c0_i32, %arg1 : i32, i32
  }
  func.func @transform_2(%arg0: i32, %arg1: i32) -> (i32, i32) {
    %c0_i32 = arith.constant 0 : i32
    %c0_i32_0 = arith.constant 0 : i32
    return %c0_i32, %arg1 : i32, i32
  }
  func.func @transform_3(%arg0: i32, %arg1: i32) -> (i32, i32) {
    %c0_i32 = arith.constant 0 : i32
    return %arg0, %arg1 : i32, i32
  }
}

module attributes {stable_mosaic.version = 11 : i64} {
  func.func @_ffn_res_ln_kernel(%arg0: i32, %arg1: memref<16x32xf32, #tpu.memory_space<vmem>>, %arg2: memref<32x64xbf16, #tpu.memory_space<vmem>>, %arg3: memref<1x64xf32, #tpu.memory_space<vmem>>, %arg4: memref<64x32xbf16, #tpu.memory_space<vmem>>, %arg5: memref<1x32xf32, #tpu.memory_space<vmem>>, %arg6: memref<1x32xf32, #tpu.memory_space<vmem>>, %arg7: memref<1x32xf32, #tpu.memory_space<vmem>>, %arg8: memref<16x32xf32, #tpu.memory_space<vmem>>) attributes {dimension_semantics = [#tpu.dimension_semantics<parallel>], iteration_bounds = array<i64: 1>, scalar_prefetch = 0 : i64, scratch_operands = 0 : i64, tpu.core_type = #tpu.core_type<tc>, window_params = [{transform_indices = @transform_0, window_bounds = array<i64: 16, 32>}, {pipeline_mode = #tpu.pipeline_mode<synchronous>, transform_indices = @transform_1, window_bounds = array<i64: 32, 64>}, {pipeline_mode = #tpu.pipeline_mode<synchronous>, transform_indices = @transform_2, window_bounds = array<i64: 1, 64>}, {pipeline_mode = #tpu.pipeline_mode<synchronous>, transform_indices = @transform_3, window_bounds = array<i64: 64, 32>}, {pipeline_mode = #tpu.pipeline_mode<synchronous>, transform_indices = @transform_4, window_bounds = array<i64: 1, 32>}, {pipeline_mode = #tpu.pipeline_mode<synchronous>, transform_indices = @transform_5, window_bounds = array<i64: 1, 32>}, {pipeline_mode = #tpu.pipeline_mode<synchronous>, transform_indices = @transform_6, window_bounds = array<i64: 1, 32>}, {transform_indices = @transform_7, window_bounds = array<i64: 16, 32>}]} {
    %c0 = arith.constant 0 : index
    %c0_0 = arith.constant 0 : index
    %0 = vector.load %arg1[%c0, %c0_0] : memref<16x32xf32, #tpu.memory_space<vmem>>, vector<16x32xf32>
    %1 = arith.truncf %0 : vector<16x32xf32> to vector<16x32xbf16>
    %c0_1 = arith.constant 0 : index
    %c0_2 = arith.constant 0 : index
    %2 = vector.load %arg2[%c0_1, %c0_2] : memref<32x64xbf16, #tpu.memory_space<vmem>>, vector<32x64xbf16>
    %cst = arith.constant dense<0.000000e+00> : vector<16x64xf32>
    %3 = tpu.matmul %1, %2, %cst {dimension_numbers = #tpu.dot_dimension_numbers<[1], [0], [0], [1], [0, 0, 1, 1], [], []>} : vector<16x32xbf16>, vector<32x64xbf16>, vector<16x64xf32> -> vector<16x64xf32>
    %c0_3 = arith.constant 0 : index
    %c0_4 = arith.constant 0 : index
    %4 = vector.load %arg3[%c0_3, %c0_4] : memref<1x64xf32, #tpu.memory_space<vmem>>, vector<1x64xf32>
    %5 = vector.broadcast %4 : vector<1x64xf32> to vector<16x64xf32>
    %6 = arith.addf %3, %5 : vector<16x64xf32>
    %cst_5 = arith.constant 0.000000e+00 : f32
    %7 = vector.broadcast %cst_5 : f32 to vector<16x64xf32>
    %8 = arith.maximumf %6, %7 : vector<16x64xf32>
    %9 = arith.truncf %8 : vector<16x64xf32> to vector<16x64xbf16>
    %c0_6 = arith.constant 0 : index
    %c0_7 = arith.constant 0 : index
    %10 = vector.load %arg4[%c0_6, %c0_7] : memref<64x32xbf16, #tpu.memory_space<vmem>>, vector<64x32xbf16>
    %cst_8 = arith.constant dense<0.000000e+00> : vector<16x32xf32>
    %11 = tpu.matmul %9, %10, %cst_8 {dimension_numbers = #tpu.dot_dimension_numbers<[1], [0], [0], [1], [0, 0, 1, 1], [], []>} : vector<16x64xbf16>, vector<64x32xbf16>, vector<16x32xf32> -> vector<16x32xf32>
    %c0_9 = arith.constant 0 : index
    %c0_10 = arith.constant 0 : index
    %12 = vector.load %arg5[%c0_9, %c0_10] : memref<1x32xf32, #tpu.memory_space<vmem>>, vector<1x32xf32>
    %13 = vector.broadcast %12 : vector<1x32xf32> to vector<16x32xf32>
    %14 = arith.addf %11, %13 : vector<16x32xf32>
    %15 = arith.addf %14, %0 : vector<16x32xf32>
    %cst_11 = arith.constant dense<0.000000e+00> : vector<16xf32>
    %16 = vector.multi_reduction <add>, %15, %cst_11 [1] : vector<16x32xf32> to vector<16xf32>
    %17 = vector.shape_cast %16 : vector<16xf32> to vector<16x1xf32>
    %cst_12 = arith.constant 3.200000e+01 : f32
    %18 = vector.broadcast %cst_12 : f32 to vector<16x1xf32>
    %19 = arith.divf %17, %18 : vector<16x1xf32>
    %20 = vector.broadcast %19 : vector<16x1xf32> to vector<16x32xf32>
    %21 = arith.subf %15, %20 : vector<16x32xf32>
    %22 = arith.mulf %21, %21 : vector<16x32xf32>
    %cst_13 = arith.constant dense<0.000000e+00> : vector<16xf32>
    %23 = vector.multi_reduction <add>, %22, %cst_13 [1] : vector<16x32xf32> to vector<16xf32>
    %24 = vector.shape_cast %23 : vector<16xf32> to vector<16x1xf32>
    %cst_14 = arith.constant 3.200000e+01 : f32
    %25 = vector.broadcast %cst_14 : f32 to vector<16x1xf32>
    %26 = arith.divf %24, %25 : vector<16x1xf32>
    %27 = vector.broadcast %19 : vector<16x1xf32> to vector<16x32xf32>
    %28 = arith.subf %15, %27 : vector<16x32xf32>
    %cst_15 = arith.constant 9.99999974E-6 : f32
    %29 = vector.broadcast %cst_15 : f32 to vector<16x1xf32>
    %30 = arith.addf %26, %29 : vector<16x1xf32>
    %31 = math.rsqrt %30 : vector<16x1xf32>
    %32 = vector.broadcast %31 : vector<16x1xf32> to vector<16x32xf32>
    %33 = arith.mulf %28, %32 : vector<16x32xf32>
    %c0_16 = arith.constant 0 : index
    %c0_17 = arith.constant 0 : index
    %34 = vector.load %arg6[%c0_16, %c0_17] : memref<1x32xf32, #tpu.memory_space<vmem>>, vector<1x32xf32>
    %35 = vector.broadcast %34 : vector<1x32xf32> to vector<16x32xf32>
    %36 = arith.mulf %33, %35 : vector<16x32xf32>
    %c0_18 = arith.constant 0 : index
    %c0_19 = arith.constant 0 : index
    %37 = vector.load %arg7[%c0_18, %c0_19] : memref<1x32xf32, #tpu.memory_space<vmem>>, vector<1x32xf32>
    %38 = vector.broadcast %37 : vector<1x32xf32> to vector<16x32xf32>
    %39 = arith.addf %36, %38 : vector<16x32xf32>
    %c0_20 = arith.constant 0 : index
    %c0_21 = arith.constant 0 : index
    %40 = vector.load %arg8[%c0_20, %c0_21] : memref<16x32xf32, #tpu.memory_space<vmem>>, vector<16x32xf32>
    tpu.vector_store %arg8[%c0_20, %c0_21], %39 {strides = array<i32>} : memref<16x32xf32, #tpu.memory_space<vmem>>, vector<16x32xf32>,
    return
  }
  func.func @transform_0(%arg0: i32) -> (i32, i32) {
    %c0_i32 = arith.constant 0 : i32
    %c0_i32_0 = arith.constant 0 : i32
    return %arg0, %c0_i32 : i32, i32
  }
  func.func @transform_1(%arg0: i32) -> (i32, i32) {
    %c0_i32 = arith.constant 0 : i32
    %c0_i32_0 = arith.constant 0 : i32
    %c0_i32_1 = arith.constant 0 : i32
    return %c0_i32, %c0_i32_0 : i32, i32
  }
  func.func @transform_2(%arg0: i32) -> (i32, i32) {
    %c0_i32 = arith.constant 0 : i32
    %c0_i32_0 = arith.constant 0 : i32
    %c0_i32_1 = arith.constant 0 : i32
    return %c0_i32, %c0_i32_0 : i32, i32
  }
  func.func @transform_3(%arg0: i32) -> (i32, i32) {
    %c0_i32 = arith.constant 0 : i32
    %c0_i32_0 = arith.constant 0 : i32
    %c0_i32_1 = arith.constant 0 : i32
    return %c0_i32, %c0_i32_0 : i32, i32
  }
  func.func @transform_4(%arg0: i32) -> (i32, i32) {
    %c0_i32 = arith.constant 0 : i32
    %c0_i32_0 = arith.constant 0 : i32
    %c0_i32_1 = arith.constant 0 : i32
    return %c0_i32, %c0_i32_0 : i32, i32
  }
  func.func @transform_5(%arg0: i32) -> (i32, i32) {
    %c0_i32 = arith.constant 0 : i32
    %c0_i32_0 = arith.constant 0 : i32
    %c0_i32_1 = arith.constant 0 : i32
    return %c0_i32, %c0_i32_0 : i32, i32
  }
  func.func @transform_6(%arg0: i32) -> (i32, i32) {
    %c0_i32 = arith.constant 0 : i32
    %c0_i32_0 = arith.constant 0 : i32
    %c0_i32_1 = arith.constant 0 : i32
    return %c0_i32, %c0_i32_0 : i32, i32
  }
  func.func @transform_7(%arg0: i32) -> (i32, i32) {
    %c0_i32 = arith.constant 0 : i32
    %c0_i32_0 = arith.constant 0 : i32
    return %arg0, %c0_i32 : i32, i32
  }
}

</mosaic_0001>

<bundles_post_ra>
// kernel: forward.27
= control target key start
LH: loop header
LB: loop body
LE: loop exit
PB: predicated region body
PF: predicated region fallthrough
CT: control target
= control target key end

     0   :  { %v112_v0 = vmov 0.0   ;;  %vm113_vm0 = vmmov 0   ;;  %vm41_vm1 = vcmask 261120   ;;  %vm86_vm2 = vcmask 785408   ;;  %s155_s1 = inlined_call_operand.vmem [shape: bf16[32,96], index: 1, kind: input, shape index: {}]   ;;  %s156_s0 = inlined_call_operand.vmem [shape: f32[16,32], index: 0, kind: input, shape index: {}]   ;;  %s157_s2 = inlined_call_operand.vmem [shape: f32[1,96], index: 2, kind: input, shape index: {}]   ;;  %s158_s3 = inlined_call_operand.vmem [shape: f32[16,96], index: 3, kind: output, shape index: {}]  }
   0x1   :  { %100 = vmatprep.subr.bf16.mxu0 %v112_v0  ;;  %v110_v1 = vld [vmem:[%s155_s1 + $0x8] sm:$0xff]   ;;  %104 = vmatprep.mubr.msk.bf16.mxu0 %vm113_vm0, %v112_v0  ;;  %v111_v2 = vld [vmem:[%s155_s1] sm:$0xff]  }
   0x2   :  { %101 = vmatpush3.bf16.msra.mxu0 %v110_v1  ;;  %v15_v3 = vld [vmem:[%s156_s0] sm:$0xff]  ;;  %v16_v4 = vld [vmem:[%s156_s0 + $0x8] sm:$0xff] }
   0x3   :  { %102 = vmatprep.subr.bf16.mxu0 %v112_v0  ;;  %v17_v5 = vpack.c.bf16 %v16_v4, %v15_v3  ;;  %v93_v6 = vld [vmem:[%s157_s2] ss:$0 sm:$0xff] }
   0x6   :  { %103 = vmatpush3.bf16.msra.mxu0 %v111_v2 }
   0x9   :  { %105 = vmatmul.mubr.msk.bf16.vlgmr.msra.gmra.mxu0 %vm41_vm1, %v17_v5 }
  0xc9   :  { %v79_v7 = vpop.f32.mrf.mxu0 }
  0xca   :  { %v80_v8 = vadd.f32 %v93_v6, %v79_v7 }
  0xcb   :  { %v106_v9 = vpop.f32.mrf.mxu0 }
  0xcc   :  { %87 = vst.msk [vmem:[%s158_s3] sm:$0xff] %vm86_vm2, %v80_v8 }
  0xcd   :  { %v82_v10 = vpop.f32.mrf.mxu0 }
  0xce   :  { %v83_v11 = vadd.f32 %v93_v6, %v82_v10 }
  0xcf   :  { %v107_v12 = vpop.f32.mrf.mxu0 }
  0xd0   :  { %88 = vst.msk [vmem:[%s158_s3 + $0x8] sm:$0xff] %vm86_vm2, %v83_v11 }

// kernel: forward.26
= control target key start
LH: loop header
LB: loop body
LE: loop exit
PB: predicated region body
PF: predicated region fallthrough
CT: control target
= control target key end

     0   :  { %vm23_vm0 = vcmask 261120   ;;  %v168_v14 = vmov 0.0   ;;  %vm169_vm1 = vmmov 0   ;;  %s234_s0 = inlined_call_operand.vmem [shape: f32[16,32], index: 0, kind: input, shape index: {}]   ;;  %s235_s3 = inlined_call_operand.vmem [shape: bf16[32,32], index: 3, kind: input, shape index: {}]   ;;  %s236_s1 = inlined_call_operand.vmem [shape: f32[1,32], index: 1, kind: input, shape index: {}]   ;;  %s237_s2 = inlined_call_operand.vmem [shape: f32[1,32], index: 2, kind: input, shape index: {}]   ;;  %s238_s4 = inlined_call_operand.vmem [shape: f32[1,32], index: 4, kind: input, shape index: {}]   ;;  %s239_s5 = inlined_call_operand.vmem [shape: f32[16,32], index: 5, kind: output, shape index: {}]  }
   0x1   :  { %v21_v0 = vld [vmem:[%s234_s0] sm:$0xff]  ;;  %v22_v1 = vld [vmem:[%s234_s0 + $0x8] sm:$0xff]  ;;  %152 = vmatprep.subr.bf16.mxu0 %v168_v14  ;;  %156 = vmatprep.mubr.msk.bf16.mxu0 %vm169_vm1, %v168_v14 }
   0x2   :  { %v24_v2 = vsel %vm23_vm0, %v21_v0, 0.0  ;;  %v27_v3 = vsel %vm23_vm0, %v22_v1, 0.0  ;;  %v162_v15 = vld [vmem:[%s235_s3 + $0x8] sm:$0xff]   ;;  %v163_v16 = vld [vmem:[%s235_s3] sm:$0xff]  }
   0x3   :  { %25 = vadd.xlane.f32.xlu0 %v24_v2  ;;  %153 = vmatpush3.bf16.msra.mxu0 %v162_v15  ;;  %v143_v25 = vld [vmem:[%s236_s1] ss:$0 sm:$0xff] }
   0x4   :  { %154 = vmatprep.subr.bf16.mxu0 %v168_v14  ;;  %v144_v29 = vld [vmem:[%s237_s2] ss:$0 sm:$0xff] }
   0x5   :  { %v145_v34 = vld [vmem:[%s238_s4] ss:$0 sm:$0xff] }
   0x7   :  { %28 = vadd.xlane.f32.xlu0 %v27_v3  ;;  %155 = vmatpush3.bf16.msra.mxu0 %v163_v16 }
  0x8c   :  { %v26_v4 = vpop.xlane.xlu0 %25 }
  0x8d   :  { %v31_v5 = vmul.f32 0.03125, %v26_v4 }
  0x8f   :  { %v33_v6 = vsub.f32 %v21_v0, %v31_v5 }
  0x90   :  { %v29_v7 = vpop.xlane.xlu0 %28 }
  0x91   :  { %v32_v8 = vmul.f32 0.03125, %v29_v7  ;;  %v35_v9 = vmul.f32 %v33_v6, %v33_v6 }
  0x93   :  { %v34_v10 = vsub.f32 %v22_v1, %v32_v8  ;;  %v37_v11 = vsel %vm23_vm0, %v35_v9, 0.0 }
  0x94   :  { %38 = vadd.xlane.f32.xlu1 %v37_v11 }
  0x95   :  { %v36_v12 = vmul.f32 %v34_v10, %v34_v10 }
  0x97   :  { %v40_v13 = vsel %vm23_vm0, %v36_v12, 0.0 }
  0x98   :  { %41 = vadd.xlane.f32.xlu1 %v40_v13 }
 0x11d   :  { %v39_v17 = vpop.xlane.xlu1 %38 }
 0x11e   :  { %v43_v18 = vmul.f32 0.03125, %v39_v17 }
 0x120   :  { %v45_v19 = vadd.f32 1e-12, %v43_v18 }
 0x121   :  { %v42_v20 = vpop.xlane.xlu1 %41 }
 0x122   :  { %164 = vrsqrt.f32 %v45_v19  ;;  %v44_v21 = vmul.f32 0.03125, %v42_v20 }
 0x124   :  { %v46_v22 = vadd.f32 1e-12, %v44_v21 }
 0x126   :  { %166 = vrsqrt.f32 %v46_v22 }
 0x12f   :  { %v165_v23 = vpop.eup %164 }
 0x130   :  { %v49_v24 = vmul.f32 %v165_v23, %v33_v6 }
 0x132   :  { %v58_v28 = vmul.f32 %v143_v25, %v49_v24 }
 0x133   :  { %v167_v26 = vpop.eup %166 }
 0x134   :  { %v50_v27 = vmul.f32 %v167_v26, %v34_v10  ;;  %v67_v31 = vadd.f32 %v144_v29, %v58_v28 }
 0x136   :  { %v59_v30 = vmul.f32 %v143_v25, %v50_v27 }
 0x138   :  { %v68_v32 = vadd.f32 %v144_v29, %v59_v30 }
 0x13a   :  { %v69_v33 = vpack.c.bf16 %v68_v32, %v67_v31 }
 0x13c   :  { %157 = vmatmul.mubr.msk.bf16.vlgmr.msra.gmra.mxu0 %vm23_vm0, %v69_v33 }
 0x1fc   :  { %v130_v35 = vpop.f32.mrf.mxu0 }
 0x1fd   :  { %v131_v36 = vadd.f32 %v145_v34, %v130_v35 }
 0x1fe   :  { %v158_v37 = vpop.f32.mrf.mxu0 }
 0x1ff   :  { %137 = vst.msk [vmem:[%s239_s5] sm:$0xff] %vm23_vm0, %v131_v36 }
 0x200   :  { %v133_v38 = vpop.f32.mrf.mxu0 }
 0x201   :  { %v134_v39 = vadd.f32 %v145_v34, %v133_v38 }
 0x202   :  { %v159_v40 = vpop.f32.mrf.mxu0 }
 0x203   :  { %138 = vst.msk [vmem:[%s239_s5 + $0x8] sm:$0xff] %vm23_vm0, %v134_v39 }

// kernel: forward.29
= control target key start
LH: loop header
LB: loop body
LE: loop exit
PB: predicated region body
PF: predicated region fallthrough
CT: control target
= control target key end

     0   :  { %v175_v0 = vmov 0.0   ;;  %vm176_vm0 = vmmov 0   ;;  %vm50_vm1 = vcmask 261120   ;;  %s252_s1 = inlined_call_operand.vmem [shape: bf16[32,32], index: 1, kind: input, shape index: {}]   ;;  %s253_s0 = inlined_call_operand.vmem [shape: f32[16,32], index: 0, kind: input, shape index: {}]   ;;  %s254_s2 = inlined_call_operand.vmem [shape: f32[1,32], index: 2, kind: input, shape index: {}]   ;;  %s255_s3 = inlined_call_operand.vmem [shape: f32[16,32], index: 3, kind: input, shape index: {}]   ;;  %s256_s4 = inlined_call_operand.vmem [shape: f32[1,32], index: 4, kind: input, shape index: {}]   ;;  %s257_s5 = inlined_call_operand.vmem [shape: f32[1,32], index: 5, kind: input, shape index: {}]   ;;  %s258_s6 = inlined_call_operand.vmem [shape: f32[16,32], index: 6, kind: output, shape index: {}]  }
   0x1   :  { %159 = vmatprep.subr.bf16.mxu0 %v175_v0  ;;  %v169_v1 = vld [vmem:[%s252_s1 + $0x8] sm:$0xff]   ;;  %163 = vmatprep.mubr.msk.bf16.mxu0 %vm176_vm0, %v175_v0  ;;  %v170_v2 = vld [vmem:[%s252_s1] sm:$0xff]  }
   0x2   :  { %160 = vmatpush3.bf16.msra.mxu0 %v169_v1  ;;  %v24_v3 = vld [vmem:[%s253_s0] sm:$0xff]  ;;  %v25_v4 = vld [vmem:[%s253_s0 + $0x8] sm:$0xff] }
   0x3   :  { %161 = vmatprep.subr.bf16.mxu0 %v175_v0  ;;  %v26_v5 = vpack.c.bf16 %v25_v4, %v24_v3  ;;  %v150_v6 = vld [vmem:[%s254_s2] ss:$0 sm:$0xff]  ;;  %v96_v13 = vld [vmem:[%s255_s3 + $0x8] sm:$0xff] }
   0x4   :  { %v95_v8 = vld [vmem:[%s255_s3] sm:$0xff] }
   0x5   :  { %v154_v36 = vld [vmem:[%s256_s4] ss:$0 sm:$0xff] }
   0x6   :  { %162 = vmatpush3.bf16.msra.mxu0 %v170_v2  ;;  %v155_v38 = vld [vmem:[%s257_s5] ss:$0 sm:$0xff] }
   0x9   :  { %164 = vmatmul.mubr.msk.bf16.vlgmr.msra.gmra.mxu0 %vm50_vm1, %v26_v5 }
  0xc9   :  { %v88_v7 = vpop.f32.mrf.mxu0 }
  0xca   :  { %v89_v9 = vadd.f32 %v150_v6, %v88_v7 }
  0xcb   :  { %v165_v10 = vpop.f32.mrf.mxu0 }
  0xcc   :  { %v97_v11 = vadd.f32 %v95_v8, %v89_v9 }
  0xcd   :  { %v91_v12 = vpop.f32.mrf.mxu0 }
  0xce   :  { %v92_v14 = vadd.f32 %v150_v6, %v91_v12  ;;  %v99_v15 = vsel %vm50_vm1, %v97_v11, 0.0 }
  0xcf   :  { %100 = vadd.xlane.f32.xlu0 %v99_v15  ;;  %v166_v16 = vpop.f32.mrf.mxu0 }
  0xd0   :  { %v98_v17 = vadd.f32 %v96_v13, %v92_v14 }
  0xd2   :  { %v102_v18 = vsel %vm50_vm1, %v98_v17, 0.0 }
  0xd3   :  { %103 = vadd.xlane.f32.xlu0 %v102_v18 }
 0x158   :  { %v101_v19 = vpop.xlane.xlu0 %100 }
 0x159   :  { %v106_v20 = vmul.f32 0.03125, %v101_v19 }
 0x15b   :  { %v108_v21 = vsub.f32 %v97_v11, %v106_v20 }
 0x15c   :  { %v104_v22 = vpop.xlane.xlu0 %103 }
 0x15d   :  { %v107_v23 = vmul.f32 0.03125, %v104_v22  ;;  %v110_v24 = vmul.f32 %v108_v21, %v108_v21 }
 0x15f   :  { %v109_v25 = vsub.f32 %v98_v17, %v107_v23  ;;  %v112_v26 = vsel %vm50_vm1, %v110_v24, 0.0 }
 0x160   :  { %113 = vadd.xlane.f32.xlu1 %v112_v26 }
 0x161   :  { %v111_v27 = vmul.f32 %v109_v25, %v109_v25 }
 0x163   :  { %v115_v28 = vsel %vm50_vm1, %v111_v27, 0.0 }
 0x164   :  { %116 = vadd.xlane.f32.xlu1 %v115_v28 }
 0x1e9   :  { %v114_v29 = vpop.xlane.xlu1 %113 }
 0x1ea   :  { %v118_v30 = vmul.f32 0.03125, %v114_v29 }
 0x1ec   :  { %v120_v31 = vadd.f32 1e-05, %v118_v30 }
 0x1ed   :  { %v117_v32 = vpop.xlane.xlu1 %116 }
 0x1ee   :  { %171 = vrsqrt.f32 %v120_v31  ;;  %v119_v33 = vmul.f32 0.03125, %v117_v32 }
 0x1f0   :  { %v121_v34 = vadd.f32 1e-05, %v119_v33 }
 0x1f2   :  { %173 = vrsqrt.f32 %v121_v34 }
 0x1fb   :  { %v172_v35 = vpop.eup %171 }
 0x1fc   :  { %v124_v37 = vmul.f32 %v172_v35, %v108_v21 }
 0x1fe   :  { %v133_v39 = vmul.f32 %v154_v36, %v124_v37 }
 0x1ff   :  { %v174_v40 = vpop.eup %173 }
 0x200   :  { %v142_v41 = vadd.f32 %v155_v38, %v133_v39  ;;  %v125_v42 = vmul.f32 %v174_v40, %v109_v25 }
 0x202   :  { %144 = vst.msk [vmem:[%s258_s6] sm:$0xff] %vm50_vm1, %v142_v41  ;;  %v134_v43 = vmul.f32 %v154_v36, %v125_v42 }
 0x204   :  { %v143_v44 = vadd.f32 %v155_v38, %v134_v43 }
 0x206   :  { %145 = vst.msk [vmem:[%s258_s6 + $0x8] sm:$0xff] %vm50_vm1, %v143_v44 }

// kernel: forward.28
= control target key start
LH: loop header
LB: loop body
LE: loop exit
PB: predicated region body
PF: predicated region fallthrough
CT: control target
= control target key end

     0   :  { %s899_s12 = smov 0   ;;  %s980_s0 = inlined_call_operand.vmem [shape: f32[2,4,8,8], index: 0, kind: input, shape index: {}]   ;;  %s981_s1 = inlined_call_operand.vmem [shape: f32[2,4,8,8], index: 1, kind: input, shape index: {}]   ;;  %s982_s2 = inlined_call_operand.vmem [shape: f32[2,4,8,8], index: 2, kind: input, shape index: {}]   ;;  %s983_s3 = inlined_call_operand.vmem [shape: f32[2,4,8,8], index: 3, kind: output, shape index: {}]  }
   0x1 LB: > { %s752_s13 = sadd.s32 4294967295, %s875_s12   ;;  %p756_p0 = scmp.ge.s32.totalorder %s875_s12, 1  ;;  %s875_s12 = sphi %s899_s12, %s13_s12  }
   0x2   : > { %p157_p1 = scmp.lt.s32.totalorder %s875_s12, 3 }
   0x4   : > { %p158_p2 = pnand %p756_p0, %p157_p1 }
   0x5   : > { %p191_p3 = scmp.lt.s32.totalorder (!%p158_p2), %s752_s13, 1 }
   0x6   : > { %161 = sbr.rel (%p158_p2) target bundleno = 744 (0x2e8), region = 32 }
   0xb   : > { %v877_v0 = vmov 0.0   ;;  %s985_s13 = smov (!%p191_p3, %s752_s13), 1  ;;  %vm878_vm0 = vmmov 0   ;;  %vm240_vm1 = vcmask 64512   ;;  %v425_v25 = vlaneseq }
   0xc   : > { %795 = vmatprep.subr.bf16.mxu0 %v877_v0  ;;  %801 = vmatprep.subr.bf16.mxu1 %v877_v0  ;;  %s913_s14 = sshll.u32 %s985_s13, 5  ;;  %vm487_vm3 = vcmask 1043456  }
   0xd   : > { %797 = vmatprep.mubr.msk.bf16.mxu0 %vm878_vm0, %v877_v0  ;;  %803 = vmatprep.mubr.msk.bf16.mxu1 %vm878_vm0, %v877_v0  ;;  %s200_s17 = scalar_lea.vmem %s981_s1, %s913_s14  ;;  %s195_s20 = scalar_lea.vmem %s980_s0, %s913_s14  ;;  %v426_v26 = vshrl.u32 %v425_v25, 7  ;;  %v428_v27 = vand.u32 127, %v425_v25 }
   0xe   : > { %v224_v1 = vld [vmem:[%s200_s17] sm:$0xff]  ;;  %v225_v2 = vld [vmem:[%s200_s17 + $0x8] sm:$0xff]  ;;  %v226_v7 = vld [vmem:[%s200_s17 + $0x10] sm:$0xff]  ;;  %s205_s23 = scalar_lea.vmem %s982_s2, %s913_s14  ;;  %s210_s26 = scalar_lea.vmem %s983_s3, %s913_s14 }
   0xf   : > { %v212_v3 = vld [vmem:[%s195_s20] sm:$0xff]  ;;  %v228_v4 = vpack.c.bf16 %v224_v1, %v224_v1  ;;  %v229_v5 = vpack.c.bf16 %v225_v2, %v225_v2  ;;  %v213_v6 = vld [vmem:[%s195_s20 + $0x8] sm:$0xff]  ;;  %v227_v8 = vld [vmem:[%s200_s17 + $0x18] sm:$0xff]  ;;  %v230_v13 = vpack.c.bf16 %v226_v7, %v226_v7  ;;  %vm429_vm2 = vcmp.gt.s32.totalorder %v428_v27, %v426_v26 }
  0x10   : > { %v216_v11 = vmul.f32 0.35355338, %v212_v3  ;;  %v217_v12 = vmul.f32 0.35355338, %v213_v6  ;;  %v231_v14 = vpack.c.bf16 %v227_v8, %v227_v8  ;;  %v214_v17 = vld [vmem:[%s195_s20 + $0x10] sm:$0xff]  ;;  %v215_v18 = vld [vmem:[%s195_s20 + $0x18] sm:$0xff] }
  0x11   : > { %v245_v9 = vsel %vm240_vm1, %v228_v4, 0  ;;  %v291_v10 = vsel %vm240_vm1, %v229_v5, 0  ;;  %v337_v19 = vsel %vm240_vm1, %v230_v13, 0  ;;  %v218_v21 = vmul.f32 0.35355338, %v214_v17 }
  0x12   : > { %796 = vmatpush3.bf16.xpose.msra.mxu0 %v245_v9  ;;  %802 = vmatpush3.bf16.xpose.msra.mxu1 %v291_v10  ;;  %v220_v15 = vpack.c.bf16 %v216_v11, %v216_v11  ;;  %v221_v16 = vpack.c.bf16 %v217_v12, %v217_v12  ;;  %v383_v20 = vsel %vm240_vm1, %v231_v14, 0  ;;  %v219_v22 = vmul.f32 0.35355338, %v215_v18  ;;  %v232_v9 = vld [vmem:[%s205_s23] sm:$0xff]  ;;  %v233_v11 = vld [vmem:[%s205_s23 + $0x8] sm:$0xff]  ;;  %v235_v18 = vld [vmem:[%s205_s23 + $0x18] sm:$0xff] }
  0x13   : > { %807 = vmatprep.subr.bf16.mxu0 %v877_v0  ;;  %813 = vmatprep.subr.bf16.mxu1 %v877_v0  ;;  %v222_v23 = vpack.c.bf16 %v218_v21, %v218_v21  ;;  %v236_v10 = vpack.c.bf16 %v232_v9, %v232_v9  ;;  %v237_v12 = vpack.c.bf16 %v233_v11, %v233_v11 }
  0x14   : > { %v223_v24 = vpack.c.bf16 %v219_v22, %v219_v22 }
  0x15   : > { %v489_v13 = vsel %vm487_vm3, %v236_v10, 0  ;;  %v535_v14 = vsel %vm487_vm3, %v237_v12, 0 }
  0x19   : > { %798 = vmatmul.mubr.msk.bf16.vlgmr.msra.gmra.mxu0 %vm240_vm1, %v220_v15  ;;  %804 = vmatmul.mubr.msk.bf16.vlgmr.msra.gmra.mxu1 %vm240_vm1, %v221_v16  ;;  %v234_v15 = vld [vmem:[%s205_s23 + $0x10] sm:$0xff] }
  0x1a   : > { %808 = vmatpush3.bf16.xpose.msra.mxu0 %v337_v19  ;;  %814 = vmatpush3.bf16.xpose.msra.mxu1 %v383_v20  ;;  %v238_v16 = vpack.c.bf16 %v234_v15, %v234_v15  ;;  %v239_v19 = vpack.c.bf16 %v235_v18, %v235_v18 }
  0x1b   : > { %809 = vmatprep.mubr.msk.bf16.mxu0 %vm878_vm0, %v877_v0  ;;  %815 = vmatprep.mubr.msk.bf16.mxu1 %vm878_vm0, %v877_v0 }
  0x1c   : > { %819 = vmatprep.subr.bf16.mxu0 %v877_v0  ;;  %825 = vmatprep.subr.bf16.mxu1 %v877_v0  ;;  %v581_v17 = vsel %vm487_vm3, %v238_v16, 0  ;;  %v627_v20 = vsel %vm487_vm3, %v239_v19, 0 }
  0x21   : > { %810 = vmatmul.mubr.msk.bf16.vlgmr.msra.gmra.mxu0 %vm240_vm1, %v222_v23  ;;  %816 = vmatmul.mubr.msk.bf16.vlgmr.msra.gmra.mxu1 %vm240_vm1, %v223_v24 }
  0x22   : > { %821 = vmatprep.mubr.msk.bf16.mxu0 %vm878_vm0, %v877_v0  ;;  %827 = vmatprep.mubr.msk.bf16.mxu1 %vm878_vm0, %v877_v0 }
  0x23   : > { %820 = vmatpush3.bf16.msra.mxu0 %v489_v13  ;;  %826 = vmatpush3.bf16.msra.mxu1 %v535_v14 }
  0x24   : > { %831 = vmatprep.subr.bf16.mxu0 %v877_v0  ;;  %837 = vmatprep.subr.bf16.mxu1 %v877_v0 }
  0xd9   : > { %v281_v28 = vpop.f32.mrf.mxu0  ;;  %v327_v29 = vpop.f32.mrf.mxu1 }
  0xda   : > { %v432_v30 = vsel %vm429_vm2, -1e+09, %v281_v28  ;;  %v433_v31 = vsel %vm429_vm2, -1e+09, %v327_v29 }
  0xdb   : > { %v799_v32 = vpop.f32.mrf.mxu0  ;;  %v805_v33 = vpop.f32.mrf.mxu1  ;;  %v436_v34 = vsel %vm240_vm1, %v432_v30, -inf  ;;  %v439_v37 = vsel %vm240_vm1, %v433_v31, -inf }
  0xdc   : > { %437 = vmax.xlane.f32.xlu0 %v436_v34 }
  0xdd   : > { %v284_v35 = vpop.f32.mrf.mxu0  ;;  %v330_v36 = vpop.f32.mrf.mxu1 }
  0xdf   : > { %v800_v38 = vpop.f32.mrf.mxu0  ;;  %v806_v39 = vpop.f32.mrf.mxu1 }
  0xe0   : > { %440 = vmax.xlane.f32.xlu0 %v439_v37 }
  0xe1   : > { %v373_v40 = vpop.f32.mrf.mxu0  ;;  %v419_v41 = vpop.f32.mrf.mxu1 }
  0xe2   : > { %v434_v42 = vsel %vm429_vm2, -1e+09, %v373_v40  ;;  %v435_v43 = vsel %vm429_vm2, -1e+09, %v419_v41 }
  0xe3   : > { %v811_v44 = vpop.f32.mrf.mxu0  ;;  %v817_v45 = vpop.f32.mrf.mxu1  ;;  %v442_v46 = vsel %vm240_vm1, %v434_v42, -inf  ;;  %v445_v49 = vsel %vm240_vm1, %v435_v43, -inf }
  0xe4   : > { %443 = vmax.xlane.f32.xlu1 %v442_v46 }
  0xe5   : > { %v376_v47 = vpop.f32.mrf.mxu0  ;;  %v422_v48 = vpop.f32.mrf.mxu1 }
  0xe7   : > { %v812_v50 = vpop.f32.mrf.mxu0  ;;  %v818_v51 = vpop.f32.mrf.mxu1 }
  0xe8   : > { %446 = vmax.xlane.f32.xlu1 %v445_v49 }
 0x165   : > { %v438_v52 = vpop.xlane.xlu0 %437 }
 0x166   : > { %v448_v53 = vsub.f32 %v432_v30, %v438_v52 }
 0x168   : > { %v452_v54 = vmul.f32 1.442695, %v448_v53 }
 0x169   : > { %v441_v55 = vpop.xlane.xlu0 %440 }
 0x16a   : > { %853 = vpow2.f32 %v452_v54  ;;  %v449_v56 = vsub.f32 %v433_v31, %v441_v55 }
 0x16c   : > { %v454_v57 = vmul.f32 1.442695, %v449_v56 }
 0x16d   : > { %v444_v58 = vpop.xlane.xlu1 %443 }
 0x16e   : > { %855 = vpow2.f32 %v454_v57  ;;  %v450_v59 = vsub.f32 %v434_v42, %v444_v58 }
 0x170   : > { %v456_v60 = vmul.f32 1.442695, %v450_v59 }
 0x171   : > { %v447_v61 = vpop.xlane.xlu1 %446 }
 0x172   : > { %857 = vpow2.f32 %v456_v60  ;;  %v451_v62 = vsub.f32 %v435_v43, %v447_v61 }
 0x174   : > { %v458_v63 = vmul.f32 1.442695, %v451_v62 }
 0x176   : > { %859 = vpow2.f32 %v458_v63 }
 0x177   : > { %v854_v1 = vpop.eup %853 }
 0x178   : > { %v460_v2 = vsel %vm240_vm1, %v854_v1, 0.0 }
 0x179   : > { %461 = vadd.xlane.f32.xlu0 %v460_v2 }
 0x17b   : > { %v856_v3 = vpop.eup %855 }
 0x17c   : > { %v463_v4 = vsel %vm240_vm1, %v856_v3, 0.0 }
 0x17d   : > { %464 = vadd.xlane.f32.xlu1 %v463_v4 }
 0x17f   : > { %v858_v5 = vpop.eup %857 }
 0x180   : > { %v466_v6 = vsel %vm240_vm1, %v858_v5, 0.0 }
 0x181   : > { %467 = vadd.xlane.f32.xlu0 %v466_v6 }
 0x183   : > { %v860_v7 = vpop.eup %859 }
 0x184   : > { %v469_v8 = vsel %vm240_vm1, %v860_v7, 0.0 }
 0x185   : > { %470 = vadd.xlane.f32.xlu1 %v469_v8 }
 0x202   : > { %v462_v21 = vpop.xlane.xlu0 %461 }
 0x203   : > { %861 = vrcp.f32 %v462_v21 }
 0x206   : > { %v465_v22 = vpop.xlane.xlu1 %464 }
 0x207   : > { %863 = vrcp.f32 %v465_v22 }
 0x20a   : > { %v468_v23 = vpop.xlane.xlu0 %467 }
 0x20b   : > { %865 = vrcp.f32 %v468_v23 }
 0x20e   : > { %v471_v24 = vpop.xlane.xlu1 %470 }
 0x20f   : > { %867 = vrcp.f32 %v471_v24 }
 0x210   : > { %v862_v25 = vpop.eup %861 }
 0x211   : > { %v476_v26 = vmul.f32 %v862_v25, %v854_v1 }
 0x213   : > { %v480_v27 = vpack.c.bf16 %v476_v26, %v476_v26 }
 0x214   : > { %v864_v28 = vpop.eup %863 }
 0x215   : > { %822 = vmatmul.mubr.msk.bf16.vlgmr.msra.gmra.mxu0 %vm240_vm1, %v480_v27  ;;  %v477_v29 = vmul.f32 %v864_v28, %v856_v3 }
 0x216   : > { %832 = vmatpush3.bf16.msra.mxu0 %v581_v17  ;;  %833 = vmatprep.mubr.msk.bf16.mxu0 %vm878_vm0, %v877_v0 }
 0x217   : > { %v481_v30 = vpack.c.bf16 %v477_v29, %v477_v29 }
 0x218   : > { %v866_v31 = vpop.eup %865 }
 0x219   : > { %828 = vmatmul.mubr.msk.bf16.vlgmr.msra.gmra.mxu1 %vm240_vm1, %v481_v30  ;;  %v478_v32 = vmul.f32 %v866_v31, %v858_v5 }
 0x21a   : > { %838 = vmatpush3.bf16.msra.mxu1 %v627_v20  ;;  %839 = vmatprep.mubr.msk.bf16.mxu1 %vm878_vm0, %v877_v0 }
 0x21b   : > { %v482_v33 = vpack.c.bf16 %v478_v32, %v478_v32 }
 0x21c   : > { %v868_v34 = vpop.eup %867 }
 0x21d   : > { %834 = vmatmul.mubr.msk.bf16.vlgmr.msra.gmra.mxu0 %vm240_vm1, %v482_v33  ;;  %v479_v35 = vmul.f32 %v868_v34, %v860_v7 }
 0x21f   : > { %v483_v36 = vpack.c.bf16 %v479_v35, %v479_v35 }
 0x221   : > { %840 = vmatmul.mubr.msk.bf16.vlgmr.msra.gmra.mxu1 %vm240_vm1, %v483_v36 }
 0x2d5   : > { %v525_v37 = vpop.f32.mrf.mxu0 }
 0x2d6   : > { %669 = vst.msk [vmem:[%s210_s26] sm:$0xff] %vm240_vm1, %v525_v37 }
 0x2d7   : > { %v823_v38 = vpop.f32.mrf.mxu0 }
 0x2d9   : > { %v528_v39 = vpop.f32.mrf.mxu0  ;;  %v571_v40 = vpop.f32.mrf.mxu1 }
 0x2da   : > { %670 = vst.msk [vmem:[%s210_s26 + $0x8] sm:$0xff] %vm240_vm1, %v571_v40 }
 0x2db   : > { %v824_v0 = vpop.f32.mrf.mxu0  ;;  %v829_v41 = vpop.f32.mrf.mxu1 }
 0x2dd   : > { %v574_v42 = vpop.f32.mrf.mxu1  ;;  %v617_v43 = vpop.f32.mrf.mxu0 }
 0x2de   : > { %671 = vst.msk [vmem:[%s210_s26 + $0x10] sm:$0xff] %vm240_vm1, %v617_v43 }
 0x2df   : > { %v830_v44 = vpop.f32.mrf.mxu1  ;;  %v835_v45 = vpop.f32.mrf.mxu0 }
 0x2e1   : > { %v620_v46 = vpop.f32.mrf.mxu0  ;;  %v663_v47 = vpop.f32.mrf.mxu1 }
 0x2e2   : > { %672 = vst.msk [vmem:[%s210_s26 + $0x18] sm:$0xff] %vm240_vm1, %v663_v47 }
 0x2e3   : > { %v836_v48 = vpop.f32.mrf.mxu0  ;;  %v841_v49 = vpop.f32.mrf.mxu1 }
 0x2e5   : > { %v666_v50 = vpop.f32.mrf.mxu1 }
 0x2e7   : > { %v842_v51 = vpop.f32.mrf.mxu1 }
 0x2e8 PF: > { %s13_s12 = sadd.s32 1, %s875_s12  }
 0x2e9   : > { %p10_p4 = scmp.ge.s32.totalorder %s13_s12, 4  }
 0x2eb   :  { %12 = sbr.rel (!%p10_p4) target bundleno = 1 (0x1), region = 68 }

// kernel: forward.30
= control target key start
LH: loop header
LB: loop body
LE: loop exit
PB: predicated region body
PF: predicated region fallthrough
CT: control target
= control target key end

     0   :  { %v111_v0 = vmov 0.0   ;;  %vm112_vm0 = vmmov 0   ;;  %vm41_vm1 = vcmask 261120   ;;  %s154_s1 = inlined_call_operand.vmem [shape: bf16[32,32], index: 1, kind: input, shape index: {}]   ;;  %s155_s0 = inlined_call_operand.vmem [shape: f32[16,32], index: 0, kind: input, shape index: {}]   ;;  %s156_s2 = inlined_call_operand.vmem [shape: f32[1,32], index: 2, kind: input, shape index: {}]   ;;  %s157_s3 = inlined_call_operand.vmem [shape: f32[16,32], index: 3, kind: output, shape index: {}]  }
   0x1   :  { %99 = vmatprep.subr.bf16.mxu0 %v111_v0  ;;  %v109_v1 = vld [vmem:[%s154_s1 + $0x8] sm:$0xff]   ;;  %103 = vmatprep.mubr.msk.bf16.mxu0 %vm112_vm0, %v111_v0  ;;  %v110_v2 = vld [vmem:[%s154_s1] sm:$0xff]  }
   0x2   :  { %100 = vmatpush3.bf16.msra.mxu0 %v109_v1  ;;  %v15_v3 = vld [vmem:[%s155_s0] sm:$0xff]  ;;  %v16_v4 = vld [vmem:[%s155_s0 + $0x8] sm:$0xff] }
   0x3   :  { %101 = vmatprep.subr.bf16.mxu0 %v111_v0  ;;  %v17_v5 = vpack.c.bf16 %v16_v4, %v15_v3  ;;  %v92_v6 = vld [vmem:[%s156_s2] ss:$0 sm:$0xff] }
   0x6   :  { %102 = vmatpush3.bf16.msra.mxu0 %v110_v2 }
   0x9   :  { %104 = vmatmul.mubr.msk.bf16.vlgmr.msra.gmra.mxu0 %vm41_vm1, %v17_v5 }
  0xc9   :  { %v79_v7 = vpop.f32.mrf.mxu0 }
  0xca   :  { %v80_v8 = vadd.f32 %v92_v6, %v79_v7 }
  0xcb   :  { %v105_v9 = vpop.f32.mrf.mxu0 }
  0xcc   :  { %86 = vst.msk [vmem:[%s157_s3] sm:$0xff] %vm41_vm1, %v80_v8 }
  0xcd   :  { %v82_v10 = vpop.f32.mrf.mxu0 }
  0xce   :  { %v83_v11 = vadd.f32 %v92_v6, %v82_v10 }
  0xcf   :  { %v106_v12 = vpop.f32.mrf.mxu0 }
  0xd0   :  { %87 = vst.msk [vmem:[%s157_s3 + $0x8] sm:$0xff] %vm41_vm1, %v83_v11 }

// kernel: forward.18
= control target key start
LH: loop header
LB: loop body
LE: loop exit
PB: predicated region body
PF: predicated region fallthrough
CT: control target
= control target key end

     0   :  { %vm25_vm0 = vcmask 261120   ;;  %s301_s0 = inlined_call_operand.vmem [shape: f32[32,32], index: 0, kind: input, shape index: {}]   ;;  %s302_s3 = inlined_call_operand.vmem [shape: bf16[32,32], index: 3, kind: input, shape index: {}]   ;;  %s303_s1 = inlined_call_operand.vmem [shape: f32[1,32], index: 1, kind: input, shape index: {}]   ;;  %s304_s2 = inlined_call_operand.vmem [shape: f32[1,32], index: 2, kind: input, shape index: {}]   ;;  %s305_s4 = inlined_call_operand.vmem [shape: f32[1,32], index: 4, kind: input, shape index: {}]   ;;  %s306_s5 = inlined_call_operand.vmem [shape: f32[32,32], index: 5, kind: output, shape index: {}]  }
   0x1   :  { %v21_v0 = vld [vmem:[%s301_s0] sm:$0xff]  ;;  %v23_v1 = vld [vmem:[%s301_s0 + $0x10] sm:$0xff]  ;;  %v22_v2 = vld [vmem:[%s301_s0 + $0x8] sm:$0xff] }
   0x2   :  { %v26_v3 = vsel %vm25_vm0, %v21_v0, 0.0  ;;  %v32_v4 = vsel %vm25_vm0, %v23_v1, 0.0  ;;  %v24_v5 = vld [vmem:[%s301_s0 + $0x18] sm:$0xff]  ;;  %v29_v6 = vsel %vm25_vm0, %v22_v2, 0.0  ;;  %v208_v28 = vld [vmem:[%s302_s3 + $0x8] sm:$0xff]   ;;  %v209_v29 = vld [vmem:[%s302_s3] sm:$0xff]  }
   0x3   :  { %27 = vadd.xlane.f32.xlu0 %v26_v3  ;;  %33 = vadd.xlane.f32.xlu1 %v32_v4  ;;  %v35_v7 = vsel %vm25_vm0, %v24_v5, 0.0  ;;  %v189_v44 = vld [vmem:[%s303_s1] ss:$0 sm:$0xff] }
   0x4   :  { %200 = vmatprep.subr.bf16.mxu0 %v208_v28  ;;  %v190_v49 = vld [vmem:[%s304_s2] ss:$0 sm:$0xff] }
   0x5   :  { %201 = vmatpush3.bf16.msra.mxu0 %v208_v28  ;;  %v191_v62 = vld [vmem:[%s305_s4] ss:$0 sm:$0xff] }
   0x6   :  { %202 = vmatprep.subr.bf16.mxu0 %v209_v29 }
   0x7   :  { %30 = vadd.xlane.f32.xlu0 %v29_v6  ;;  %36 = vadd.xlane.f32.xlu1 %v35_v7 }
   0x9   :  { %203 = vmatpush3.bf16.msra.mxu0 %v209_v29 }
  0x8c   :  { %v28_v8 = vpop.xlane.xlu0 %27  ;;  %v34_v9 = vpop.xlane.xlu1 %33 }
  0x8d   :  { %v39_v10 = vmul.f32 0.03125, %v28_v8  ;;  %v41_v11 = vmul.f32 0.03125, %v34_v9 }
  0x8f   :  { %v43_v12 = vsub.f32 %v21_v0, %v39_v10  ;;  %v45_v13 = vsub.f32 %v23_v1, %v41_v11 }
  0x90   :  { %v31_v14 = vpop.xlane.xlu0 %30  ;;  %v37_v15 = vpop.xlane.xlu1 %36 }
  0x91   :  { %v40_v16 = vmul.f32 0.03125, %v31_v14  ;;  %v42_v17 = vmul.f32 0.03125, %v37_v15  ;;  %v47_v18 = vmul.f32 %v43_v12, %v43_v12  ;;  %v49_v19 = vmul.f32 %v45_v13, %v45_v13 }
  0x93   :  { %v44_v20 = vsub.f32 %v22_v2, %v40_v16  ;;  %v46_v21 = vsub.f32 %v24_v5, %v42_v17  ;;  %v51_v22 = vsel %vm25_vm0, %v47_v18, 0.0  ;;  %v57_v23 = vsel %vm25_vm0, %v49_v19, 0.0 }
  0x94   :  { %52 = vadd.xlane.f32.xlu0 %v51_v22 }
  0x95   :  { %v48_v24 = vmul.f32 %v44_v20, %v44_v20  ;;  %v50_v25 = vmul.f32 %v46_v21, %v46_v21 }
  0x97   :  { %v54_v26 = vsel %vm25_vm0, %v48_v24, 0.0  ;;  %v60_v27 = vsel %vm25_vm0, %v50_v25, 0.0 }
  0x98   :  { %58 = vadd.xlane.f32.xlu0 %v57_v23  ;;  %55 = vadd.xlane.f32.xlu1 %v54_v26 }
  0x9c   :  { %61 = vadd.xlane.f32.xlu1 %v60_v27 }
 0x11d   :  { %v53_v30 = vpop.xlane.xlu0 %52 }
 0x11e   :  { %v63_v31 = vmul.f32 0.03125, %v53_v30 }
 0x120   :  { %v67_v32 = vadd.f32 1e-12, %v63_v31 }
 0x121   :  { %v56_v33 = vpop.xlane.xlu1 %55  ;;  %v59_v34 = vpop.xlane.xlu0 %58 }
 0x122   :  { %210 = vrsqrt.f32 %v67_v32  ;;  %v64_v35 = vmul.f32 0.03125, %v56_v33  ;;  %v65_v36 = vmul.f32 0.03125, %v59_v34 }
 0x124   :  { %v68_v37 = vadd.f32 1e-12, %v64_v35  ;;  %v69_v38 = vadd.f32 1e-12, %v65_v36 }
 0x125   :  { %v62_v39 = vpop.xlane.xlu1 %61 }
 0x126   :  { %212 = vrsqrt.f32 %v68_v37  ;;  %v66_v40 = vmul.f32 0.03125, %v62_v39 }
 0x127   :  { %214 = vrsqrt.f32 %v69_v38 }
 0x128   :  { %v70_v41 = vadd.f32 1e-12, %v66_v40 }
 0x12a   :  { %216 = vrsqrt.f32 %v70_v41 }
 0x12f   :  { %v211_v42 = vpop.eup %210 }
 0x130   :  { %v75_v43 = vmul.f32 %v211_v42, %v43_v12 }
 0x132   :  { %v86_v48 = vmul.f32 %v189_v44, %v75_v43 }
 0x133   :  { %v213_v45 = vpop.eup %212 }
 0x134   :  { %v215_v46 = vpop.eup %214  ;;  %v76_v47 = vmul.f32 %v213_v45, %v44_v20  ;;  %v97_v53 = vadd.f32 %v190_v49, %v86_v48 }
 0x135   :  { %v77_v50 = vmul.f32 %v215_v46, %v45_v13 }
 0x136   :  { %v87_v51 = vmul.f32 %v189_v44, %v76_v47 }
 0x137   :  { %v217_v52 = vpop.eup %216  ;;  %v88_v56 = vmul.f32 %v189_v44, %v77_v50 }
 0x138   :  { %v98_v54 = vadd.f32 %v190_v49, %v87_v51  ;;  %v78_v55 = vmul.f32 %v217_v52, %v46_v21 }
 0x139   :  { %v99_v59 = vadd.f32 %v190_v49, %v88_v56 }
 0x13a   :  { %v101_v57 = vpack.c.bf16 %v98_v54, %v97_v53  ;;  %v89_v58 = vmul.f32 %v189_v44, %v78_v55 }
 0x13c   :  { %204 = vmatprep.mubr.msk.bf16.mxu0 %vm25_vm0, %v101_v57  ;;  %v100_v60 = vadd.f32 %v190_v49, %v89_v58 }
 0x13e   :  { %v102_v61 = vpack.c.bf16 %v100_v60, %v99_v59 }
 0x140   :  { %205 = vmatmul.mubr.msk.bf16.vlgmr.msra.gmra.mxu0 %vm25_vm0, %v102_v61 }
 0x200   :  { %v206_v63 = vpop.f32.mrf.mxu0 }
 0x201   :  { %v175_v0 = vadd.f32 %v206_v63, %v191_v62 }
 0x202   :  { %v166_v1 = vpop.f32.mrf.mxu0 }
 0x203   :  { %183 = vst.msk [vmem:[%s306_s5 + $0x10] sm:$0xff] %vm25_vm0, %v175_v0  ;;  %v167_v2 = vadd.f32 %v191_v62, %v166_v1 }
 0x204   :  { %v207_v3 = vpop.f32.mrf.mxu0 }
 0x205   :  { %181 = vst.msk [vmem:[%s306_s5] sm:$0xff] %vm25_vm0, %v167_v2  ;;  %v178_v4 = vadd.f32 %v207_v3, %v191_v62 }
 0x206   :  { %v169_v5 = vpop.f32.mrf.mxu0 }
 0x207   :  { %184 = vst.msk [vmem:[%s306_s5 + $0x18] sm:$0xff] %vm25_vm0, %v178_v4  ;;  %v170_v6 = vadd.f32 %v191_v62, %v169_v5 }
 0x209   :  { %182 = vst.msk [vmem:[%s306_s5 + $0x8] sm:$0xff] %vm25_vm0, %v170_v6 }

// kernel: forward.19
= control target key start
LH: loop header
LB: loop body
LE: loop exit
PB: predicated region body
PF: predicated region fallthrough
CT: control target
= control target key end

     0   :  { %s745_s24 = smov 0   ;;  %s805_s0 = inlined_call_operand.vmem [shape: f32[2,16,32], index: 0, kind: input, shape index: {}]   ;;  %s806_s1 = inlined_call_operand.vmem [shape: bf16[32,32], index: 1, kind: input, shape index: {}]   ;;  %s807_s2 = inlined_call_operand.vmem [shape: bf16[32,32], index: 2, kind: input, shape index: {}]   ;;  %s808_s3 = inlined_call_operand.vmem [shape: bf16[16,16], index: 3, kind: input, shape index: {}]   ;;  %s809_s4 = inlined_call_operand.vmem [shape: bf16[16,16], index: 4, kind: input, shape index: {}]   ;;  %s810_s5 = inlined_call_operand.vmem [shape: f32[1,32], index: 5, kind: input, shape index: {}]   ;;  %s811_s6 = inlined_call_operand.vmem [shape: f32[1,32], index: 6, kind: input, shape index: {}]   ;;  %s812_s7 = inlined_call_operand.vmem [shape: f32[2,16,32], index: 7, kind: output, shape index: {}]  }
   0x1 LB: > { %s612_s25 = sadd.s32 4294967295, %s701_s24   ;;  %p616_p0 = scmp.ge.s32.totalorder %s701_s24, 1  ;;  %s701_s24 = sphi %s745_s24, %s17_s24  }
   0x2   : > { %p237_p1 = scmp.lt.s32.totalorder %s701_s24, 3 }
   0x4   : > { %p238_p2 = pnand %p616_p0, %p237_p1 }
   0x5   : > { %p269_p3 = scmp.lt.s32.totalorder (!%p238_p2), %s612_s25, 1 }
   0x6   : > { %241 = sbr.rel (%p238_p2) target bundleno = 733 (0x2dd), region = 48 }
   0xb   : > { %v685_v0 = vld [vmem:[%s806_s1 + $0x8] sm:$0xff]   ;;  %v703_v1 = vmov 0.0   ;;  %v687_v3 = vld [vmem:[%s806_s1] sm:$0xff]   ;;  %vm704_vm0 = vmmov 0   ;;  %s814_s25 = smov (!%p269_p3, %s612_s25), 1  ;;  %vm299_vm1 = vcmask 261120  }
   0xc   : > { %647 = vmatprep.subr.bf16.mxu0 %v703_v1  ;;  %655 = vmatprep.subr.bf16.mxu1 %v703_v1  ;;  %v686_v2 = vld [vmem:[%s807_s2 + $0x8] sm:$0xff]   ;;  %v688_v4 = vld [vmem:[%s807_s2] sm:$0xff]   ;;  %s635_s11 = sshll.u32 %s814_s25, 4  ;;  %vm409_vm2 = vcmask 130048  }
   0xd   : > { %648 = vmatpush3.bf16.msra.mxu0 %v685_v0  ;;  %651 = vmatprep.mubr.msk.bf16.mxu0 %vm704_vm0, %v703_v1  ;;  %s273_s14 = scalar_lea.vmem %s805_s0, %s635_s11  ;;  %v689_v18 = vld [vmem:[%s808_s3] sm:$0xff]   ;;  %s278_s27 = scalar_lea.vmem %s812_s7, %s635_s11 }
   0xe   : > { %656 = vmatpush3.bf16.msra.mxu1 %v686_v2  ;;  %649 = vmatprep.subr.bf16.mxu0 %v703_v1  ;;  %v280_v5 = vld [vmem:[%s273_s14] sm:$0xff]  ;;  %v281_v6 = vld [vmem:[%s273_s14 + $0x8] sm:$0xff] }
   0xf   : > { %657 = vmatprep.subr.bf16.mxu1 %v703_v1  ;;  %659 = vmatprep.mubr.msk.bf16.mxu1 %vm704_vm0, %v703_v1  ;;  %v282_v7 = vpack.c.bf16 %v281_v6, %v280_v5  ;;  %v690_v19 = vld [vmem:[%s809_s4] sm:$0xff]  }
  0x10   : > { %v631_v51 = vld [vmem:[%s810_s5] ss:$0 sm:$0xff] }
  0x11   : > { %650 = vmatpush3.bf16.msra.mxu0 %v687_v3  ;;  %v632_v53 = vld [vmem:[%s811_s6] ss:$0 sm:$0xff] }
  0x12   : > { %658 = vmatpush3.bf16.msra.mxu1 %v688_v4  ;;  %663 = vmatprep.subr.bf16.mxu0 %v703_v1 }
  0x13   : > { %669 = vmatprep.subr.bf16.mxu1 %v703_v1 }
  0x14   : > { %652 = vmatmul.mubr.msk.bf16.vlgmr.msra.gmra.mxu0 %vm299_vm1, %v282_v7 }
  0x15   : > { %660 = vmatmul.mubr.msk.bf16.vlgmr.msra.gmra.mxu1 %vm299_vm1, %v282_v7  ;;  %665 = vmatprep.mubr.msk.bf16.mxu0 %vm704_vm0, %v703_v1 }
  0x16   : > { %671 = vmatprep.mubr.msk.bf16.mxu1 %vm704_vm0, %v703_v1 }
  0xd4   : > { %v337_v8 = vpop.f32.mrf.mxu0 }
  0xd5   : > { %v394_v9 = vpop.f32.mrf.mxu1 }
  0xd6   : > { %v653_v10 = vpop.f32.mrf.mxu0 }
  0xd7   : > { %v661_v11 = vpop.f32.mrf.mxu1 }
  0xd8   : > { %v340_v12 = vpop.f32.mrf.mxu0 }
  0xd9   : > { %v397_v13 = vpop.f32.mrf.mxu1  ;;  %v403_v14 = vpack.c.bf16 %v340_v12, %v337_v8 }
  0xda   : > { %v456_v15 = vpack.c.bf16 %v397_v13, %v394_v9  ;;  %v654_v16 = vpop.f32.mrf.mxu0 }
  0xdb   : > { %v662_v17 = vpop.f32.mrf.mxu1  ;;  %664 = vmatpush3.bf16.msra.mxu0 %v403_v14 }
  0xdc   : > { %670 = vmatpush3.bf16.msra.mxu1 %v456_v15 }
  0xde   : > { %666 = vmatmul.mubr.msk.bf16.vlgmr.msra.gmra.mxu0 %vm409_vm2, %v689_v18 }
  0xdf   : > { %672 = vmatmul.mubr.msk.bf16.vlgmr.msra.gmra.mxu1 %vm409_vm2, %v690_v19 }
 0x19e   : > { %v447_v20 = vpop.f32.mrf.mxu0 }
 0x19f   : > { %v499_v21 = vpop.f32.mrf.mxu1 }
 0x1a0   : > { %v506_v22 = vsub.f32 %v447_v20, %v499_v21  ;;  %v667_v23 = vpop.f32.mrf.mxu0 }
 0x1a1   : > { %v673_v24 = vpop.f32.mrf.mxu1 }
 0x1a2   : > { %v508_v25 = vadd.f32 %v506_v22, %v280_v5  ;;  %v450_v26 = vpop.f32.mrf.mxu0 }
 0x1a3   : > { %v502_v27 = vpop.f32.mrf.mxu1 }
 0x1a4   : > { %v507_v28 = vsub.f32 %v450_v26, %v502_v27  ;;  %v510_v29 = vsel %vm299_vm1, %v508_v25, 0.0  ;;  %v668_v31 = vpop.f32.mrf.mxu0 }
 0x1a5   : > { %v674_v30 = vpop.f32.mrf.mxu1  ;;  %511 = vadd.xlane.f32.xlu0 %v510_v29 }
 0x1a6   : > { %v509_v32 = vadd.f32 %v507_v28, %v281_v6 }
 0x1a8   : > { %v513_v33 = vsel %vm299_vm1, %v509_v32, 0.0 }
 0x1a9   : > { %514 = vadd.xlane.f32.xlu0 %v513_v33 }
 0x22e   : > { %v512_v34 = vpop.xlane.xlu0 %511 }
 0x22f   : > { %v517_v35 = vmul.f32 0.03125, %v512_v34 }
 0x231   : > { %v519_v36 = vsub.f32 %v508_v25, %v517_v35 }
 0x232   : > { %v515_v37 = vpop.xlane.xlu0 %514 }
 0x233   : > { %v518_v38 = vmul.f32 0.03125, %v515_v37  ;;  %v521_v39 = vmul.f32 %v519_v36, %v519_v36 }
 0x235   : > { %v520_v40 = vsub.f32 %v509_v32, %v518_v38  ;;  %v523_v41 = vsel %vm299_vm1, %v521_v39, 0.0 }
 0x236   : > { %524 = vadd.xlane.f32.xlu1 %v523_v41 }
 0x237   : > { %v522_v42 = vmul.f32 %v520_v40, %v520_v40 }
 0x239   : > { %v526_v43 = vsel %vm299_vm1, %v522_v42, 0.0 }
 0x23a   : > { %527 = vadd.xlane.f32.xlu1 %v526_v43 }
 0x2bf   : > { %v525_v44 = vpop.xlane.xlu1 %524 }
 0x2c0   : > { %v529_v45 = vmul.f32 0.03125, %v525_v44 }
 0x2c2   : > { %v531_v46 = vadd.f32 1e-12, %v529_v45 }
 0x2c3   : > { %v528_v47 = vpop.xlane.xlu1 %527 }
 0x2c4   : > { %691 = vrsqrt.f32 %v531_v46  ;;  %v530_v48 = vmul.f32 0.03125, %v528_v47 }
 0x2c6   : > { %v532_v49 = vadd.f32 1e-12, %v530_v48 }
 0x2c8   : > { %693 = vrsqrt.f32 %v532_v49 }
 0x2d1   : > { %v692_v50 = vpop.eup %691 }
 0x2d2   : > { %v535_v52 = vmul.f32 %v692_v50, %v519_v36 }
 0x2d4   : > { %v544_v54 = vmul.f32 %v631_v51, %v535_v52 }
 0x2d5   : > { %v694_v55 = vpop.eup %693 }
 0x2d6   : > { %v553_v56 = vadd.f32 %v632_v53, %v544_v54  ;;  %v536_v57 = vmul.f32 %v694_v55, %v520_v40 }
 0x2d8   : > { %555 = vst.msk [vmem:[%s278_s27] sm:$0xff] %vm299_vm1, %v553_v56  ;;  %v545_v58 = vmul.f32 %v631_v51, %v536_v57 }
 0x2da   : > { %v554_v59 = vadd.f32 %v632_v53, %v545_v58 }
 0x2dc   : > { %556 = vst.msk [vmem:[%s278_s27 + $0x8] sm:$0xff] %vm299_vm1, %v554_v59 }
 0x2dd PF: > { %s17_s24 = sadd.s32 1, %s701_s24  }
 0x2de   : > { %p14_p4 = scmp.ge.s32.totalorder %s17_s24, 4  }
 0x2e0   :  { %16 = sbr.rel (!%p14_p4) target bundleno = 1 (0x1), region = 78 }

// kernel: forward.20
= control target key start
LH: loop header
LB: loop body
LE: loop exit
PB: predicated region body
PF: predicated region fallthrough
CT: control target
= control target key end

     0   :  { %vm56_vm0 = vcmask 261120   ;;  %vm189_vm1 = vcmask 523264   ;;  %s522_s1 = inlined_call_operand.vmem [shape: bf16[32,64], index: 1, kind: input, shape index: {}]   ;;  %s523_s0 = inlined_call_operand.vmem [shape: f32[32,32], index: 0, kind: input, shape index: {}]   ;;  %s524_s3 = inlined_call_operand.vmem [shape: bf16[64,32], index: 3, kind: input, shape index: {}]   ;;  %s525_s2 = inlined_call_operand.vmem [shape: f32[1,64], index: 2, kind: input, shape index: {}]   ;;  %s526_s4 = inlined_call_operand.vmem [shape: f32[1,32], index: 4, kind: input, shape index: {}]   ;;  %s527_s5 = inlined_call_operand.vmem [shape: f32[1,32], index: 5, kind: input, shape index: {}]   ;;  %s528_s6 = inlined_call_operand.vmem [shape: f32[1,32], index: 6, kind: input, shape index: {}]   ;;  %s529_s7 = inlined_call_operand.vmem [shape: f32[32,32], index: 7, kind: output, shape index: {}]  }
   0x1   :  { %v376_v0 = vld [vmem:[%s522_s1 + $0x8] sm:$0xff]   ;;  %v377_v1 = vld [vmem:[%s522_s1] sm:$0xff]   ;;  %v459_v5 = vld [vmem:[%s523_s0 + $0x10] sm:$0xff] }
   0x2   :  { %356 = vmatprep.subr.bf16.mxu0 %v376_v0  ;;  %v447_v2 = vld [vmem:[%s523_s0] sm:$0xff]  ;;  %v452_v3 = vld [vmem:[%s523_s0 + $0x8] sm:$0xff]  ;;  %v464_v6 = vld [vmem:[%s523_s0 + $0x18] sm:$0xff] }
   0x3   :  { %357 = vmatpush3.bf16.msra.mxu0 %v376_v0  ;;  %v31_v4 = vpack.c.bf16 %v452_v3, %v447_v2  ;;  %v32_v7 = vpack.c.bf16 %v464_v6, %v459_v5  ;;  %v378_v8 = vld [vmem:[%s524_s3 + $0x18] sm:$0xff]   ;;  %v379_v9 = vld [vmem:[%s524_s3 + $0x10] sm:$0xff]   ;;  %v380_v10 = vld [vmem:[%s524_s3 + $0x8] sm:$0xff]  }
   0x4   :  { %358 = vmatprep.subr.bf16.mxu0 %v377_v1  ;;  %364 = vmatprep.subr.bf16.mxu1 %v378_v8  ;;  %v381_v11 = vld [vmem:[%s524_s3] sm:$0xff]  }
   0x5   :  { %360 = vmatprep.mubr.msk.bf16.mxu0 %vm56_vm0, %v31_v4  ;;  %365 = vmatpush3.bf16.msra.mxu1 %v378_v8  ;;  %v332_v12 = vld [vmem:[%s525_s2] ss:$0 sm:$0xff] }
   0x6   :  { %366 = vmatprep.subr.bf16.mxu1 %v379_v9  ;;  %v337_v59 = vld [vmem:[%s526_s4] ss:$0 sm:$0xff] }
   0x7   :  { %359 = vmatpush3.bf16.msra.mxu0 %v377_v1 }
   0x9   :  { %367 = vmatpush3.bf16.msra.mxu1 %v379_v9 }
   0xa   :  { %361 = vmatmul.mubr.msk.bf16.vlgmr.msra.gmra.mxu0 %vm56_vm0, %v32_v7  ;;  %368 = vmatprep.subr.bf16.mxu1 %v380_v10 }
   0xd   :  { %369 = vmatpush3.bf16.msra.mxu1 %v380_v10 }
   0xe   :  { %370 = vmatprep.subr.bf16.mxu1 %v381_v11 }
  0x11   :  { %371 = vmatpush3.bf16.msra.mxu1 %v381_v11 }
  0xca   :  { %v362_v13 = vpop.f32.mrf.mxu0 }
  0xcb   :  { %v106_v14 = vadd.f32 %v362_v13, %v332_v12 }
  0xcc   :  { %v97_v15 = vpop.f32.mrf.mxu0 }
  0xcd   :  { %v114_v16 = vmul.f32 %v106_v14, %v106_v14  ;;  %v98_v17 = vadd.f32 %v332_v12, %v97_v15 }
  0xce   :  { %v363_v18 = vpop.f32.mrf.mxu0 }
  0xcf   :  { %v118_v19 = vmul.f32 %v114_v16, %v106_v14  ;;  %v112_v20 = vmul.f32 %v98_v17, %v98_v17  ;;  %v109_v21 = vadd.f32 %v363_v18, %v332_v12 }
  0xd0   :  { %v100_v22 = vpop.f32.mrf.mxu0 }
  0xd1   :  { %v122_v23 = vmul.f32 0.044715, %v118_v19  ;;  %v116_v24 = vmul.f32 %v112_v20, %v98_v17  ;;  %v115_v25 = vmul.f32 %v109_v21, %v109_v21  ;;  %v101_v26 = vadd.f32 %v332_v12, %v100_v22 }
  0xd3   :  { %v126_v27 = vadd.f32 %v122_v23, %v106_v14  ;;  %v120_v28 = vmul.f32 0.044715, %v116_v24  ;;  %v119_v29 = vmul.f32 %v115_v25, %v109_v21  ;;  %v113_v30 = vmul.f32 %v101_v26, %v101_v26 }
  0xd5   :  { %v130_v31 = vmul.f32 0.7978846, %v126_v27  ;;  %v124_v32 = vadd.f32 %v120_v28, %v98_v17  ;;  %v123_v33 = vmul.f32 0.044715, %v119_v29  ;;  %v117_v34 = vmul.f32 %v113_v30, %v101_v26 }
  0xd7   :  { %v128_v35 = vmul.f32 0.7978846, %v124_v32  ;;  %v127_v36 = vadd.f32 %v123_v33, %v109_v21  ;;  %v121_v37 = vmul.f32 0.044715, %v117_v34  ;;  %382 = vtanh.f32 %v130_v31 }
  0xd9   :  { %v131_v38 = vmul.f32 0.7978846, %v127_v36  ;;  %v125_v39 = vadd.f32 %v121_v37, %v101_v26  ;;  %384 = vtanh.f32 %v128_v35 }
  0xdb   :  { %386 = vtanh.f32 %v131_v38  ;;  %v129_v40 = vmul.f32 0.7978846, %v125_v39 }
  0xdd   :  { %388 = vtanh.f32 %v129_v40 }
  0xe4   :  { %v383_v41 = vpop.eup %382 }
  0xe5   :  { %v138_v45 = vadd.f32 1.0, %v383_v41 }
  0xe6   :  { %v385_v42 = vpop.eup %384 }
  0xe7   :  { %v136_v43 = vadd.f32 1.0, %v385_v42  ;;  %v142_v51 = vmul.f32 0.5, %v138_v45  ;;  %v344_v45 = vld [vmem:[%s527_s5] ss:$0 sm:$0xff] }
  0xe8   :  { %v387_v44 = vpop.eup %386 }
  0xe9   :  { %v139_v46 = vadd.f32 1.0, %v387_v44  ;;  %v140_v50 = vmul.f32 0.5, %v136_v43  ;;  %v146_v56 = vmul.f32 %v142_v51, %v106_v14 }
  0xea   :  { %v389_v47 = vpop.eup %388 }
  0xeb   :  { %v143_v48 = vmul.f32 0.5, %v139_v46  ;;  %v137_v49 = vadd.f32 1.0, %v389_v47  ;;  %v144_v54 = vmul.f32 %v140_v50, %v98_v17  ;;  %v345_v47 = vld [vmem:[%s528_s6] ss:$0 sm:$0xff] }
  0xed   :  { %v141_v52 = vmul.f32 0.5, %v137_v49  ;;  %v147_v53 = vmul.f32 %v143_v48, %v109_v21 }
  0xef   :  { %v145_v55 = vmul.f32 %v141_v52, %v101_v26  ;;  %v149_v58 = vpack.c.bf16 %v147_v53, %v146_v56 }
  0xf1   :  { %v148_v57 = vpack.c.bf16 %v145_v55, %v144_v54 }
  0xf3   :  { %372 = vmatprep.mubr.msk.bf16.mxu1 %vm189_vm1, %v148_v57 }
  0xf4   :  { %373 = vmatmul.mubr.msk.bf16.vlgmr.msra.gmra.mxu1 %vm189_vm1, %v149_v58 }
 0x1b4   :  { %v374_v60 = vpop.f32.mrf.mxu1 }
 0x1b5   :  { %v239_v61 = vadd.f32 %v374_v60, %v337_v59 }
 0x1b6   :  { %v230_v62 = vpop.f32.mrf.mxu1 }
 0x1b7   :  { %v231_v63 = vadd.f32 %v337_v59, %v230_v62  ;;  %v247_v0 = vadd.f32 %v239_v61, %v459_v5 }
 0x1b8   :  { %v375_v1 = vpop.f32.mrf.mxu1 }
 0x1b9   :  { %v242_v4 = vadd.f32 %v375_v1, %v337_v59  ;;  %v255_v7 = vsel %vm56_vm0, %v247_v0, 0.0  ;;  %v245_v8 = vadd.f32 %v231_v63, %v447_v2 }
 0x1ba   :  { %256 = vadd.xlane.f32.xlu1 %v255_v7  ;;  %v233_v9 = vpop.f32.mrf.mxu1 }
 0x1bb   :  { %v234_v10 = vadd.f32 %v337_v59, %v233_v9  ;;  %v249_v11 = vsel %vm56_vm0, %v245_v8, 0.0  ;;  %v248_v12 = vadd.f32 %v242_v4, %v464_v6 }
 0x1bc   :  { %250 = vadd.xlane.f32.xlu0 %v249_v11 }
 0x1bd   :  { %v258_v13 = vsel %vm56_vm0, %v248_v12, 0.0  ;;  %v246_v14 = vadd.f32 %v234_v10, %v452_v3 }
 0x1be   :  { %259 = vadd.xlane.f32.xlu1 %v258_v13 }
 0x1bf   :  { %v252_v5 = vsel %vm56_vm0, %v246_v14, 0.0 }
 0x1c0   :  { %253 = vadd.xlane.f32.xlu0 %v252_v5 }
 0x243   :  { %v257_v15 = vpop.xlane.xlu1 %256 }
 0x244   :  { %v264_v16 = vmul.f32 0.03125, %v257_v15 }
 0x245   :  { %v251_v17 = vpop.xlane.xlu0 %250 }
 0x246   :  { %v262_v2 = vmul.f32 0.03125, %v251_v17  ;;  %v268_v19 = vsub.f32 %v247_v0, %v264_v16 }
 0x247   :  { %v260_v18 = vpop.xlane.xlu1 %259 }
 0x248   :  { %v266_v20 = vsub.f32 %v245_v8, %v262_v2  ;;  %v265_v21 = vmul.f32 0.03125, %v260_v18  ;;  %v272_v3 = vmul.f32 %v268_v19, %v268_v19 }
 0x249   :  { %v254_v22 = vpop.xlane.xlu0 %253 }
 0x24a   :  { %v263_v23 = vmul.f32 0.03125, %v254_v22  ;;  %v270_v6 = vmul.f32 %v266_v20, %v266_v20  ;;  %v269_v24 = vsub.f32 %v248_v12, %v265_v21  ;;  %v280_v28 = vsel %vm56_vm0, %v272_v3, 0.0 }
 0x24c   :  { %v267_v25 = vsub.f32 %v246_v14, %v263_v23  ;;  %v274_v26 = vsel %vm56_vm0, %v270_v6, 0.0  ;;  %v273_v30 = vmul.f32 %v269_v24, %v269_v24 }
 0x24d   :  { %275 = vadd.xlane.f32.xlu0 %v274_v26 }
 0x24e   :  { %v271_v27 = vmul.f32 %v267_v25, %v267_v25  ;;  %v283_v31 = vsel %vm56_vm0, %v273_v30, 0.0 }
 0x250   :  { %v277_v29 = vsel %vm56_vm0, %v271_v27, 0.0 }
 0x251   :  { %281 = vadd.xlane.f32.xlu0 %v280_v28  ;;  %278 = vadd.xlane.f32.xlu1 %v277_v29 }
 0x255   :  { %284 = vadd.xlane.f32.xlu1 %v283_v31 }
 0x2d6   :  { %v276_v32 = vpop.xlane.xlu0 %275 }
 0x2d7   :  { %v286_v33 = vmul.f32 0.03125, %v276_v32 }
 0x2d9   :  { %v290_v34 = vadd.f32 1e-12, %v286_v33 }
 0x2da   :  { %v279_v35 = vpop.xlane.xlu1 %278  ;;  %v282_v36 = vpop.xlane.xlu0 %281 }
 0x2db   :  { %390 = vrsqrt.f32 %v290_v34  ;;  %v287_v37 = vmul.f32 0.03125, %v279_v35  ;;  %v288_v38 = vmul.f32 0.03125, %v282_v36 }
 0x2dd   :  { %v291_v39 = vadd.f32 1e-12, %v287_v37  ;;  %v292_v40 = vadd.f32 1e-12, %v288_v38 }
 0x2de   :  { %v285_v41 = vpop.xlane.xlu1 %284 }
 0x2df   :  { %392 = vrsqrt.f32 %v291_v39  ;;  %v289_v42 = vmul.f32 0.03125, %v285_v41 }
 0x2e0   :  { %394 = vrsqrt.f32 %v292_v40 }
 0x2e1   :  { %v293_v43 = vadd.f32 1e-12, %v289_v42 }
 0x2e3   :  { %396 = vrsqrt.f32 %v293_v43 }
 0x2e8   :  { %v391_v44 = vpop.eup %390 }
 0x2e9   :  { %v298_v46 = vmul.f32 %v391_v44, %v266_v20 }
 0x2eb   :  { %v309_v48 = vmul.f32 %v344_v45, %v298_v46 }
 0x2ec   :  { %v393_v49 = vpop.eup %392 }
 0x2ed   :  { %v395_v50 = vpop.eup %394  ;;  %v320_v51 = vadd.f32 %v345_v47, %v309_v48  ;;  %v299_v52 = vmul.f32 %v393_v49, %v267_v25 }
 0x2ee   :  { %v300_v53 = vmul.f32 %v395_v50, %v268_v19 }
 0x2ef   :  { %324 = vst.msk [vmem:[%s529_s7] sm:$0xff] %vm56_vm0, %v320_v51  ;;  %v310_v54 = vmul.f32 %v344_v45, %v299_v52 }
 0x2f0   :  { %v397_v55 = vpop.eup %396  ;;  %v311_v56 = vmul.f32 %v344_v45, %v300_v53 }
 0x2f1   :  { %v321_v57 = vadd.f32 %v345_v47, %v310_v54  ;;  %v301_v58 = vmul.f32 %v397_v55, %v269_v24 }
 0x2f2   :  { %v322_v59 = vadd.f32 %v345_v47, %v311_v56 }
 0x2f3   :  { %325 = vst.msk [vmem:[%s529_s7 + $0x8] sm:$0xff] %vm56_vm0, %v321_v57  ;;  %v312_v60 = vmul.f32 %v344_v45, %v301_v58 }
 0x2f4   :  { %326 = vst.msk [vmem:[%s529_s7 + $0x10] sm:$0xff] %vm56_vm0, %v322_v59 }
 0x2f5   :  { %v323_v61 = vadd.f32 %v345_v47, %v312_v60 }
 0x2f7   :  { %327 = vst.msk [vmem:[%s529_s7 + $0x18] sm:$0xff] %vm56_vm0, %v323_v61 }

// kernel: forward.24
= control target key start
LH: loop header
LB: loop body
LE: loop exit
PB: predicated region body
PF: predicated region fallthrough
CT: control target
= control target key end

     0   :  { %vm76_vm0 = vcmask 785408   ;;  %vm168_vm1 = vcmask 523264   ;;  %s291_s1 = inlined_call_operand.vmem [shape: bf16[96,64], index: 1, kind: input, shape index: {}]   ;;  %s292_s0 = inlined_call_operand.vmem [shape: f32[32,96], index: 0, kind: input, shape index: {}]   ;;  %s293_s2 = inlined_call_operand.vmem [shape: f32[1,64], index: 2, kind: input, shape index: {}]   ;;  %s294_s3 = inlined_call_operand.vmem [shape: f32[32,64], index: 3, kind: output, shape index: {}]  }
   0x1   :  { %v210_v0 = vld [vmem:[%s291_s1 + $0x28] sm:$0xff]   ;;  %v211_v1 = vld [vmem:[%s291_s1 + $0x20] sm:$0xff]   ;;  %v212_v2 = vld [vmem:[%s291_s1 + $0x18] sm:$0xff]  }
   0x2   :  { %194 = vmatprep.subr.bf16.mxu0 %v210_v0  ;;  %v15_v3 = vld [vmem:[%s292_s0] sm:$0xff]  ;;  %v16_v4 = vld [vmem:[%s292_s0 + $0x8] sm:$0xff]  ;;  %v213_v6 = vld [vmem:[%s291_s1 + $0x10] sm:$0xff]  }
   0x3   :  { %195 = vmatpush3.bf16.msra.mxu0 %v210_v0  ;;  %v19_v5 = vpack.c.bf16 %v16_v4, %v15_v3  ;;  %v214_v7 = vld [vmem:[%s291_s1 + $0x8] sm:$0xff]   ;;  %v215_v8 = vld [vmem:[%s291_s1] sm:$0xff]   ;;  %v17_v9 = vld [vmem:[%s292_s0 + $0x10] sm:$0xff] }
   0x4   :  { %196 = vmatprep.subr.bf16.mxu0 %v211_v1  ;;  %v18_v10 = vld [vmem:[%s292_s0 + $0x18] sm:$0xff]  ;;  %v177_v12 = vld [vmem:[%s293_s2] ss:$0 sm:$0xff] }
   0x5   :  { %206 = vmatprep.mubr.msk.bf16.mxu0 %vm76_vm0, %v19_v5  ;;  %v20_v11 = vpack.c.bf16 %v18_v10, %v17_v9 }
   0x7   :  { %197 = vmatpush3.bf16.msra.mxu0 %v211_v1 }
   0x8   :  { %198 = vmatprep.subr.bf16.mxu0 %v212_v2 }
   0xb   :  { %199 = vmatpush3.bf16.msra.mxu0 %v212_v2 }
   0xc   :  { %200 = vmatprep.subr.bf16.mxu0 %v213_v6 }
   0xf   :  { %201 = vmatpush3.bf16.msra.mxu0 %v213_v6 }
  0x10   :  { %202 = vmatprep.subr.bf16.mxu0 %v214_v7 }
  0x13   :  { %203 = vmatpush3.bf16.msra.mxu0 %v214_v7 }
  0x14   :  { %204 = vmatprep.subr.bf16.mxu0 %v215_v8 }
  0x17   :  { %205 = vmatpush3.bf16.msra.mxu0 %v215_v8 }
  0x1a   :  { %207 = vmatmul.mubr.msk.bf16.vlgmr.msra.gmra.mxu0 %vm76_vm0, %v20_v11 }
  0xda   :  { %v208_v13 = vpop.f32.mrf.mxu0 }
  0xdb   :  { %v126_v14 = vadd.f32 %v208_v13, %v177_v12 }
  0xdc   :  { %v117_v15 = vpop.f32.mrf.mxu0 }
  0xdd   :  { %v134_v16 = vmul.f32 %v126_v14, %v126_v14  ;;  %v118_v17 = vadd.f32 %v177_v12, %v117_v15 }
  0xde   :  { %v209_v18 = vpop.f32.mrf.mxu0 }
  0xdf   :  { %v138_v19 = vmul.f32 %v134_v16, %v126_v14  ;;  %v132_v20 = vmul.f32 %v118_v17, %v118_v17  ;;  %v129_v21 = vadd.f32 %v209_v18, %v177_v12 }
  0xe0   :  { %v120_v22 = vpop.f32.mrf.mxu0 }
  0xe1   :  { %v142_v23 = vmul.f32 0.044715, %v138_v19  ;;  %v136_v24 = vmul.f32 %v132_v20, %v118_v17  ;;  %v135_v25 = vmul.f32 %v129_v21, %v129_v21  ;;  %v121_v26 = vadd.f32 %v177_v12, %v120_v22 }
  0xe3   :  { %v146_v27 = vadd.f32 %v142_v23, %v126_v14  ;;  %v140_v28 = vmul.f32 0.044715, %v136_v24  ;;  %v139_v29 = vmul.f32 %v135_v25, %v129_v21  ;;  %v133_v30 = vmul.f32 %v121_v26, %v121_v26 }
  0xe5   :  { %v150_v31 = vmul.f32 0.7978846, %v146_v27  ;;  %v144_v32 = vadd.f32 %v140_v28, %v118_v17  ;;  %v143_v33 = vmul.f32 0.044715, %v139_v29  ;;  %v137_v34 = vmul.f32 %v133_v30, %v121_v26 }
  0xe7   :  { %216 = vtanh.f32 %v150_v31  ;;  %v148_v35 = vmul.f32 0.7978846, %v144_v32  ;;  %v147_v36 = vadd.f32 %v143_v33, %v129_v21  ;;  %v141_v37 = vmul.f32 0.044715, %v137_v34 }
  0xe9   :  { %218 = vtanh.f32 %v148_v35  ;;  %v151_v38 = vmul.f32 0.7978846, %v147_v36  ;;  %v145_v39 = vadd.f32 %v141_v37, %v121_v26 }
  0xeb   :  { %220 = vtanh.f32 %v151_v38  ;;  %v149_v40 = vmul.f32 0.7978846, %v145_v39 }
  0xed   :  { %222 = vtanh.f32 %v149_v40 }
  0xf4   :  { %v217_v41 = vpop.eup %216 }
  0xf5   :  { %v158_v42 = vadd.f32 1.0, %v217_v41 }
  0xf6   :  { %v219_v43 = vpop.eup %218 }
  0xf7   :  { %v162_v44 = vmul.f32 0.5, %v158_v42  ;;  %v156_v45 = vadd.f32 1.0, %v219_v43 }
  0xf8   :  { %v221_v46 = vpop.eup %220 }
  0xf9   :  { %v166_v47 = vmul.f32 %v162_v44, %v126_v14  ;;  %v160_v48 = vmul.f32 0.5, %v156_v45  ;;  %v159_v49 = vadd.f32 1.0, %v221_v46 }
  0xfa   :  { %v223_v50 = vpop.eup %222 }
  0xfb   :  { %171 = vst.msk [vmem:[%s294_s3 + $0x10] sm:$0xff] %vm168_vm1, %v166_v47  ;;  %v164_v51 = vmul.f32 %v160_v48, %v118_v17  ;;  %v163_v52 = vmul.f32 0.5, %v159_v49  ;;  %v157_v53 = vadd.f32 1.0, %v223_v50 }
  0xfd   :  { %169 = vst.msk [vmem:[%s294_s3] sm:$0xff] %vm168_vm1, %v164_v51  ;;  %v167_v54 = vmul.f32 %v163_v52, %v129_v21  ;;  %v161_v55 = vmul.f32 0.5, %v157_v53 }
  0xff   :  { %172 = vst.msk [vmem:[%s294_s3 + $0x18] sm:$0xff] %vm168_vm1, %v167_v54  ;;  %v165_v56 = vmul.f32 %v161_v55, %v121_v26 }
 0x101   :  { %170 = vst.msk [vmem:[%s294_s3 + $0x8] sm:$0xff] %vm168_vm1, %v165_v56 }

// kernel: forward.31
= control target key start
LH: loop header
LB: loop body
LE: loop exit
PB: predicated region body
PF: predicated region fallthrough
CT: control target
= control target key end

     0   :  { %vm44_vm0 = vcmask 261120   ;;  %vm100_vm1 = vcmask 523264   ;;  %s181_s1 = inlined_call_operand.vmem [shape: bf16[32,64], index: 1, kind: input, shape index: {}]   ;;  %s182_s0 = inlined_call_operand.vmem [shape: f32[32,32], index: 0, kind: input, shape index: {}]   ;;  %s183_s2 = inlined_call_operand.vmem [shape: f32[1,64], index: 2, kind: input, shape index: {}]   ;;  %s184_s3 = inlined_call_operand.vmem [shape: f32[32,64], index: 3, kind: output, shape index: {}]  }
   0x1   :  { %v126_v0 = vld [vmem:[%s181_s1 + $0x8] sm:$0xff]   ;;  %v127_v1 = vld [vmem:[%s181_s1] sm:$0xff]   ;;  %v17_v5 = vld [vmem:[%s182_s0 + $0x10] sm:$0xff] }
   0x2   :  { %118 = vmatprep.subr.bf16.mxu0 %v126_v0  ;;  %v15_v2 = vld [vmem:[%s182_s0] sm:$0xff]  ;;  %v16_v3 = vld [vmem:[%s182_s0 + $0x8] sm:$0xff]  ;;  %v18_v6 = vld [vmem:[%s182_s0 + $0x18] sm:$0xff] }
   0x3   :  { %119 = vmatpush3.bf16.msra.mxu0 %v126_v0  ;;  %v19_v4 = vpack.c.bf16 %v16_v3, %v15_v2  ;;  %v20_v7 = vpack.c.bf16 %v18_v6, %v17_v5  ;;  %v109_v8 = vld [vmem:[%s183_s2] ss:$0 sm:$0xff] }
   0x4   :  { %120 = vmatprep.subr.bf16.mxu0 %v127_v1 }
   0x5   :  { %122 = vmatprep.mubr.msk.bf16.mxu0 %vm44_vm0, %v19_v4 }
   0x7   :  { %121 = vmatpush3.bf16.msra.mxu0 %v127_v1 }
   0xa   :  { %123 = vmatmul.mubr.msk.bf16.vlgmr.msra.gmra.mxu0 %vm44_vm0, %v20_v7 }
  0xca   :  { %v124_v9 = vpop.f32.mrf.mxu0 }
  0xcb   :  { %v94_v10 = vadd.f32 %v124_v9, %v109_v8 }
  0xcc   :  { %v85_v11 = vpop.f32.mrf.mxu0 }
  0xcd   :  { %103 = vst.msk [vmem:[%s184_s3 + $0x10] sm:$0xff] %vm100_vm1, %v94_v10  ;;  %v86_v12 = vadd.f32 %v109_v8, %v85_v11 }
  0xce   :  { %v125_v13 = vpop.f32.mrf.mxu0 }
  0xcf   :  { %101 = vst.msk [vmem:[%s184_s3] sm:$0xff] %vm100_vm1, %v86_v12  ;;  %v97_v14 = vadd.f32 %v125_v13, %v109_v8 }
  0xd0   :  { %v88_v15 = vpop.f32.mrf.mxu0 }
  0xd1   :  { %104 = vst.msk [vmem:[%s184_s3 + $0x18] sm:$0xff] %vm100_vm1, %v97_v14  ;;  %v89_v16 = vadd.f32 %v109_v8, %v88_v15 }
  0xd3   :  { %102 = vst.msk [vmem:[%s184_s3 + $0x8] sm:$0xff] %vm100_vm1, %v89_v16 }

// kernel: forward.25
= control target key start
LH: loop header
LB: loop body
LE: loop exit
PB: predicated region body
PF: predicated region fallthrough
CT: control target
= control target key end

     0   :  { %v349_v0 = vmov 0   ;;  %vm139_vm0 = vcmask 523264   ;;  %vm203_vm1 = vcmask 261120   ;;  %s514_s1 = inlined_call_operand.vmem [shape: bf16[192,32], index: 1, kind: input, shape index: {}]   ;;  %s515_s0 = inlined_call_operand.vmem [shape: f32[32,192], index: 0, kind: input, shape index: {}]   ;;  %s516_s2 = inlined_call_operand.vmem [shape: f32[1,32], index: 2, kind: input, shape index: {}]   ;;  %s517_s3 = inlined_call_operand.vmem [shape: f32[32,32], index: 3, kind: input, shape index: {}]   ;;  %s518_s4 = inlined_call_operand.vmem [shape: f32[1,32], index: 4, kind: input, shape index: {}]   ;;  %s519_s5 = inlined_call_operand.vmem [shape: f32[1,32], index: 5, kind: input, shape index: {}]   ;;  %s520_s6 = inlined_call_operand.vmem [shape: f32[32,32], index: 6, kind: output, shape index: {}]  }
   0x1   :  { %146 = vmatprep.subr.bf16.mxu0 %v349_v0  ;;  %304 = vmatprep.subr.bf16.mxu1 %v349_v0  ;;  %v329_v1 = vld [vmem:[%s514_s1 + $0x38] sm:$0xff]   ;;  %v330_v2 = vld [vmem:[%s514_s1 + $0x30] sm:$0xff]   ;;  %v331_v3 = vld [vmem:[%s514_s1 + $0x28] sm:$0xff]  }
   0x2   :  { %147 = vmatpush1.bf16.msra.mxu0 %v329_v1  ;;  %316 = vmatpush1.bf16.msra.mxu1 %v329_v1  ;;  %v332_v4 = vld [vmem:[%s514_s1 + $0x20] sm:$0xff]   ;;  %v25_v5 = vld [vmem:[%s515_s0 + $0x8] sm:$0xff]  ;;  %v27_v6 = vld [vmem:[%s515_s0 + $0x18] sm:$0xff] }
   0x3   :  { %148 = vmatprep.subr.bf16.mxu0 %v349_v0  ;;  %305 = vmatprep.subr.bf16.mxu1 %v349_v0  ;;  %v29_v7 = vld [vmem:[%s515_s0 + $0x28] sm:$0xff]  ;;  %v33_v8 = vpack.c.bf16 %v27_v6, %v25_v5  ;;  %v31_v9 = vld [vmem:[%s515_s0 + $0x38] sm:$0xff]  ;;  %v334_v12 = vld [vmem:[%s514_s1 + $0x10] sm:$0xff]  }
   0x4   :  { %v333_v10 = vld [vmem:[%s514_s1 + $0x18] sm:$0xff]   ;;  %v35_v11 = vpack.c.bf16 %v31_v9, %v29_v7  ;;  %v335_v13 = vld [vmem:[%s514_s1 + $0x8] sm:$0xff]   ;;  %v336_v14 = vld [vmem:[%s514_s1] sm:$0xff]  }
   0x5   :  { %300 = vmatprep.mubr.msk.bf16.mxu0 %vm139_vm0, %v33_v8  ;;  %v337_v15 = vld [vmem:[%s514_s1 + $0x58] sm:$0xff]   ;;  %v338_v16 = vld [vmem:[%s514_s1 + $0x50] sm:$0xff]   ;;  %v339_v17 = vld [vmem:[%s514_s1 + $0x48] sm:$0xff]  }
   0x6   :  { %149 = vmatpush1.bf16.msra.mxu0 %v330_v2  ;;  %317 = vmatpush1.bf16.msra.mxu1 %v330_v2  ;;  %v340_v18 = vld [vmem:[%s514_s1 + $0x40] sm:$0xff]   ;;  %v26_v20 = vld [vmem:[%s515_s0 + $0x10] sm:$0xff]  ;;  %v198_v38 = vld [vmem:[%s517_s3 + $0x18] sm:$0xff] }
   0x7   :  { %150 = vmatprep.subr.bf16.mxu0 %v349_v0  ;;  %306 = vmatprep.subr.bf16.mxu1 %v349_v0  ;;  %v24_v19 = vld [vmem:[%s515_s0] sm:$0xff]  ;;  %v30_v22 = vld [vmem:[%s515_s0 + $0x30] sm:$0xff]  ;;  %v196_v39 = vld [vmem:[%s517_s3 + $0x8] sm:$0xff] }
   0x8   :  { %301 = vmatprep.mubr.msk.bf16.mxu1 %vm139_vm0, %v35_v11  ;;  %v28_v21 = vld [vmem:[%s515_s0 + $0x20] sm:$0xff]  ;;  %v32_v23 = vpack.c.bf16 %v26_v20, %v24_v19  ;;  %v197_v28 = vld [vmem:[%s517_s3 + $0x10] sm:$0xff] }
   0x9   :  { %v34_v24 = vpack.c.bf16 %v30_v22, %v28_v21  ;;  %v287_v25 = vld [vmem:[%s516_s2] ss:$0 sm:$0xff] }
   0xa   :  { %151 = vmatpush1.bf16.msra.mxu0 %v331_v3  ;;  %318 = vmatpush1.bf16.msra.mxu1 %v331_v3  ;;  %v195_v29 = vld [vmem:[%s517_s3] sm:$0xff] }
   0xb   :  { %152 = vmatprep.subr.bf16.mxu0 %v349_v0  ;;  %307 = vmatprep.subr.bf16.mxu1 %v349_v0  ;;  %v302_v19 = vld [vmem:[%s518_s4] ss:$0 sm:$0xff] }
   0xc   :  { %v303_v21 = vld [vmem:[%s519_s5] ss:$0 sm:$0xff] }
   0xe   :  { %153 = vmatpush1.bf16.msra.mxu0 %v332_v4  ;;  %319 = vmatpush1.bf16.msra.mxu1 %v332_v4 }
   0xf   :  { %154 = vmatprep.subr.bf16.mxu0 %v349_v0  ;;  %308 = vmatprep.subr.bf16.mxu1 %v349_v0 }
  0x12   :  { %155 = vmatpush1.bf16.msra.mxu0 %v333_v10  ;;  %320 = vmatpush1.bf16.msra.mxu1 %v333_v10 }
  0x13   :  { %156 = vmatprep.subr.bf16.mxu0 %v349_v0  ;;  %309 = vmatprep.subr.bf16.mxu1 %v349_v0 }
  0x16   :  { %157 = vmatpush1.bf16.msra.mxu0 %v334_v12  ;;  %321 = vmatpush1.bf16.msra.mxu1 %v334_v12 }
  0x17   :  { %158 = vmatprep.subr.bf16.mxu0 %v349_v0  ;;  %310 = vmatprep.subr.bf16.mxu1 %v349_v0 }
  0x1a   :  { %159 = vmatpush1.bf16.msra.mxu0 %v335_v13  ;;  %322 = vmatpush1.bf16.msra.mxu1 %v335_v13 }
  0x1b   :  { %160 = vmatprep.subr.bf16.mxu0 %v349_v0  ;;  %311 = vmatprep.subr.bf16.mxu1 %v349_v0 }
  0x1e   :  { %161 = vmatpush1.bf16.msra.mxu0 %v336_v14  ;;  %323 = vmatpush1.bf16.msra.mxu1 %v336_v14 }
  0x1f   :  { %170 = vmatprep.subr.bf16.mxu0 %v349_v0  ;;  %312 = vmatprep.subr.bf16.mxu1 %v349_v0 }
  0x22   :  { %171 = vmatpush2.bf16.msra.mxu0 %v337_v15  ;;  %324 = vmatpush2.bf16.msra.mxu1 %v337_v15 }
  0x23   :  { %172 = vmatprep.subr.bf16.mxu0 %v349_v0  ;;  %313 = vmatprep.subr.bf16.mxu1 %v349_v0 }
  0x26   :  { %173 = vmatpush2.bf16.msra.mxu0 %v338_v16  ;;  %325 = vmatpush2.bf16.msra.mxu1 %v338_v16 }
  0x27   :  { %174 = vmatprep.subr.bf16.mxu0 %v349_v0  ;;  %314 = vmatprep.subr.bf16.mxu1 %v349_v0 }
  0x2a   :  { %175 = vmatpush2.bf16.msra.mxu0 %v339_v17  ;;  %326 = vmatpush2.bf16.msra.mxu1 %v339_v17 }
  0x2b   :  { %176 = vmatprep.subr.bf16.mxu0 %v349_v0  ;;  %315 = vmatprep.subr.bf16.mxu1 %v349_v0 }
  0x2e   :  { %177 = vmatpush2.bf16.msra.mxu0 %v340_v18  ;;  %327 = vmatpush2.bf16.msra.mxu1 %v340_v18 }
  0x31   :  { %179 = vmatmul.mubr.bf16.vlgmr.msra.gmra.mxu0 %v32_v23  ;;  %187 = vmatmul.mubr.bf16.vlgmr.msra.gmra.mxu1 %v34_v24 }
  0xf1   :  { %v180_v26 = vpop.f32.mrf.mxu0  ;;  %v188_v27 = vpop.f32.mrf.mxu1 }
  0xf2   :  { %v181_v30 = vadd.f32 %v287_v25, %v180_v26  ;;  %v189_v31 = vadd.f32 %v287_v25, %v188_v27 }
  0xf3   :  { %v182_v32 = vpop.f32.mrf.mxu0  ;;  %v190_v33 = vpop.f32.mrf.mxu1 }
  0xf4   :  { %v201_v34 = vadd.f32 %v197_v28, %v189_v31  ;;  %v199_v35 = vadd.f32 %v195_v29, %v181_v30 }
  0xf5   :  { %v183_v36 = vpop.f32.mrf.mxu0  ;;  %v191_v37 = vpop.f32.mrf.mxu1 }
  0xf6   :  { %v184_v40 = vadd.f32 %v287_v25, %v183_v36  ;;  %v192_v41 = vadd.f32 %v287_v25, %v191_v37  ;;  %v210_v42 = vsel %vm203_vm1, %v201_v34, 0.0  ;;  %v204_v43 = vsel %vm203_vm1, %v199_v35, 0.0 }
  0xf7   :  { %v193_v44 = vpop.f32.mrf.mxu1  ;;  %211 = vadd.xlane.f32.xlu1 %v210_v42  ;;  %v185_v45 = vpop.f32.mrf.mxu0  ;;  %205 = vadd.xlane.f32.xlu0 %v204_v43 }
  0xf8   :  { %v202_v46 = vadd.f32 %v198_v38, %v192_v41  ;;  %v200_v47 = vadd.f32 %v196_v39, %v184_v40 }
  0xfa   :  { %v213_v48 = vsel %vm203_vm1, %v202_v46, 0.0  ;;  %v207_v49 = vsel %vm203_vm1, %v200_v47, 0.0 }
  0xfb   :  { %214 = vadd.xlane.f32.xlu1 %v213_v48  ;;  %208 = vadd.xlane.f32.xlu0 %v207_v49 }
 0x180   :  { %v212_v50 = vpop.xlane.xlu1 %211  ;;  %v206_v51 = vpop.xlane.xlu0 %205 }
 0x181   :  { %v219_v52 = vmul.f32 0.03125, %v212_v50  ;;  %v217_v53 = vmul.f32 0.03125, %v206_v51 }
 0x183   :  { %v223_v54 = vsub.f32 %v201_v34, %v219_v52  ;;  %v221_v55 = vsub.f32 %v199_v35, %v217_v53 }
 0x184   :  { %v215_v56 = vpop.xlane.xlu1 %214  ;;  %v209_v57 = vpop.xlane.xlu0 %208 }
 0x185   :  { %v220_v58 = vmul.f32 0.03125, %v215_v56  ;;  %v218_v59 = vmul.f32 0.03125, %v209_v57  ;;  %v225_v60 = vmul.f32 %v221_v55, %v221_v55  ;;  %v227_v0 = vmul.f32 %v223_v54, %v223_v54 }
 0x187   :  { %v224_v61 = vsub.f32 %v202_v46, %v220_v58  ;;  %v222_v62 = vsub.f32 %v200_v47, %v218_v59  ;;  %v229_v63 = vsel %vm203_vm1, %v225_v60, 0.0  ;;  %v235_v2 = vsel %vm203_vm1, %v227_v0, 0.0 }
 0x188   :  { %230 = vadd.xlane.f32.xlu0 %v229_v63 }
 0x189   :  { %v226_v1 = vmul.f32 %v222_v62, %v222_v62  ;;  %v228_v4 = vmul.f32 %v224_v61, %v224_v61 }
 0x18b   :  { %v232_v3 = vsel %vm203_vm1, %v226_v1, 0.0  ;;  %v238_v5 = vsel %vm203_vm1, %v228_v4, 0.0 }
 0x18c   :  { %236 = vadd.xlane.f32.xlu0 %v235_v2  ;;  %233 = vadd.xlane.f32.xlu1 %v232_v3 }
 0x190   :  { %239 = vadd.xlane.f32.xlu1 %v238_v5 }
 0x211   :  { %v231_v6 = vpop.xlane.xlu0 %230 }
 0x212   :  { %v241_v7 = vmul.f32 0.03125, %v231_v6 }
 0x214   :  { %v245_v8 = vadd.f32 1e-12, %v241_v7 }
 0x215   :  { %v234_v9 = vpop.xlane.xlu1 %233  ;;  %v237_v10 = vpop.xlane.xlu0 %236 }
 0x216   :  { %341 = vrsqrt.f32 %v245_v8  ;;  %v242_v11 = vmul.f32 0.03125, %v234_v9  ;;  %v243_v12 = vmul.f32 0.03125, %v237_v10 }
 0x218   :  { %v246_v13 = vadd.f32 1e-12, %v242_v11  ;;  %v247_v14 = vadd.f32 1e-12, %v243_v12 }
 0x219   :  { %v240_v15 = vpop.xlane.xlu1 %239 }
 0x21a   :  { %343 = vrsqrt.f32 %v246_v13  ;;  %v244_v16 = vmul.f32 0.03125, %v240_v15 }
 0x21b   :  { %345 = vrsqrt.f32 %v247_v14 }
 0x21c   :  { %v248_v17 = vadd.f32 1e-12, %v244_v16 }
 0x21e   :  { %347 = vrsqrt.f32 %v248_v17 }
 0x223   :  { %v342_v18 = vpop.eup %341 }
 0x224   :  { %v253_v20 = vmul.f32 %v342_v18, %v221_v55 }
 0x226   :  { %v264_v22 = vmul.f32 %v302_v19, %v253_v20 }
 0x227   :  { %v344_v23 = vpop.eup %343 }
 0x228   :  { %v346_v24 = vpop.eup %345  ;;  %v275_v25 = vadd.f32 %v303_v21, %v264_v22  ;;  %v254_v26 = vmul.f32 %v344_v23, %v222_v62 }
 0x229   :  { %v255_v27 = vmul.f32 %v346_v24, %v223_v54 }
 0x22a   :  { %279 = vst.msk [vmem:[%s520_s6] sm:$0xff] %vm203_vm1, %v275_v25  ;;  %v265_v28 = vmul.f32 %v302_v19, %v254_v26 }
 0x22b   :  { %v348_v29 = vpop.eup %347  ;;  %v266_v30 = vmul.f32 %v302_v19, %v255_v27 }
 0x22c   :  { %v276_v31 = vadd.f32 %v303_v21, %v265_v28  ;;  %v256_v32 = vmul.f32 %v348_v29, %v224_v61 }
 0x22d   :  { %v277_v33 = vadd.f32 %v303_v21, %v266_v30 }
 0x22e   :  { %280 = vst.msk [vmem:[%s520_s6 + $0x8] sm:$0xff] %vm203_vm1, %v276_v31  ;;  %v267_v34 = vmul.f32 %v302_v19, %v256_v32 }
 0x22f   :  { %281 = vst.msk [vmem:[%s520_s6 + $0x10] sm:$0xff] %vm203_vm1, %v277_v33 }
 0x230   :  { %v278_v35 = vadd.f32 %v303_v21, %v267_v34 }
 0x232   :  { %282 = vst.msk [vmem:[%s520_s6 + $0x18] sm:$0xff] %vm203_vm1, %v278_v35 }

// kernel: forward.35
= control target key start
LH: loop header
LB: loop body
LE: loop exit
PB: predicated region body
PF: predicated region fallthrough
CT: control target
= control target key end

     0   :  { %v150_v1 = vmov 0.0   ;;  %vm151_vm0 = vmmov 0   ;;  %s193_s0 = inlined_call_operand.vmem [shape: f32[16,32], index: 0, kind: input, shape index: {}]   ;;  %s194_s1 = inlined_call_operand.vmem [shape: bf16[32,100], index: 1, kind: input, shape index: {}]   ;;  %s195_s2 = inlined_call_operand.vmem [shape: f32[1,100], index: 2, kind: input, shape index: {}]   ;;  %s196_s3 = inlined_call_operand.hbm [shape: f32[16,100], index: 3, kind: output, shape index: {}]  }
   0x1   :  { %v126_v0 = vld [vmem:[%s194_s1 + $0x8] sm:$0xff]   ;;  %113 = vmatprep.subr.bf16.mxu0 %v150_v1  ;;  %v127_v2 = vld [vmem:[%s194_s1] sm:$0xff]   ;;  %117 = vmatprep.mubr.msk.bf16.mxu0 %vm151_vm0, %v150_v1 }
   0x2   :  { %114 = vmatpush3.bf16.msra.mxu0 %v126_v0  ;;  %v16_v3 = vld [vmem:[%s193_s0] sm:$0xff]  ;;  %v17_v4 = vld [vmem:[%s193_s0 + $0x8] sm:$0xff] }
   0x3   :  { %115 = vmatprep.subr.bf16.mxu0 %v150_v1 }
   0x4   :  { %8 = vsyncpa [#allocation3], 0  ;;  %v18_v5 = vpack.c.bf16 %v17_v4, %v16_v3  ;;  %vm42_vm1 = vcmask 261120   ;;  %v106_v6 = vld [vmem:[%s195_s2] ss:$0 sm:$0xff]  ;;  %vm87_vm2 = vcmask 818176  }
   0x5   :  { %s152_s1 = smov [#allocation2]  }
   0x6   :  { %116 = vmatpush3.bf16.msra.mxu0 %v127_v2  ;;  %s95_s22 = sshll.u32 %s152_s1, 4  ;;  %s96_s22 = int_to_ptr.vmem [resolvable:$true] %s95_s22 }
   0x7   :  { %s128_s0 = scalar_lea.vmem %s96_s22, 256  ;;  %p133_p1 = scmp.lt.s32.totalorder %s96_s22, %s96_s22 }
   0x8   :  { %p129_p0 = scmp.ne.s32.totalorder %s96_s22, %s128_s0  ;;  %p134_p2 = scmp.lt.s32.totalorder %s128_s0, %s128_s0 }
   0x9   :  { %118 = vmatmul.mubr.msk.bf16.vlgmr.msra.gmra.mxu0 %vm42_vm1, %v18_v5 }
   0xa   :  { %p135_p3 = por %p134_p2, %p133_p1 }
   0xc   :  { %p136_p4 = pnand %p135_p3, %p129_p0 }
  0xc9   :  { %v80_v7 = vpop.f32.mrf.mxu0 }
  0xca   :  { %v81_v8 = vadd.f32 %v106_v6, %v80_v7 }
  0xcb   :  { %v119_v9 = vpop.f32.mrf.mxu0 }
  0xcc   :  { %88 = vst.msk [vmem:[#allocation2] sm:$0xff] %vm87_vm2, %v81_v8 }
  0xcd   :  { %v83_v10 = vpop.f32.mrf.mxu0 }
  0xce   :  { %v84_v11 = vadd.f32 %v106_v6, %v83_v10 }
  0xcf   :  { %v120_v12 = vpop.f32.mrf.mxu0 }
  0xd0   :  { %89 = vst.msk [vmem:[#allocation2 + $0x8] sm:$0xff] %vm87_vm2, %v84_v11 }
  0xd1   :  { %139 = shalt.err (!%p136_p4)
}
  0xd2   :  { %s153_s2 = smov 128   ;;  %s154_s23 = smov 8  }
  0xd3   :  { %101 = dma.vmem_to_hbm [thread:$0]  %s96_s22, 256, %s196_s3, [#allocation3], %s153_s2, %s153_s2, %s154_s23  }
  0xd4   :  { %148 = dma.done.wait [#allocation3], 256  }
  0xd5   :  { %149 = vsyncadd [#allocation3], 4294967040 }
  0xd6   :  { %105 = vsyncpa [#allocation3], 1 }

// kernel: forward.32
= control target key start
LH: loop header
LB: loop body
LE: loop exit
PB: predicated region body
PF: predicated region fallthrough
CT: control target
= control target key end

     0   :  { %s884_s12 = smov 0   ;;  %s967_s0 = inlined_call_operand.vmem [shape: f32[2,4,8,8], index: 0, kind: input, shape index: {}]   ;;  %s968_s1 = inlined_call_operand.vmem [shape: f32[2,4,16,8], index: 1, kind: input, shape index: {}]   ;;  %s969_s2 = inlined_call_operand.vmem [shape: f32[2,4,16,8], index: 2, kind: input, shape index: {}]   ;;  %s970_s3 = inlined_call_operand.vmem [shape: f32[2,4,8,8], index: 3, kind: output, shape index: {}]  }
   0x1 LB: > { %s737_s13 = sadd.s32 4294967295, %s860_s12   ;;  %p741_p0 = scmp.ge.s32.totalorder %s860_s12, 1  ;;  %s860_s12 = sphi %s884_s12, %s13_s12  }
   0x2   : > { %p157_p1 = scmp.lt.s32.totalorder %s860_s12, 3 }
   0x4   : > { %p158_p2 = pnand %p741_p0, %p157_p1 }
   0x5   : > { %p191_p3 = scmp.lt.s32.totalorder (!%p158_p2), %s737_s13, 1 }
   0x6   : > { %161 = sbr.rel (%p158_p2) target bundleno = 743 (0x2e7), region = 32 }
   0xb   : > { %v862_v0 = vmov 0.0   ;;  %s972_s13 = smov (!%p191_p3, %s737_s13), 1  ;;  %vm863_vm0 = vmmov 0   ;;  %vm248_vm1 = vcmask 64512   ;;  %vm433_vm2 = vcmask 130048  }
   0xc   : > { %780 = vmatprep.subr.bf16.mxu0 %v862_v0  ;;  %786 = vmatprep.subr.bf16.mxu1 %v862_v0  ;;  %s761_s14 = sshll.u32 %s972_s13, 6  ;;  %s760_s15 = sshll.u32 %s972_s13, 5 }
   0xd   : > { %782 = vmatprep.mubr.msk.bf16.mxu0 %vm863_vm0, %v862_v0  ;;  %788 = vmatprep.mubr.msk.bf16.mxu1 %vm863_vm0, %v862_v0  ;;  %s200_s18 = scalar_lea.vmem %s968_s1, %s761_s14  ;;  %s195_s21 = scalar_lea.vmem %s967_s0, %s760_s15 }
   0xe   : > { %v224_v1 = vld [vmem:[%s200_s18] sm:$0xff]  ;;  %v225_v2 = vld [vmem:[%s200_s18 + $0x8] sm:$0xff]  ;;  %v226_v3 = vld [vmem:[%s200_s18 + $0x10] sm:$0xff]  ;;  %s205_s24 = scalar_lea.vmem %s969_s2, %s761_s14  ;;  %s210_s27 = scalar_lea.vmem %s970_s3, %s760_s15 }
   0xf   : > { %v232_v4 = vpack.c.bf16 %v225_v2, %v224_v1  ;;  %v227_v5 = vld [vmem:[%s200_s18 + $0x18] sm:$0xff]  ;;  %v212_v6 = vld [vmem:[%s195_s21] sm:$0xff]  ;;  %v213_v7 = vld [vmem:[%s195_s21 + $0x8] sm:$0xff] }
  0x10   : > { %v233_v8 = vpack.c.bf16 %v227_v5, %v226_v3  ;;  %v228_v9 = vld [vmem:[%s200_s18 + $0x20] sm:$0xff]  ;;  %v229_v10 = vld [vmem:[%s200_s18 + $0x28] sm:$0xff]  ;;  %v216_v12 = vmul.f32 0.35355338, %v212_v6  ;;  %v230_v13 = vld [vmem:[%s200_s18 + $0x30] sm:$0xff] }
  0x11   : > { %v253_v11 = vsel %vm248_vm1, %v232_v4, 0  ;;  %v231_v14 = vld [vmem:[%s200_s18 + $0x38] sm:$0xff]  ;;  %v217_v16 = vmul.f32 0.35355338, %v213_v7  ;;  %v234_v17 = vpack.c.bf16 %v229_v10, %v228_v9  ;;  %v214_v21 = vld [vmem:[%s195_s21 + $0x10] sm:$0xff]  ;;  %v236_v6 = vld [vmem:[%s205_s24] sm:$0xff] }
  0x12   : > { %781 = vmatpush3.bf16.xpose.msra.mxu0 %v253_v11  ;;  %v299_v15 = vsel %vm248_vm1, %v233_v8, 0  ;;  %v235_v18 = vpack.c.bf16 %v231_v14, %v230_v13  ;;  %v220_v19 = vpack.c.bf16 %v216_v12, %v216_v12  ;;  %v215_v23 = vld [vmem:[%s195_s21 + $0x18] sm:$0xff]  ;;  %v218_v25 = vmul.f32 0.35355338, %v214_v21  ;;  %v237_v7 = vld [vmem:[%s205_s24 + $0x8] sm:$0xff]  ;;  %v238_v8 = vld [vmem:[%s205_s24 + $0x10] sm:$0xff] }
  0x13   : > { %787 = vmatpush3.bf16.xpose.msra.mxu1 %v299_v15  ;;  %792 = vmatprep.subr.bf16.mxu0 %v862_v0  ;;  %v221_v20 = vpack.c.bf16 %v217_v16, %v217_v16  ;;  %v345_v22 = vsel %vm248_vm1, %v234_v17, 0  ;;  %v219_v26 = vmul.f32 0.35355338, %v215_v23  ;;  %v244_v9 = vpack.c.bf16 %v237_v7, %v236_v6  ;;  %v239_v10 = vld [vmem:[%s205_s24 + $0x18] sm:$0xff]  ;;  %v240_v16 = vld [vmem:[%s205_s24 + $0x20] sm:$0xff]  ;;  %v241_v17 = vld [vmem:[%s205_s24 + $0x28] sm:$0xff] }
  0x14   : > { %798 = vmatprep.subr.bf16.mxu1 %v862_v0  ;;  %v391_v24 = vsel %vm248_vm1, %v235_v18, 0  ;;  %v222_v27 = vpack.c.bf16 %v218_v25, %v218_v25  ;;  %v245_v11 = vpack.c.bf16 %v239_v10, %v238_v8  ;;  %v243_v23 = vld [vmem:[%s205_s24 + $0x38] sm:$0xff] }
  0x15   : > { %v223_v28 = vpack.c.bf16 %v219_v26, %v219_v26 }
  0x19   : > { %783 = vmatmul.mubr.msk.bf16.vlgmr.msra.gmra.mxu0 %vm248_vm1, %v220_v19 }
  0x1a   : > { %789 = vmatmul.mubr.msk.bf16.vlgmr.msra.gmra.mxu1 %vm248_vm1, %v221_v20  ;;  %793 = vmatpush3.bf16.xpose.msra.mxu0 %v345_v22  ;;  %v246_v20 = vpack.c.bf16 %v241_v17, %v240_v16  ;;  %v242_v22 = vld [vmem:[%s205_s24 + $0x30] sm:$0xff] }
  0x1b   : > { %799 = vmatpush3.bf16.xpose.msra.mxu1 %v391_v24  ;;  %794 = vmatprep.mubr.msk.bf16.mxu0 %vm863_vm0, %v862_v0  ;;  %v247_v26 = vpack.c.bf16 %v243_v23, %v242_v22 }
  0x1c   : > { %800 = vmatprep.mubr.msk.bf16.mxu1 %vm863_vm0, %v862_v0  ;;  %804 = vmatprep.subr.bf16.mxu0 %v862_v0 }
  0x1d   : > { %810 = vmatprep.subr.bf16.mxu1 %v862_v0 }
  0x21   : > { %795 = vmatmul.mubr.msk.bf16.vlgmr.msra.gmra.mxu0 %vm248_vm1, %v222_v27 }
  0x22   : > { %801 = vmatmul.mubr.msk.bf16.vlgmr.msra.gmra.mxu1 %vm248_vm1, %v223_v28  ;;  %806 = vmatprep.mubr.msk.bf16.mxu0 %vm863_vm0, %v862_v0 }
  0x23   : > { %812 = vmatprep.mubr.msk.bf16.mxu1 %vm863_vm0, %v862_v0  ;;  %805 = vmatpush3.bf16.msra.mxu0 %v244_v9 }
  0x24   : > { %811 = vmatpush3.bf16.msra.mxu1 %v245_v11  ;;  %816 = vmatprep.subr.bf16.mxu0 %v862_v0 }
  0x25   : > { %822 = vmatprep.subr.bf16.mxu1 %v862_v0 }
  0xd9   : > { %v289_v29 = vpop.f32.mrf.mxu0 }
  0xda   : > { %v335_v30 = vpop.f32.mrf.mxu1  ;;  %v434_v31 = vsel %vm433_vm2, %v289_v29, -inf }
  0xdb   : > { %435 = vmax.xlane.f32.xlu0 %v434_v31  ;;  %v784_v32 = vpop.f32.mrf.mxu0  ;;  %v437_v34 = vsel %vm433_vm2, %v335_v30, -inf }
  0xdc   : > { %v790_v33 = vpop.f32.mrf.mxu1 }
  0xdd   : > { %v292_v35 = vpop.f32.mrf.mxu0 }
  0xde   : > { %v338_v36 = vpop.f32.mrf.mxu1 }
  0xdf   : > { %438 = vmax.xlane.f32.xlu0 %v437_v34  ;;  %v785_v37 = vpop.f32.mrf.mxu0 }
  0xe0   : > { %v791_v38 = vpop.f32.mrf.mxu1 }
  0xe1   : > { %v381_v39 = vpop.f32.mrf.mxu0 }
  0xe2   : > { %v427_v40 = vpop.f32.mrf.mxu1  ;;  %v440_v41 = vsel %vm433_vm2, %v381_v39, -inf }
  0xe3   : > { %441 = vmax.xlane.f32.xlu1 %v440_v41  ;;  %v796_v42 = vpop.f32.mrf.mxu0  ;;  %v443_v44 = vsel %vm433_vm2, %v427_v40, -inf }
  0xe4   : > { %v802_v43 = vpop.f32.mrf.mxu1 }
  0xe5   : > { %v384_v45 = vpop.f32.mrf.mxu0 }
  0xe6   : > { %v430_v46 = vpop.f32.mrf.mxu1 }
  0xe7   : > { %444 = vmax.xlane.f32.xlu1 %v443_v44  ;;  %v797_v47 = vpop.f32.mrf.mxu0 }
  0xe8   : > { %v803_v48 = vpop.f32.mrf.mxu1 }
 0x164   : > { %v436_v49 = vpop.xlane.xlu0 %435 }
 0x165   : > { %v446_v50 = vsub.f32 %v289_v29, %v436_v49 }
 0x167   : > { %v450_v51 = vmul.f32 1.442695, %v446_v50 }
 0x168   : > { %v439_v52 = vpop.xlane.xlu0 %438 }
 0x169   : > { %838 = vpow2.f32 %v450_v51  ;;  %v447_v53 = vsub.f32 %v335_v30, %v439_v52 }
 0x16b   : > { %v452_v54 = vmul.f32 1.442695, %v447_v53 }
 0x16c   : > { %v442_v55 = vpop.xlane.xlu1 %441 }
 0x16d   : > { %840 = vpow2.f32 %v452_v54  ;;  %v448_v56 = vsub.f32 %v381_v39, %v442_v55 }
 0x16f   : > { %v454_v57 = vmul.f32 1.442695, %v448_v56 }
 0x170   : > { %v445_v58 = vpop.xlane.xlu1 %444 }
 0x171   : > { %842 = vpow2.f32 %v454_v57  ;;  %v449_v59 = vsub.f32 %v427_v40, %v445_v58 }
 0x173   : > { %v456_v60 = vmul.f32 1.442695, %v449_v59 }
 0x175   : > { %844 = vpow2.f32 %v456_v60 }
 0x176   : > { %v839_v61 = vpop.eup %838 }
 0x177   : > { %v458_v62 = vsel %vm433_vm2, %v839_v61, 0.0 }
 0x178   : > { %459 = vadd.xlane.f32.xlu0 %v458_v62 }
 0x17a   : > { %v841_v63 = vpop.eup %840 }
 0x17b   : > { %v461_v1 = vsel %vm433_vm2, %v841_v63, 0.0 }
 0x17c   : > { %462 = vadd.xlane.f32.xlu1 %v461_v1 }
 0x17e   : > { %v843_v2 = vpop.eup %842 }
 0x17f   : > { %v464_v3 = vsel %vm433_vm2, %v843_v2, 0.0 }
 0x180   : > { %465 = vadd.xlane.f32.xlu0 %v464_v3 }
 0x182   : > { %v845_v4 = vpop.eup %844 }
 0x183   : > { %v467_v5 = vsel %vm433_vm2, %v845_v4, 0.0 }
 0x184   : > { %468 = vadd.xlane.f32.xlu1 %v467_v5 }
 0x201   : > { %v460_v12 = vpop.xlane.xlu0 %459 }
 0x202   : > { %846 = vrcp.f32 %v460_v12 }
 0x205   : > { %v463_v13 = vpop.xlane.xlu1 %462 }
 0x206   : > { %848 = vrcp.f32 %v463_v13 }
 0x209   : > { %v466_v14 = vpop.xlane.xlu0 %465 }
 0x20a   : > { %850 = vrcp.f32 %v466_v14 }
 0x20d   : > { %v469_v15 = vpop.xlane.xlu1 %468 }
 0x20e   : > { %852 = vrcp.f32 %v469_v15 }
 0x20f   : > { %v847_v18 = vpop.eup %846 }
 0x210   : > { %v474_v19 = vmul.f32 %v847_v18, %v839_v61 }
 0x212   : > { %v478_v21 = vpack.c.bf16 %v474_v19, %v474_v19 }
 0x213   : > { %v849_v24 = vpop.eup %848 }
 0x214   : > { %807 = vmatmul.mubr.msk.bf16.vlgmr.msra.gmra.mxu0 %vm433_vm2, %v478_v21  ;;  %v475_v25 = vmul.f32 %v849_v24, %v841_v63 }
 0x215   : > { %817 = vmatpush3.bf16.msra.mxu0 %v246_v20  ;;  %818 = vmatprep.mubr.msk.bf16.mxu0 %vm863_vm0, %v862_v0 }
 0x216   : > { %v479_v27 = vpack.c.bf16 %v475_v25, %v475_v25 }
 0x217   : > { %v851_v28 = vpop.eup %850 }
 0x218   : > { %813 = vmatmul.mubr.msk.bf16.vlgmr.msra.gmra.mxu1 %vm433_vm2, %v479_v27  ;;  %v476_v29 = vmul.f32 %v851_v28, %v843_v2 }
 0x219   : > { %823 = vmatpush3.bf16.msra.mxu1 %v247_v26  ;;  %824 = vmatprep.mubr.msk.bf16.mxu1 %vm863_vm0, %v862_v0 }
 0x21a   : > { %v480_v30 = vpack.c.bf16 %v476_v29, %v476_v29 }
 0x21b   : > { %v853_v31 = vpop.eup %852 }
 0x21c   : > { %819 = vmatmul.mubr.msk.bf16.vlgmr.msra.gmra.mxu0 %vm433_vm2, %v480_v30  ;;  %v477_v32 = vmul.f32 %v853_v31, %v845_v4 }
 0x21e   : > { %v481_v33 = vpack.c.bf16 %v477_v32, %v477_v32 }
 0x220   : > { %825 = vmatmul.mubr.msk.bf16.vlgmr.msra.gmra.mxu1 %vm433_vm2, %v481_v33 }
 0x2d4   : > { %v519_v34 = vpop.f32.mrf.mxu0 }
 0x2d5   : > { %654 = vst.msk [vmem:[%s210_s27] sm:$0xff] %vm248_vm1, %v519_v34 }
 0x2d6   : > { %v808_v35 = vpop.f32.mrf.mxu0 }
 0x2d8   : > { %v522_v36 = vpop.f32.mrf.mxu0  ;;  %v562_v37 = vpop.f32.mrf.mxu1 }
 0x2d9   : > { %655 = vst.msk [vmem:[%s210_s27 + $0x8] sm:$0xff] %vm248_vm1, %v562_v37 }
 0x2da   : > { %v809_v0 = vpop.f32.mrf.mxu0  ;;  %v814_v38 = vpop.f32.mrf.mxu1 }
 0x2dc   : > { %v565_v39 = vpop.f32.mrf.mxu1  ;;  %v605_v40 = vpop.f32.mrf.mxu0 }
 0x2dd   : > { %656 = vst.msk [vmem:[%s210_s27 + $0x10] sm:$0xff] %vm248_vm1, %v605_v40 }
 0x2de   : > { %v815_v41 = vpop.f32.mrf.mxu1  ;;  %v820_v42 = vpop.f32.mrf.mxu0 }
 0x2e0   : > { %v608_v43 = vpop.f32.mrf.mxu0  ;;  %v648_v44 = vpop.f32.mrf.mxu1 }
 0x2e1   : > { %657 = vst.msk [vmem:[%s210_s27 + $0x18] sm:$0xff] %vm248_vm1, %v648_v44 }
 0x2e2   : > { %v821_v45 = vpop.f32.mrf.mxu0  ;;  %v826_v46 = vpop.f32.mrf.mxu1 }
 0x2e4   : > { %v651_v47 = vpop.f32.mrf.mxu1 }
 0x2e6   : > { %v827_v48 = vpop.f32.mrf.mxu1 }
 0x2e7 PF: > { %s13_s12 = sadd.s32 1, %s860_s12  }
 0x2e8   : > { %p10_p4 = scmp.ge.s32.totalorder %s13_s12, 4  }
 0x2ea   :  { %12 = sbr.rel (!%p10_p4) target bundleno = 1 (0x1), region = 68 }

// kernel: forward.34
= control target key start
LH: loop header
LB: loop body
LE: loop exit
PB: predicated region body
PF: predicated region fallthrough
CT: control target
= control target key end

     0   :  { %v290_v0 = vmov 0.0   ;;  %vm291_vm0 = vmmov 0   ;;  %vm53_vm1 = vcmask 261120   ;;  %vm140_vm2 = vcmask 523264   ;;  %s381_s1 = inlined_call_operand.vmem [shape: bf16[32,64], index: 1, kind: input, shape index: {}]   ;;  %s382_s0 = inlined_call_operand.vmem [shape: f32[16,32], index: 0, kind: input, shape index: {}]   ;;  %s383_s3 = inlined_call_operand.vmem [shape: bf16[64,32], index: 3, kind: input, shape index: {}]   ;;  %s384_s2 = inlined_call_operand.vmem [shape: f32[1,64], index: 2, kind: input, shape index: {}]   ;;  %s385_s4 = inlined_call_operand.vmem [shape: f32[1,32], index: 4, kind: input, shape index: {}]   ;;  %s386_s5 = inlined_call_operand.vmem [shape: f32[1,32], index: 5, kind: input, shape index: {}]   ;;  %s387_s6 = inlined_call_operand.vmem [shape: f32[1,32], index: 6, kind: input, shape index: {}]   ;;  %s388_s7 = inlined_call_operand.vmem [shape: f32[16,32], index: 7, kind: output, shape index: {}]  }
   0x1   :  { %258 = vmatprep.subr.bf16.mxu0 %v290_v0  ;;  %v280_v1 = vld [vmem:[%s381_s1 + $0x8] sm:$0xff]   ;;  %262 = vmatprep.mubr.msk.bf16.mxu0 %vm291_vm0, %v290_v0  ;;  %v281_v2 = vld [vmem:[%s381_s1] sm:$0xff]   ;;  %v282_v5 = vld [vmem:[%s383_s3 + $0x18] sm:$0xff]  }
   0x2   :  { %266 = vmatprep.subr.bf16.mxu1 %v290_v0  ;;  %274 = vmatprep.mubr.msk.bf16.mxu1 %vm291_vm0, %v290_v0  ;;  %v27_v3 = vld [vmem:[%s382_s0] sm:$0xff]  ;;  %v28_v4 = vld [vmem:[%s382_s0 + $0x8] sm:$0xff]  ;;  %v283_v7 = vld [vmem:[%s383_s3 + $0x10] sm:$0xff]  }
   0x3   :  { %259 = vmatpush3.bf16.msra.mxu0 %v280_v1  ;;  %v29_v6 = vpack.c.bf16 %v28_v4, %v27_v3  ;;  %267 = vmatpush3.bf16.msra.mxu1 %v282_v5  ;;  %v284_v8 = vld [vmem:[%s383_s3 + $0x8] sm:$0xff]   ;;  %v285_v9 = vld [vmem:[%s383_s3] sm:$0xff]  }
   0x4   :  { %260 = vmatprep.subr.bf16.mxu0 %v290_v0  ;;  %268 = vmatprep.subr.bf16.mxu1 %v290_v0  ;;  %v238_v10 = vld [vmem:[%s384_s2] ss:$0 sm:$0xff] }
   0x5   :  { %v242_v20 = vld [vmem:[%s385_s4] ss:$0 sm:$0xff] }
   0x6   :  { %v248_v48 = vld [vmem:[%s386_s5] ss:$0 sm:$0xff] }
   0x7   :  { %261 = vmatpush3.bf16.msra.mxu0 %v281_v2  ;;  %269 = vmatpush3.bf16.msra.mxu1 %v283_v7  ;;  %v249_v50 = vld [vmem:[%s387_s6] ss:$0 sm:$0xff] }
   0x8   :  { %270 = vmatprep.subr.bf16.mxu1 %v290_v0 }
   0xa   :  { %263 = vmatmul.mubr.msk.bf16.vlgmr.msra.gmra.mxu0 %vm53_vm1, %v29_v6 }
   0xb   :  { %271 = vmatpush3.bf16.msra.mxu1 %v284_v8 }
   0xc   :  { %272 = vmatprep.subr.bf16.mxu1 %v290_v0 }
   0xf   :  { %273 = vmatpush3.bf16.msra.mxu1 %v285_v9 }
  0xca   :  { %v91_v11 = vpop.f32.mrf.mxu0 }
  0xcb   :  { %v92_v13 = vadd.f32 %v238_v10, %v91_v11 }
  0xcc   :  { %v264_v12 = vpop.f32.mrf.mxu0 }
  0xcd   :  { %v98_v17 = vmax.f32 %v92_v13, 0.0 }
  0xce   :  { %v94_v14 = vpop.f32.mrf.mxu0 }
  0xcf   :  { %v95_v15 = vadd.f32 %v238_v10, %v94_v14 }
  0xd0   :  { %v265_v16 = vpop.f32.mrf.mxu0 }
  0xd1   :  { %v99_v18 = vmax.f32 %v95_v15, 0.0 }
  0xd3   :  { %v100_v19 = vpack.c.bf16 %v99_v18, %v98_v17 }
  0xd5   :  { %275 = vmatmul.mubr.msk.bf16.vlgmr.msra.gmra.mxu1 %vm140_vm2, %v100_v19 }
 0x195   :  { %v178_v21 = vpop.f32.mrf.mxu1 }
 0x196   :  { %v179_v22 = vadd.f32 %v242_v20, %v178_v21 }
 0x197   :  { %v276_v23 = vpop.f32.mrf.mxu1 }
 0x198   :  { %v185_v24 = vadd.f32 %v179_v22, %v27_v3 }
 0x199   :  { %v181_v25 = vpop.f32.mrf.mxu1 }
 0x19a   :  { %v182_v26 = vadd.f32 %v242_v20, %v181_v25  ;;  %v187_v27 = vsel %vm53_vm1, %v185_v24, 0.0 }
 0x19b   :  { %188 = vadd.xlane.f32.xlu0 %v187_v27  ;;  %v277_v28 = vpop.f32.mrf.mxu1 }
 0x19c   :  { %v186_v29 = vadd.f32 %v182_v26, %v28_v4 }
 0x19e   :  { %v190_v30 = vsel %vm53_vm1, %v186_v29, 0.0 }
 0x19f   :  { %191 = vadd.xlane.f32.xlu0 %v190_v30 }
 0x224   :  { %v189_v31 = vpop.xlane.xlu0 %188 }
 0x225   :  { %v194_v32 = vmul.f32 0.03125, %v189_v31 }
 0x227   :  { %v196_v33 = vsub.f32 %v185_v24, %v194_v32 }
 0x228   :  { %v192_v34 = vpop.xlane.xlu0 %191 }
 0x229   :  { %v195_v35 = vmul.f32 0.03125, %v192_v34  ;;  %v198_v36 = vmul.f32 %v196_v33, %v196_v33 }
 0x22b   :  { %v197_v37 = vsub.f32 %v186_v29, %v195_v35  ;;  %v200_v38 = vsel %vm53_vm1, %v198_v36, 0.0 }
 0x22c   :  { %201 = vadd.xlane.f32.xlu1 %v200_v38 }
 0x22d   :  { %v199_v39 = vmul.f32 %v197_v37, %v197_v37 }
 0x22f   :  { %v203_v40 = vsel %vm53_vm1, %v199_v39, 0.0 }
 0x230   :  { %204 = vadd.xlane.f32.xlu1 %v203_v40 }
 0x2b5   :  { %v202_v41 = vpop.xlane.xlu1 %201 }
 0x2b6   :  { %v206_v42 = vmul.f32 0.03125, %v202_v41 }
 0x2b8   :  { %v208_v43 = vadd.f32 1e-05, %v206_v42 }
 0x2b9   :  { %v205_v44 = vpop.xlane.xlu1 %204 }
 0x2ba   :  { %286 = vrsqrt.f32 %v208_v43  ;;  %v207_v45 = vmul.f32 0.03125, %v205_v44 }
 0x2bc   :  { %v209_v46 = vadd.f32 1e-05, %v207_v45 }
 0x2be   :  { %288 = vrsqrt.f32 %v209_v46 }
 0x2c7   :  { %v287_v47 = vpop.eup %286 }
 0x2c8   :  { %v212_v49 = vmul.f32 %v287_v47, %v196_v33 }
 0x2ca   :  { %v221_v51 = vmul.f32 %v248_v48, %v212_v49 }
 0x2cb   :  { %v289_v52 = vpop.eup %288 }
 0x2cc   :  { %v230_v53 = vadd.f32 %v249_v50, %v221_v51  ;;  %v213_v54 = vmul.f32 %v289_v52, %v197_v37 }
 0x2ce   :  { %232 = vst.msk [vmem:[%s388_s7] sm:$0xff] %vm53_vm1, %v230_v53  ;;  %v222_v55 = vmul.f32 %v248_v48, %v213_v54 }
 0x2d0   :  { %v231_v56 = vadd.f32 %v249_v50, %v222_v55 }
 0x2d2   :  { %233 = vst.msk [vmem:[%s388_s7 + $0x8] sm:$0xff] %vm53_vm1, %v231_v56 }

</bundles_post_ra>
